<compile_context>
chip_gen: v5e
topology: v5e:2x2
jax: 0.10.0
libtpu: 0.0.40
codegen_flags: <defaults>
</compile_context>

<pallas_src>
import functools

import jax
import jax.numpy as jnp
from jax.experimental import pallas as pl
from jax.experimental.pallas import tpu as pltpu


# ----------------------------------------------------------------------------
# Pallas kernel bodies
# ----------------------------------------------------------------------------
def _conv_leaky_kernel(pat_ref, w_ref, b_ref, o_ref):
    """o = leaky_relu(pat @ w + b, 0.2).  pat:(1,TM,K) bf16, w:(K,Co) bf16."""
    acc = jnp.dot(pat_ref[0], w_ref[...], preferred_element_type=jnp.float32)
    acc = acc + b_ref[...]
    acc = jnp.where(acc >= 0.0, acc, 0.2 * acc)
    o_ref[0] = acc.astype(o_ref.dtype)


def _conv_sft_kernel(pat_ref, w_ref, b_ref, x_ref, o_ref, *, nf):
    """Fused {mul_conv2, add_conv2} + SFT epilogue: o = x*sigmoid(mul) + add."""
    acc = jnp.dot(pat_ref[0], w_ref[...], preferred_element_type=jnp.float32)
    acc = acc + b_ref[...]
    mul = jax.nn.sigmoid(acc[:, :nf])
    add = acc[:, nf:]
    o_ref[0] = (x_ref[0] * mul + add).astype(o_ref.dtype)


def _fca_kernel(pat_ref, w_ref, b_ref, w1t_ref, b1_ref, w2_ref, b2_ref,
                att_ref, acc_ref, *, inv_hw):
    """relu(conv3x3) with the global-avg-pool accumulated over the M grid axis
    and the channel-attention MLP in the finalize step.  Emits att:(1,1,C)."""
    m = pl.program_id(1)
    y = jnp.dot(pat_ref[0], w_ref[...], preferred_element_type=jnp.float32)
    y = jnp.maximum(y + b_ref[...], 0.0)
    part = jnp.sum(y, axis=0, keepdims=True)          # (1, C) partial GAP sum

    @pl.when(m == 0)
    def _():
        acc_ref[...] = part

    @pl.when(m > 0)
    def _():
        acc_ref[...] = acc_ref[...] + part

    @pl.when(m == pl.num_programs(1) - 1)
    def _():
        z = acc_ref[...] * inv_hw                                        # (1, C)
        h = jnp.sum(z * w1t_ref[...], axis=1, keepdims=True) + b1_ref[...]  # (cr,1)
        h = jnp.maximum(h, 0.0)
        a = jnp.sum(h * w2_ref[...], axis=0, keepdims=True) + b2_ref[...]   # (1,C)
        att_ref[0] = jax.nn.sigmoid(a)


def _specpow_shift_kernel(re_ref, im_ref, o_ref, *, gamma, lane_shift):
    """(|z|+1e-8)^gamma computed as (|z|^2 + 1e-16)^(gamma/2) (no sqrt, less
    EUP work), with the W half-shift of fftshift folded in as a lane roll."""
    p2 = re_ref[0] * re_ref[0] + im_ref[0] * im_ref[0] + 1e-16
    mag = jnp.exp((0.5 * gamma) * jnp.log(p2))
    mag = pltpu.roll(mag, lane_shift, 1)              # W-shift on the W*C lanes
    o_ref[0] = mag.astype(o_ref.dtype)


def _apply_att_kernel(pre_ref, att_ref, x_ref, o_ref):
    o_ref[0] = pre_ref[0] * att_ref[0] + x_ref[0]


def _apply_att_res_kernel(pre_ref, att_ref, x_ref, xg_ref, o_ref):
    # last block of the group: fold the group residual into the same pass
    o_ref[0] = pre_ref[0] * att_ref[0] + x_ref[0] + xg_ref[0]


# ----------------------------------------------------------------------------
# tiling helpers + host-side glue
# ----------------------------------------------------------------------------
def _pick_m_tile(m, row_bytes, max_bytes=6 << 20):
    """Largest spatial-row tile (multiple of 16) dividing m within a VMEM byte
    budget (double-buffered inputs + weights + output stay << scoped limit)."""
    for tm in (2048, 1024, 512, 256, 128, 64, 32, 16):
        if m % tm == 0 and tm * row_bytes <= max_bytes:
            return tm
    return m


def _pick_row_tile(n, row_bytes, max_bytes=2 << 20):
    for t in (256, 128, 64, 32, 16, 8):
        if n % t == 0 and t * row_bytes <= max_bytes:
            return t
    return None


def _im2col_3x3(x):
    """x:(N,H,W,C) -> (N, H*W, 9*C) 'SAME' 3x3 patches (host-side glue)."""
    n, h, w, c = x.shape
    xp = jnp.pad(x, ((0, 0), (1, 1), (1, 1), (0, 0)))
    cols = [xp[:, dy:dy + h, dx:dx + w, :] for dy in range(3) for dx in range(3)]
    return jnp.concatenate(cols, axis=-1).reshape(n, h * w, 9 * c)


# ----------------------------------------------------------------------------
# Pallas wrappers
# ----------------------------------------------------------------------------
def conv3x3_leaky_fused(x, wmat, bvec):
    """Fused stage-1 conv: leaky_relu(conv3x3(x), 0.2) for both branches.
    x:(N,H,W,Cin) -> (N,H,W,Cout) with Cout = 2*hid (mul || add)."""
    n, h, w, _ = x.shape
    m = h * w
    cout = wmat.shape[-1]
    pat = _im2col_3x3(x.astype(jnp.bfloat16))
    k = pat.shape[-1]
    tm = _pick_m_tile(m, k * 2 + cout * 4)
    out_dtype = jnp.bfloat16 if tm % 16 == 0 else jnp.float32
    out = pl.pallas_call(
        _conv_leaky_kernel,
        out_shape=jax.ShapeDtypeStruct((n, m, cout), out_dtype),
        grid=(n, m // tm),
        in_specs=[
            pl.BlockSpec((1, tm, k), lambda i, j: (i, j, 0)),
            pl.BlockSpec((k, cout), lambda i, j: (0, 0)),
            pl.BlockSpec((1, cout), lambda i, j: (0, 0)),
        ],
        out_specs=pl.BlockSpec((1, tm, cout), lambda i, j: (i, j, 0)),
        compiler_params=pltpu.CompilerParams(
            dimension_semantics=("parallel", "parallel")),
    )(pat, wmat, bvec.reshape(1, cout))
    return out.reshape(n, h, w, cout)


def conv3x3_sft(t, wmat, bvec, x):
    """Fused stage-2 conv + SFT epilogue:
    pre = x * sigmoid(mul_conv2(t_mul)) + add_conv2(t_add)."""
    n, h, w, _ = t.shape
    nf = x.shape[-1]
    m = h * w
    pat = _im2col_3x3(t.astype(jnp.bfloat16))
    k = pat.shape[-1]
    x2 = x.reshape(n, m, nf)
    tm = _pick_m_tile(m, k * 2 + nf * 8)
    out = pl.pallas_call(
        functools.partial(_conv_sft_kernel, nf=nf),
        out_shape=jax.ShapeDtypeStruct((n, m, nf), jnp.float32),
        grid=(n, m // tm),
        in_specs=[
            pl.BlockSpec((1, tm, k), lambda i, j: (i, j, 0)),
            pl.BlockSpec((k, 2 * nf), lambda i, j: (0, 0)),
            pl.BlockSpec((1, 2 * nf), lambda i, j: (0, 0)),
            pl.BlockSpec((1, tm, nf), lambda i, j: (i, j, 0)),
        ],
        out_specs=pl.BlockSpec((1, tm, nf), lambda i, j: (i, j, 0)),
        compiler_params=pltpu.CompilerParams(
            dimension_semantics=("parallel", "parallel")),
    )(pat, wmat, bvec.reshape(1, 2 * nf), x2)
    return out.reshape(n, h, w, nf)


def fca_attention(spec, wmat, bvec, w1t, b1, w2, b2):
    """FCALayer head: att = sigmoid(MLP(GAP(relu(conv3x3(spec))))) : (N, C)."""
    n, h, w, c = spec.shape
    m = h * w
    cr = w1t.shape[0]
    pat = _im2col_3x3(spec.astype(jnp.bfloat16))
    k = pat.shape[-1]
    tm = _pick_m_tile(m, k * 2 + c * 4)
    att = pl.pallas_call(
        functools.partial(_fca_kernel, inv_hw=1.0 / float(m)),
        out_shape=jax.ShapeDtypeStruct((n, 1, c), jnp.float32),
        grid=(n, m // tm),
        in_specs=[
            pl.BlockSpec((1, tm, k), lambda i, j: (i, j, 0)),
            pl.BlockSpec((k, c), lambda i, j: (0, 0)),
            pl.BlockSpec((1, c), lambda i, j: (0, 0)),
            pl.BlockSpec((cr, c), lambda i, j: (0, 0)),
            pl.BlockSpec((cr, 1), lambda i, j: (0, 0)),
            pl.BlockSpec((cr, c), lambda i, j: (0, 0)),
            pl.BlockSpec((1, c), lambda i, j: (0, 0)),
        ],
        out_specs=pl.BlockSpec((1, 1, c), lambda i, j: (i, 0, 0)),
        scratch_shapes=[pltpu.VMEM((1, c), jnp.float32)],
        compiler_params=pltpu.CompilerParams(
            dimension_semantics=("parallel", "arbitrary")),
    )(pat, wmat, bvec.reshape(1, c), w1t, b1.reshape(cr, 1), w2,
      b2.reshape(1, c))
    return att.reshape(n, c)


def fft_mag_pow_shift(x, gamma=0.8):
    """fftshift2d((|fftn(x, spatial)| + 1e-8) ** gamma), shift folded in-kernel."""
    n, h, w, c = x.shape
    # TODO(synk): 2-D FFT has no Pallas TPU primitive; computed with jnp.fft.
    spec = jnp.fft.fftn(x.astype(jnp.float32), axes=(1, 2))
    re = jnp.real(spec).astype(jnp.float32)
    im = jnp.imag(spec).astype(jnp.float32)
    wc = w * c
    th = _pick_row_tile(h // 2, wc * 4) if (h % 2 == 0 and w % 2 == 0) else None
    if th is None:
        # TODO(synk): tiny/odd spatial dims -> plain-JAX fallback (even-dim
        # fftshift semantics, identical to the reference path).
        mag = (jnp.sqrt(re * re + im * im) + 1e-8) ** gamma
        return jnp.roll(mag, shift=(h // 2, w // 2), axis=(1, 2))
    hb = h // th
    shift_b = (h // 2) // th
    out = pl.pallas_call(
        functools.partial(_specpow_shift_kernel, gamma=gamma,
                          lane_shift=(w // 2) * c),
        out_shape=jax.ShapeDtypeStruct((n, h, wc), jnp.float32),
        grid=(n, hb),
        in_specs=[
            pl.BlockSpec((1, th, wc), lambda i, j: (i, j, 0)),
            pl.BlockSpec((1, th, wc), lambda i, j: (i, j, 0)),
        ],
        # fftshift along H is free index_map arithmetic on the output blocks
        out_specs=pl.BlockSpec((1, th, wc),
                               lambda i, j: (i, (j + shift_b) % hb, 0)),
        compiler_params=pltpu.CompilerParams(
            dimension_semantics=("parallel", "arbitrary")),
    )(re.reshape(n, h, wc), im.reshape(n, h, wc))
    return out.reshape(n, h, w, c)


def apply_attention(pre, att, x, x_group=None):
    """out = att*pre + x (+ x_group), lane-dense over the flattened W*C axis."""
    n, h, w, c = pre.shape
    wc = w * c
    att_t = jnp.tile(att, (1, w)).reshape(n, 1, wc)      # per-(w,c) broadcast
    th = _pick_row_tile(h, wc * 4) or h
    kern = _apply_att_kernel if x_group is None else _apply_att_res_kernel
    ops = [pre.reshape(n, h, wc), att_t, x.reshape(n, h, wc)]
    row_spec = pl.BlockSpec((1, th, wc), lambda i, j: (i, j, 0))
    in_specs = [row_spec,
                pl.BlockSpec((1, 1, wc), lambda i, j: (i, 0, 0)),
                row_spec]
    if x_group is not None:
        ops.append(x_group.reshape(n, h, wc))
        in_specs.append(row_spec)
    out = pl.pallas_call(
        kern,
        out_shape=jax.ShapeDtypeStruct((n, h, wc), jnp.float32),
        grid=(n, h // th),
        in_specs=in_specs,
        out_specs=row_spec,
        compiler_params=pltpu.CompilerParams(
            dimension_semantics=("parallel", "parallel")),
    )(*ops)
    return out.reshape(n, h, w, c)


# ----------------------------------------------------------------------------
# Module forward
# ----------------------------------------------------------------------------
def _prepare_block_params(p):
    """Fuse the per-branch conv weights into the matmul operands used by the
    Pallas kernels (bf16 MXU inputs; biases / attention MLP stay f32)."""
    nf = p["mul_w2"].shape[-1]
    hid = p["mul_w1"].shape[-1]
    cin = p["mul_w1"].shape[2]
    w1 = jnp.concatenate([p["mul_w1"], p["add_w1"]], axis=-1)    # (3,3,cin,2*hid)
    b1 = jnp.concatenate([p["mul_b1"], p["add_b1"]], axis=0)
    zero = jnp.zeros((3, 3, hid, nf), jnp.float32)
    w2 = jnp.concatenate(
        [jnp.concatenate([p["mul_w2"], zero], axis=-1),          # t ch [0, hid)
         jnp.concatenate([zero, p["add_w2"]], axis=-1)],         # t ch [hid, 2hid)
        axis=2)                                                  # (3,3,2hid,2nf)
    b2 = jnp.concatenate([p["mul_b2"], p["add_b2"]], axis=0)
    return dict(
        w1m=w1.reshape(9 * cin, 2 * hid).astype(jnp.bfloat16),
        b1v=b1,
        w2m=w2.reshape(9 * 2 * hid, 2 * nf).astype(jnp.bfloat16),
        b2v=b2,
        fca_wm=p["fca_w"].reshape(9 * nf, nf).astype(jnp.bfloat16),
        fca_b=p["fca_b"],
        att_w1t=p["att_w1"].T,                                   # (cr, nf)
        att_b1=p["att_b1"],
        att_w2=p["att_w2"],                                      # (cr, nf)
        att_b2=p["att_b2"],
    )


def sft_fcab_forward(x, para_maps, p, x_group=None):
    """One SFT_FCAB block.  x:(N,H,W,nf), para_maps:(N,H,W,para).  If x_group
    is given, the residual-group skip is folded into the final kernel."""
    cat = jnp.concatenate([x, para_maps], axis=-1)
    t = conv3x3_leaky_fused(cat, p["w1m"], p["b1v"])        # (N,H,W,2*hid)
    pre = conv3x3_sft(t, p["w2m"], p["b2v"], x)             # x*sig(mul)+add
    spec = fft_mag_pow_shift(pre, gamma=0.8)
    att = fca_attention(spec, p["fca_wm"], p["fca_b"], p["att_w1t"],
                        p["att_b1"], p["att_w2"], p["att_b2"])
    return apply_attention(pre, att, x, x_group)            # att*pre + x (+xg)


def residual_group_forward(x, ker_code, params):
    res = x
    last = len(params) - 1
    for i, raw in enumerate(params):
        p = _prepare_block_params(raw)
        res = sft_fcab_forward(res, ker_code, p,
                               x_group=x if i == last else None)
    return res


# ----------------------------------------------------------------------------
# Deterministic parameter init (shapes from the module __init__)
# ----------------------------------------------------------------------------
def init_block_params(key, nf, para, reduction=16):
    keys = jax.random.split(key, 14)
    w = lambda k, shape, s: jax.random.normal(k, shape, jnp.float32) * s
    cin = nf + para
    cr = nf // reduction
    return dict(
        mul_w1=w(keys[0], (3, 3, cin, 32), 0.05), mul_b1=w(keys[1], (32,), 0.01),
        mul_w2=w(keys[2], (3, 3, 32, nf), 0.05),  mul_b2=w(keys[3], (nf,), 0.01),
        add_w1=w(keys[4], (3, 3, cin, 32), 0.05), add_b1=w(keys[5], (32,), 0.01),
        add_w2=w(keys[6], (3, 3, 32, nf), 0.05),  add_b2=w(keys[7], (nf,), 0.01),
        fca_w=w(keys[8], (3, 3, nf, nf), 0.05),   fca_b=w(keys[9], (nf,), 0.01),
        att_w1=w(keys[10], (nf, cr), 0.1),        att_b1=w(keys[11], (cr,), 0.01),
        att_w2=w(keys[12], (cr, nf), 0.1),        att_b2=w(keys[13], (nf,), 0.01),
    )


# ----------------------------------------------------------------------------
# Pure-JAX reference (module semantics, f32) for validation
# ----------------------------------------------------------------------------
def _ref_conv3x3(x, w, b):
    y = jax.lax.conv_general_dilated(
        x, w, window_strides=(1, 1), padding="SAME",
        dimension_numbers=("NHWC", "HWIO", "NHWC"))
    return y + b.reshape(1, 1, 1, -1)


def _ref_block(x, para_maps, p):
    N, H, W, C = x.shape
    cat = jnp.concatenate([x, para_maps], axis=-1)
    m = _ref_conv3x3(cat, p["mul_w1"], p["mul_b1"])
    m = jnp.where(m >= 0, m, 0.2 * m)
    mul = jax.nn.sigmoid(_ref_conv3x3(m, p["mul_w2"], p["mul_b2"]))
    a = _ref_conv3x3(cat, p["add_w1"], p["add_b1"])
    a = jnp.where(a >= 0, a, 0.2 * a)
    add = _ref_conv3x3(a, p["add_w2"], p["add_b2"])
    pre = x * mul + add
    spec = jnp.fft.fftn(pre, axes=(1, 2))
    mag = (jnp.abs(spec) + 1e-8) ** 0.8
    mag = jnp.roll(mag, shift=(H // 2, W // 2), axis=(1, 2))
    y = jnp.maximum(_ref_conv3x3(mag, p["fca_w"], p["fca_b"]), 0.0)
    z = jnp.mean(y, axis=(1, 2))
    h = jnp.maximum(z @ p["att_w1"] + p["att_b1"], 0.0)
    att = jax.nn.sigmoid(h @ p["att_w2"] + p["att_b2"])
    return att[:, None, None, :] * pre + x


def _ref_group(x, ker_code, params):
    res = x
    for p in params:
        res = _ref_block(res, ker_code, p)
    return res + x


# ----------------------------------------------------------------------------
if __name__ == "__main__":
    key = jax.random.PRNGKey(0)
    N, H, W = 2, 48, 48
    nf, para, n_rcab = 32, 5, 2   # small ResidualGroup_SFT_FCAB(features, n_RCAB, para)

    k_x, k_k, k_p = jax.random.split(key, 3)
    x = jax.random.normal(k_x, (N, H, W, nf), jnp.float32) * 0.5
    ker_code = jax.random.normal(k_k, (N, H, W, para), jnp.float32) * 0.5
    params = [init_block_params(bk, nf, para) for bk in jax.random.split(k_p, n_rcab)]

    fwd = jax.jit(residual_group_forward)
    out = jax.block_until_ready(fwd(x, ker_code, params))

    ref = jax.block_until_ready(jax.jit(_ref_group)(x, ker_code, params))

    assert out.shape == (N, H, W, nf)
    assert bool(jnp.all(jnp.isfinite(out)))
    # tolerance accounts for bf16 MXU inputs (f32 accumulation) on the convs
    err = float(jnp.max(jnp.abs(out - ref)))
    assert bool(jnp.allclose(out, ref, rtol=5e-2, atol=5e-2)), err
    print("KERNEL_OK")
</pallas_src>

<mosaic_0001>
module attributes {stable_mosaic.version = 11 : i64} {
  func.func @_conv_leaky_kernel(%arg0: i32, %arg1: i32, %arg2: memref<1x256x333xbf16, #tpu.memory_space<vmem>>, %arg3: memref<333x64xbf16, #tpu.memory_space<vmem>>, %arg4: memref<1x64xf32, #tpu.memory_space<vmem>>, %arg5: memref<1x256x64xbf16, #tpu.memory_space<vmem>>) attributes {dimension_semantics = [#tpu.dimension_semantics<parallel>, #tpu.dimension_semantics<parallel>], iteration_bounds = array<i64: 2, 9>, scalar_prefetch = 0 : i64, scratch_operands = 0 : i64, tpu.core_type = #tpu.core_type<tc>, window_params = [{transform_indices = @transform_0, window_bounds = array<i64: 1, 256, 333>}, {pipeline_mode = #tpu.pipeline_mode<synchronous>, transform_indices = @transform_1, window_bounds = array<i64: 333, 64>}, {pipeline_mode = #tpu.pipeline_mode<synchronous>, transform_indices = @transform_2, window_bounds = array<i64: 1, 64>}, {transform_indices = @transform_3, window_bounds = array<i64: 1, 256, 64>}]} {
    %c0 = arith.constant 0 : index
    %c0_0 = arith.constant 0 : index
    %c0_1 = arith.constant 0 : index
    %0 = vector.load %arg2[%c0, %c0_0, %c0_1] : memref<1x256x333xbf16, #tpu.memory_space<vmem>>, vector<1x256x333xbf16>
    %1 = vector.shape_cast %0 : vector<1x256x333xbf16> to vector<256x333xbf16>
    %c0_2 = arith.constant 0 : index
    %c0_3 = arith.constant 0 : index
    %2 = vector.load %arg3[%c0_2, %c0_3] : memref<333x64xbf16, #tpu.memory_space<vmem>>, vector<333x64xbf16>
    %cst = arith.constant dense<0.000000e+00> : vector<256x64xf32>
    %3 = tpu.matmul %1, %2, %cst {dimension_numbers = #tpu.dot_dimension_numbers<[1], [0], [0], [1], [0, 0, 1, 1], [], []>} : vector<256x333xbf16>, vector<333x64xbf16>, vector<256x64xf32> -> vector<256x64xf32>
    %c0_4 = arith.constant 0 : index
    %c0_5 = arith.constant 0 : index
    %4 = vector.load %arg4[%c0_4, %c0_5] : memref<1x64xf32, #tpu.memory_space<vmem>>, vector<1x64xf32>
    %5 = vector.broadcast %4 : vector<1x64xf32> to vector<256x64xf32>
    %6 = arith.addf %3, %5 : vector<256x64xf32>
    %cst_6 = arith.constant 0.000000e+00 : f32
    %7 = vector.broadcast %cst_6 : f32 to vector<256x64xf32>
    %8 = arith.cmpf oge, %6, %7 : vector<256x64xf32>
    %cst_7 = arith.constant 2.000000e-01 : f32
    %9 = vector.broadcast %cst_7 : f32 to vector<256x64xf32>
    %10 = arith.mulf %9, %6 : vector<256x64xf32>
    %11 = arith.select %8, %6, %10 : vector<256x64xi1>, vector<256x64xf32>
    %12 = arith.truncf %11 : vector<256x64xf32> to vector<256x64xbf16>
    %c0_8 = arith.constant 0 : index
    %c0_9 = arith.constant 0 : index
    %c0_10 = arith.constant 0 : index
    %13 = vector.load %arg5[%c0_8, %c0_9, %c0_10] : memref<1x256x64xbf16, #tpu.memory_space<vmem>>, vector<1x256x64xbf16>
    %14 = vector.shape_cast %13 : vector<1x256x64xbf16> to vector<256x64xbf16>
    %15 = vector.shape_cast %12 : vector<256x64xbf16> to vector<1x256x64xbf16>
    tpu.vector_store %arg5[%c0_8, %c0_9, %c0_10], %15 {strides = array<i32>} : memref<1x256x64xbf16, #tpu.memory_space<vmem>>, vector<1x256x64xbf16>,
    return
  }
  func.func @transform_0(%arg0: i32, %arg1: i32) -> (i32, i32, i32) {
    %c0_i32 = arith.constant 0 : i32
    %c0_i32_0 = arith.constant 0 : i32
    return %arg0, %arg1, %c0_i32 : i32, i32, i32
  }
  func.func @transform_1(%arg0: i32, %arg1: i32) -> (i32, i32) {
    %c0_i32 = arith.constant 0 : i32
    %c0_i32_0 = arith.constant 0 : i32
    %c0_i32_1 = arith.constant 0 : i32
    return %c0_i32, %c0_i32_0 : i32, i32
  }
  func.func @transform_2(%arg0: i32, %arg1: i32) -> (i32, i32) {
    %c0_i32 = arith.constant 0 : i32
    %c0_i32_0 = arith.constant 0 : i32
    %c0_i32_1 = arith.constant 0 : i32
    return %c0_i32, %c0_i32_0 : i32, i32
  }
  func.func @transform_3(%arg0: i32, %arg1: i32) -> (i32, i32, i32) {
    %c0_i32 = arith.constant 0 : i32
    %c0_i32_0 = arith.constant 0 : i32
    return %arg0, %arg1, %c0_i32 : i32, i32, i32
  }
}

module attributes {stable_mosaic.version = 11 : i64} {
  func.func @_conv_sft_kernel(%arg0: i32, %arg1: i32, %arg2: memref<1x256x576xbf16, #tpu.memory_space<vmem>>, %arg3: memref<576x64xbf16, #tpu.memory_space<vmem>>, %arg4: memref<1x64xf32, #tpu.memory_space<vmem>>, %arg5: memref<1x256x32xf32, #tpu.memory_space<vmem>>, %arg6: memref<1x256x32xf32, #tpu.memory_space<vmem>>) attributes {dimension_semantics = [#tpu.dimension_semantics<parallel>, #tpu.dimension_semantics<parallel>], iteration_bounds = array<i64: 2, 9>, scalar_prefetch = 0 : i64, scratch_operands = 0 : i64, tpu.core_type = #tpu.core_type<tc>, window_params = [{transform_indices = @transform_0, window_bounds = array<i64: 1, 256, 576>}, {pipeline_mode = #tpu.pipeline_mode<synchronous>, transform_indices = @transform_1, window_bounds = array<i64: 576, 64>}, {pipeline_mode = #tpu.pipeline_mode<synchronous>, transform_indices = @transform_2, window_bounds = array<i64: 1, 64>}, {transform_indices = @transform_3, window_bounds = array<i64: 1, 256, 32>}, {transform_indices = @transform_4, window_bounds = array<i64: 1, 256, 32>}]} {
    %c0 = arith.constant 0 : index
    %c0_0 = arith.constant 0 : index
    %c0_1 = arith.constant 0 : index
    %0 = vector.load %arg2[%c0, %c0_0, %c0_1] : memref<1x256x576xbf16, #tpu.memory_space<vmem>>, vector<1x256x576xbf16>
    %1 = vector.shape_cast %0 : vector<1x256x576xbf16> to vector<256x576xbf16>
    %c0_2 = arith.constant 0 : index
    %c0_3 = arith.constant 0 : index
    %2 = vector.load %arg3[%c0_2, %c0_3] : memref<576x64xbf16, #tpu.memory_space<vmem>>, vector<576x64xbf16>
    %cst = arith.constant dense<0.000000e+00> : vector<256x64xf32>
    %3 = tpu.matmul %1, %2, %cst {dimension_numbers = #tpu.dot_dimension_numbers<[1], [0], [0], [1], [0, 0, 1, 1], [], []>} : vector<256x576xbf16>, vector<576x64xbf16>, vector<256x64xf32> -> vector<256x64xf32>
    %c0_4 = arith.constant 0 : index
    %c0_5 = arith.constant 0 : index
    %4 = vector.load %arg4[%c0_4, %c0_5] : memref<1x64xf32, #tpu.memory_space<vmem>>, vector<1x64xf32>
    %5 = vector.broadcast %4 : vector<1x64xf32> to vector<256x64xf32>
    %6 = arith.addf %3, %5 : vector<256x64xf32>
    %7 = vector.extract_strided_slice %6 {offsets = [0, 0], sizes = [256, 32], strides = [1, 1]} : vector<256x64xf32> to vector<256x32xf32>
    %8 = arith.negf %7 : vector<256x32xf32>
    %9 = math.exp %8 : vector<256x32xf32>
    %cst_6 = arith.constant 1.000000e+00 : f32
    %10 = vector.broadcast %cst_6 : f32 to vector<256x32xf32>
    %11 = arith.addf %10, %9 : vector<256x32xf32>
    %12 = arith.divf %10, %11 : vector<256x32xf32>
    %13 = vector.extract_strided_slice %6 {offsets = [0, 32], sizes = [256, 32], strides = [1, 1]} : vector<256x64xf32> to vector<256x32xf32>
    %c0_7 = arith.constant 0 : index
    %c0_8 = arith.constant 0 : index
    %c0_9 = arith.constant 0 : index
    %14 = vector.load %arg5[%c0_7, %c0_8, %c0_9] : memref<1x256x32xf32, #tpu.memory_space<vmem>>, vector<1x256x32xf32>
    %15 = vector.shape_cast %14 : vector<1x256x32xf32> to vector<256x32xf32>
    %16 = arith.mulf %15, %12 : vector<256x32xf32>
    %17 = arith.addf %16, %13 : vector<256x32xf32>
    %c0_10 = arith.constant 0 : index
    %c0_11 = arith.constant 0 : index
    %c0_12 = arith.constant 0 : index
    %18 = vector.load %arg6[%c0_10, %c0_11, %c0_12] : memref<1x256x32xf32, #tpu.memory_space<vmem>>, vector<1x256x32xf32>
    %19 = vector.shape_cast %18 : vector<1x256x32xf32> to vector<256x32xf32>
    %20 = vector.shape_cast %17 : vector<256x32xf32> to vector<1x256x32xf32>
    tpu.vector_store %arg6[%c0_10, %c0_11, %c0_12], %20 {strides = array<i32>} : memref<1x256x32xf32, #tpu.memory_space<vmem>>, vector<1x256x32xf32>,
    return
  }
  func.func @transform_0(%arg0: i32, %arg1: i32) -> (i32, i32, i32) {
    %c0_i32 = arith.constant 0 : i32
    %c0_i32_0 = arith.constant 0 : i32
    return %arg0, %arg1, %c0_i32 : i32, i32, i32
  }
  func.func @transform_1(%arg0: i32, %arg1: i32) -> (i32, i32) {
    %c0_i32 = arith.constant 0 : i32
    %c0_i32_0 = arith.constant 0 : i32
    %c0_i32_1 = arith.constant 0 : i32
    return %c0_i32, %c0_i32_0 : i32, i32
  }
  func.func @transform_2(%arg0: i32, %arg1: i32) -> (i32, i32) {
    %c0_i32 = arith.constant 0 : i32
    %c0_i32_0 = arith.constant 0 : i32
    %c0_i32_1 = arith.constant 0 : i32
    return %c0_i32, %c0_i32_0 : i32, i32
  }
  func.func @transform_3(%arg0: i32, %arg1: i32) -> (i32, i32, i32) {
    %c0_i32 = arith.constant 0 : i32
    %c0_i32_0 = arith.constant 0 : i32
    return %arg0, %arg1, %c0_i32 : i32, i32, i32
  }
  func.func @transform_4(%arg0: i32, %arg1: i32) -> (i32, i32, i32) {
    %c0_i32 = arith.constant 0 : i32
    %c0_i32_0 = arith.constant 0 : i32
    return %arg0, %arg1, %c0_i32 : i32, i32, i32
  }
}

module attributes {stable_mosaic.version = 11 : i64} {
  func.func @_specpow_shift_kernel(%arg0: i32, %arg1: i32, %arg2: memref<1x8x1536xf32, #tpu.memory_space<vmem>>, %arg3: memref<1x8x1536xf32, #tpu.memory_space<vmem>>, %arg4: memref<1x8x1536xf32, #tpu.memory_space<vmem>>) attributes {dimension_semantics = [#tpu.dimension_semantics<parallel>, #tpu.dimension_semantics<arbitrary>], iteration_bounds = array<i64: 2, 6>, scalar_prefetch = 0 : i64, scratch_operands = 0 : i64, tpu.core_type = #tpu.core_type<tc>, window_params = [{transform_indices = @transform_0, window_bounds = array<i64: 1, 8, 1536>}, {transform_indices = @transform_1, window_bounds = array<i64: 1, 8, 1536>}, {transform_indices = @transform_2, window_bounds = array<i64: 1, 8, 1536>}]} {
    %c0 = arith.constant 0 : index
    %c0_0 = arith.constant 0 : index
    %c0_1 = arith.constant 0 : index
    %0 = vector.load %arg2[%c0, %c0_0, %c0_1] : memref<1x8x1536xf32, #tpu.memory_space<vmem>>, vector<1x8x1536xf32>
    %1 = vector.shape_cast %0 : vector<1x8x1536xf32> to vector<8x1536xf32>
    %c0_2 = arith.constant 0 : index
    %c0_3 = arith.constant 0 : index
    %c0_4 = arith.constant 0 : index
    %2 = vector.load %arg2[%c0_2, %c0_3, %c0_4] : memref<1x8x1536xf32, #tpu.memory_space<vmem>>, vector<1x8x1536xf32>
    %3 = vector.shape_cast %2 : vector<1x8x1536xf32> to vector<8x1536xf32>
    %4 = arith.mulf %1, %3 : vector<8x1536xf32>
    %c0_5 = arith.constant 0 : index
    %c0_6 = arith.constant 0 : index
    %c0_7 = arith.constant 0 : index
    %5 = vector.load %arg3[%c0_5, %c0_6, %c0_7] : memref<1x8x1536xf32, #tpu.memory_space<vmem>>, vector<1x8x1536xf32>
    %6 = vector.shape_cast %5 : vector<1x8x1536xf32> to vector<8x1536xf32>
    %c0_8 = arith.constant 0 : index
    %c0_9 = arith.constant 0 : index
    %c0_10 = arith.constant 0 : index
    %7 = vector.load %arg3[%c0_8, %c0_9, %c0_10] : memref<1x8x1536xf32, #tpu.memory_space<vmem>>, vector<1x8x1536xf32>
    %8 = vector.shape_cast %7 : vector<1x8x1536xf32> to vector<8x1536xf32>
    %9 = arith.mulf %6, %8 : vector<8x1536xf32>
    %10 = arith.addf %4, %9 : vector<8x1536xf32>
    %cst = arith.constant 1.000000e-16 : f32
    %11 = vector.broadcast %cst : f32 to vector<8x1536xf32>
    %12 = arith.addf %10, %11 : vector<8x1536xf32>
    %13 = math.log %12 : vector<8x1536xf32>
    %cst_11 = arith.constant 4.000000e-01 : f32
    %14 = vector.broadcast %cst_11 : f32 to vector<8x1536xf32>
    %15 = arith.mulf %14, %13 : vector<8x1536xf32>
    %16 = math.exp %15 : vector<8x1536xf32>
    %c768_i32 = arith.constant 768 : i32
    %17 = tpu.dynamic_rotate %16 by %c768_i32 dim 1 : vector<8x1536xf32>, i32 -> vector<8x1536xf32>
    %c0_12 = arith.constant 0 : index
    %c0_13 = arith.constant 0 : index
    %c0_14 = arith.constant 0 : index
    %18 = vector.load %arg4[%c0_12, %c0_13, %c0_14] : memref<1x8x1536xf32, #tpu.memory_space<vmem>>, vector<1x8x1536xf32>
    %19 = vector.shape_cast %18 : vector<1x8x1536xf32> to vector<8x1536xf32>
    %20 = vector.shape_cast %17 : vector<8x1536xf32> to vector<1x8x1536xf32>
    tpu.vector_store %arg4[%c0_12, %c0_13, %c0_14], %20 {strides = array<i32>} : memref<1x8x1536xf32, #tpu.memory_space<vmem>>, vector<1x8x1536xf32>,
    return
  }
  func.func @transform_0(%arg0: i32, %arg1: i32) -> (i32, i32, i32) {
    %c0_i32 = arith.constant 0 : i32
    %c0_i32_0 = arith.constant 0 : i32
    return %arg0, %arg1, %c0_i32 : i32, i32, i32
  }
  func.func @transform_1(%arg0: i32, %arg1: i32) -> (i32, i32, i32) {
    %c0_i32 = arith.constant 0 : i32
    %c0_i32_0 = arith.constant 0 : i32
    return %arg0, %arg1, %c0_i32 : i32, i32, i32
  }
  func.func @transform_2(%arg0: i32, %arg1: i32) -> (i32, i32, i32) {
    %c3_i32 = arith.constant 3 : i32
    %0 = arith.addi %arg1, %c3_i32 : i32
    %c6_i32 = arith.constant 6 : i32
    %c0_i32 = arith.constant 0 : i32
    %1 = arith.cmpi eq, %c6_i32, %c0_i32 : i32
    %c1_i32 = arith.constant 1 : i32
    %2 = arith.select %1, %c1_i32, %c6_i32 : i32
    %3 = arith.remsi %0, %2 : i32
    %c0_i32_0 = arith.constant 0 : i32
    %4 = arith.cmpi ne, %3, %c0_i32_0 : i32
    %c0_i32_1 = arith.constant 0 : i32
    %5 = arith.cmpi slt, %3, %c0_i32_1 : i32
    %c0_i32_2 = arith.constant 0 : i32
    %6 = arith.cmpi slt, %2, %c0_i32_2 : i32
    %7 = arith.xori %5, %6 : i1
    %8 = arith.andi %7, %4 : i1
    %9 = arith.addi %3, %2 : i32
    %10 = arith.select %8, %9, %3 : i32
    %c0_i32_3 = arith.constant 0 : i32
    %c0_i32_4 = arith.constant 0 : i32
    return %arg0, %10, %c0_i32_3 : i32, i32, i32
  }
}

module attributes {stable_mosaic.version = 11 : i64} {
  func.func @_fca_kernel(%arg0: i32, %arg1: i32, %arg2: memref<1x256x288xbf16, #tpu.memory_space<vmem>>, %arg3: memref<288x32xbf16, #tpu.memory_space<vmem>>, %arg4: memref<1x32xf32, #tpu.memory_space<vmem>>, %arg5: memref<2x32xf32, #tpu.memory_space<vmem>>, %arg6: memref<2x1xf32, #tpu.memory_space<vmem>>, %arg7: memref<2x32xf32, #tpu.memory_space<vmem>>, %arg8: memref<1x32xf32, #tpu.memory_space<vmem>>, %arg9: memref<1x1x32xf32, #tpu.memory_space<vmem>>, %arg10: memref<1x32xf32, #tpu.memory_space<vmem>>) attributes {dimension_semantics = [#tpu.dimension_semantics<parallel>, #tpu.dimension_semantics<arbitrary>], iteration_bounds = array<i64: 2, 9>, scalar_prefetch = 0 : i64, scratch_operands = 1 : i64, tpu.core_type = #tpu.core_type<tc>, window_params = [{transform_indices = @transform_0, window_bounds = array<i64: 1, 256, 288>}, {pipeline_mode = #tpu.pipeline_mode<synchronous>, transform_indices = @transform_1, window_bounds = array<i64: 288, 32>}, {pipeline_mode = #tpu.pipeline_mode<synchronous>, transform_indices = @transform_2, window_bounds = array<i64: 1, 32>}, {pipeline_mode = #tpu.pipeline_mode<synchronous>, transform_indices = @transform_3, window_bounds = array<i64: 2, 32>}, {pipeline_mode = #tpu.pipeline_mode<synchronous>, transform_indices = @transform_4, window_bounds = array<i64: 2, 1>}, {pipeline_mode = #tpu.pipeline_mode<synchronous>, transform_indices = @transform_5, window_bounds = array<i64: 2, 32>}, {pipeline_mode = #tpu.pipeline_mode<synchronous>, transform_indices = @transform_6, window_bounds = array<i64: 1, 32>}, {transform_indices = @transform_7, window_bounds = array<i64: 1, 1, 32>}]} {
    %c0 = arith.constant 0 : index
    %c0_0 = arith.constant 0 : index
    %c0_1 = arith.constant 0 : index
    %0 = vector.load %arg2[%c0, %c0_0, %c0_1] : memref<1x256x288xbf16, #tpu.memory_space<vmem>>, vector<1x256x288xbf16>
    %1 = vector.shape_cast %0 : vector<1x256x288xbf16> to vector<256x288xbf16>
    %c0_2 = arith.constant 0 : index
    %c0_3 = arith.constant 0 : index
    %2 = vector.load %arg3[%c0_2, %c0_3] : memref<288x32xbf16, #tpu.memory_space<vmem>>, vector<288x32xbf16>
    %cst = arith.constant dense<0.000000e+00> : vector<256x32xf32>
    %3 = tpu.matmul %1, %2, %cst {dimension_numbers = #tpu.dot_dimension_numbers<[1], [0], [0], [1], [0, 0, 1, 1], [], []>} : vector<256x288xbf16>, vector<288x32xbf16>, vector<256x32xf32> -> vector<256x32xf32>
    %c0_4 = arith.constant 0 : index
    %c0_5 = arith.constant 0 : index
    %4 = vector.load %arg4[%c0_4, %c0_5] : memref<1x32xf32, #tpu.memory_space<vmem>>, vector<1x32xf32>
    %5 = vector.broadcast %4 : vector<1x32xf32> to vector<256x32xf32>
    %6 = arith.addf %3, %5 : vector<256x32xf32>
    %cst_6 = arith.constant 0.000000e+00 : f32
    %7 = vector.broadcast %cst_6 : f32 to vector<256x32xf32>
    %8 = arith.maximumf %6, %7 : vector<256x32xf32>
    %cst_7 = arith.constant dense<0.000000e+00> : vector<32xf32>
    %9 = vector.multi_reduction <add>, %8, %cst_7 [0] : vector<256x32xf32> to vector<32xf32>
    %10 = vector.shape_cast %9 : vector<32xf32> to vector<1x32xf32>
    %c0_i32 = arith.constant 0 : i32
    %11 = arith.cmpi eq, %arg1, %c0_i32 : i32
    %12 = arith.extui %11 : i1 to i32
    %c0_i32_8 = arith.constant 0 : i32
    %13 = arith.cmpi ne, %12, %c0_i32_8 : i32
    scf.if %13 {
      %c0_12 = arith.constant 0 : index
      %c0_13 = arith.constant 0 : index
      %20 = vector.load %arg10[%c0_12, %c0_13] : memref<1x32xf32, #tpu.memory_space<vmem>>, vector<1x32xf32>
      tpu.vector_store %arg10[%c0_12, %c0_13], %10 {strides = array<i32>} : memref<1x32xf32, #tpu.memory_space<vmem>>, vector<1x32xf32>,
    } else {
    }
    %c0_i32_9 = arith.constant 0 : i32
    %14 = arith.cmpi sgt, %arg1, %c0_i32_9 : i32
    %15 = arith.extui %14 : i1 to i32
    %c0_i32_10 = arith.constant 0 : i32
    %16 = arith.cmpi ne, %15, %c0_i32_10 : i32
    scf.if %16 {
      %c0_12 = arith.constant 0 : index
      %c0_13 = arith.constant 0 : index
      %20 = vector.load %arg10[%c0_12, %c0_13] : memref<1x32xf32, #tpu.memory_space<vmem>>, vector<1x32xf32>
      %21 = arith.addf %20, %10 : vector<1x32xf32>
      %c0_14 = arith.constant 0 : index
      %c0_15 = arith.constant 0 : index
      %22 = vector.load %arg10[%c0_14, %c0_15] : memref<1x32xf32, #tpu.memory_space<vmem>>, vector<1x32xf32>
      tpu.vector_store %arg10[%c0_14, %c0_15], %21 {strides = array<i32>} : memref<1x32xf32, #tpu.memory_space<vmem>>, vector<1x32xf32>,
    } else {
    }
    %c8_i32 = arith.constant 8 : i32
    %17 = arith.cmpi eq, %arg1, %c8_i32 : i32
    %18 = arith.extui %17 : i1 to i32
    %c0_i32_11 = arith.constant 0 : i32
    %19 = arith.cmpi ne, %18, %c0_i32_11 : i32
    scf.if %19 {
      %c0_12 = arith.constant 0 : index
      %c0_13 = arith.constant 0 : index
      %20 = vector.load %arg10[%c0_12, %c0_13] : memref<1x32xf32, #tpu.memory_space<vmem>>, vector<1x32xf32>
      %cst_14 = arith.constant 4.34027781E-4 : f32
      %21 = vector.broadcast %cst_14 : f32 to vector<1x32xf32>
      %22 = arith.mulf %20, %21 : vector<1x32xf32>
      %c0_15 = arith.constant 0 : index
      %c0_16 = arith.constant 0 : index
      %23 = vector.load %arg5[%c0_15, %c0_16] : memref<2x32xf32, #tpu.memory_space<vmem>>, vector<2x32xf32>
      %24 = vector.broadcast %22 : vector<1x32xf32> to vector<2x32xf32>
      %25 = arith.mulf %24, %23 : vector<2x32xf32>
      %cst_17 = arith.constant dense<0.000000e+00> : vector<2xf32>
      %26 = vector.multi_reduction <add>, %25, %cst_17 [1] : vector<2x32xf32> to vector<2xf32>
      %27 = vector.shape_cast %26 : vector<2xf32> to vector<2x1xf32>
      %c0_18 = arith.constant 0 : index
      %c0_19 = arith.constant 0 : index
      %28 = vector.load %arg6[%c0_18, %c0_19] : memref<2x1xf32, #tpu.memory_space<vmem>>, vector<2x1xf32>
      %29 = arith.addf %27, %28 : vector<2x1xf32>
      %cst_20 = arith.constant 0.000000e+00 : f32
      %30 = vector.broadcast %cst_20 : f32 to vector<2x1xf32>
      %31 = arith.maximumf %29, %30 : vector<2x1xf32>
      %c0_21 = arith.constant 0 : index
      %c0_22 = arith.constant 0 : index
      %32 = vector.load %arg7[%c0_21, %c0_22] : memref<2x32xf32, #tpu.memory_space<vmem>>, vector<2x32xf32>
      %33 = vector.broadcast %31 : vector<2x1xf32> to vector<2x32xf32>
      %34 = arith.mulf %33, %32 : vector<2x32xf32>
      %cst_23 = arith.constant dense<0.000000e+00> : vector<32xf32>
      %35 = vector.multi_reduction <add>, %34, %cst_23 [0] : vector<2x32xf32> to vector<32xf32>
      %36 = vector.shape_cast %35 : vector<32xf32> to vector<1x32xf32>
      %c0_24 = arith.constant 0 : index
      %c0_25 = arith.constant 0 : index
      %37 = vector.load %arg8[%c0_24, %c0_25] : memref<1x32xf32, #tpu.memory_space<vmem>>, vector<1x32xf32>
      %38 = arith.addf %36, %37 : vector<1x32xf32>
      %39 = arith.negf %38 : vector<1x32xf32>
      %40 = math.exp %39 : vector<1x32xf32>
      %cst_26 = arith.constant 1.000000e+00 : f32
      %41 = vector.broadcast %cst_26 : f32 to vector<1x32xf32>
      %42 = arith.addf %41, %40 : vector<1x32xf32>
      %43 = arith.divf %41, %42 : vector<1x32xf32>
      %c0_27 = arith.constant 0 : index
      %c0_28 = arith.constant 0 : index
      %c0_29 = arith.constant 0 : index
      %44 = vector.load %arg9[%c0_27, %c0_28, %c0_29] : memref<1x1x32xf32, #tpu.memory_space<vmem>>, vector<1x1x32xf32>
      %45 = vector.shape_cast %44 : vector<1x1x32xf32> to vector<1x32xf32>
      %46 = vector.shape_cast %43 : vector<1x32xf32> to vector<1x1x32xf32>
      tpu.vector_store %arg9[%c0_27, %c0_28, %c0_29], %46 {strides = array<i32>} : memref<1x1x32xf32, #tpu.memory_space<vmem>>, vector<1x1x32xf32>,
    } else {
    }
    return
  }
  func.func @transform_0(%arg0: i32, %arg1: i32) -> (i32, i32, i32) {
    %c0_i32 = arith.constant 0 : i32
    %c0_i32_0 = arith.constant 0 : i32
    return %arg0, %arg1, %c0_i32 : i32, i32, i32
  }
  func.func @transform_1(%arg0: i32, %arg1: i32) -> (i32, i32) {
    %c0_i32 = arith.constant 0 : i32
    %c0_i32_0 = arith.constant 0 : i32
    %c0_i32_1 = arith.constant 0 : i32
    return %c0_i32, %c0_i32_0 : i32, i32
  }
  func.func @transform_2(%arg0: i32, %arg1: i32) -> (i32, i32) {
    %c0_i32 = arith.constant 0 : i32
    %c0_i32_0 = arith.constant 0 : i32
    %c0_i32_1 = arith.constant 0 : i32
    return %c0_i32, %c0_i32_0 : i32, i32
  }
  func.func @transform_3(%arg0: i32, %arg1: i32) -> (i32, i32) {
    %c0_i32 = arith.constant 0 : i32
    %c0_i32_0 = arith.constant 0 : i32
    %c0_i32_1 = arith.constant 0 : i32
    return %c0_i32, %c0_i32_0 : i32, i32
  }
  func.func @transform_4(%arg0: i32, %arg1: i32) -> (i32, i32) {
    %c0_i32 = arith.constant 0 : i32
    %c0_i32_0 = arith.constant 0 : i32
    %c0_i32_1 = arith.constant 0 : i32
    return %c0_i32, %c0_i32_0 : i32, i32
  }
  func.func @transform_5(%arg0: i32, %arg1: i32) -> (i32, i32) {
    %c0_i32 = arith.constant 0 : i32
    %c0_i32_0 = arith.constant 0 : i32
    %c0_i32_1 = arith.constant 0 : i32
    return %c0_i32, %c0_i32_0 : i32, i32
  }
  func.func @transform_6(%arg0: i32, %arg1: i32) -> (i32, i32) {
    %c0_i32 = arith.constant 0 : i32
    %c0_i32_0 = arith.constant 0 : i32
    %c0_i32_1 = arith.constant 0 : i32
    return %c0_i32, %c0_i32_0 : i32, i32
  }
  func.func @transform_7(%arg0: i32, %arg1: i32) -> (i32, i32, i32) {
    %c0_i32 = arith.constant 0 : i32
    %c0_i32_0 = arith.constant 0 : i32
    %c0_i32_1 = arith.constant 0 : i32
    return %arg0, %c0_i32, %c0_i32_0 : i32, i32, i32
  }
}

module attributes {stable_mosaic.version = 11 : i64} {
  func.func @_apply_att_kernel(%arg0: i32, %arg1: i32, %arg2: memref<1x16x1536xf32, #tpu.memory_space<vmem>>, %arg3: memref<1x1x1536xf32, #tpu.memory_space<vmem>>, %arg4: memref<1x16x1536xf32, #tpu.memory_space<vmem>>, %arg5: memref<1x16x1536xf32, #tpu.memory_space<vmem>>) attributes {dimension_semantics = [#tpu.dimension_semantics<parallel>, #tpu.dimension_semantics<parallel>], iteration_bounds = array<i64: 2, 3>, scalar_prefetch = 0 : i64, scratch_operands = 0 : i64, tpu.core_type = #tpu.core_type<tc>, window_params = [{transform_indices = @transform_0, window_bounds = array<i64: 1, 16, 1536>}, {transform_indices = @transform_1, window_bounds = array<i64: 1, 1, 1536>}, {transform_indices = @transform_2, window_bounds = array<i64: 1, 16, 1536>}, {transform_indices = @transform_3, window_bounds = array<i64: 1, 16, 1536>}]} {
    %c0 = arith.constant 0 : index
    %c0_0 = arith.constant 0 : index
    %c0_1 = arith.constant 0 : index
    %0 = vector.load %arg2[%c0, %c0_0, %c0_1] : memref<1x16x1536xf32, #tpu.memory_space<vmem>>, vector<1x16x1536xf32>
    %1 = vector.shape_cast %0 : vector<1x16x1536xf32> to vector<16x1536xf32>
    %c0_2 = arith.constant 0 : index
    %c0_3 = arith.constant 0 : index
    %c0_4 = arith.constant 0 : index
    %2 = vector.load %arg3[%c0_2, %c0_3, %c0_4] : memref<1x1x1536xf32, #tpu.memory_space<vmem>>, vector<1x1x1536xf32>
    %3 = vector.shape_cast %2 : vector<1x1x1536xf32> to vector<1x1536xf32>
    %4 = vector.broadcast %3 : vector<1x1536xf32> to vector<16x1536xf32>
    %5 = arith.mulf %1, %4 : vector<16x1536xf32>
    %c0_5 = arith.constant 0 : index
    %c0_6 = arith.constant 0 : index
    %c0_7 = arith.constant 0 : index
    %6 = vector.load %arg4[%c0_5, %c0_6, %c0_7] : memref<1x16x1536xf32, #tpu.memory_space<vmem>>, vector<1x16x1536xf32>
    %7 = vector.shape_cast %6 : vector<1x16x1536xf32> to vector<16x1536xf32>
    %8 = arith.addf %5, %7 : vector<16x1536xf32>
    %c0_8 = arith.constant 0 : index
    %c0_9 = arith.constant 0 : index
    %c0_10 = arith.constant 0 : index
    %9 = vector.load %arg5[%c0_8, %c0_9, %c0_10] : memref<1x16x1536xf32, #tpu.memory_space<vmem>>, vector<1x16x1536xf32>
    %10 = vector.shape_cast %9 : vector<1x16x1536xf32> to vector<16x1536xf32>
    %11 = vector.shape_cast %8 : vector<16x1536xf32> to vector<1x16x1536xf32>
    tpu.vector_store %arg5[%c0_8, %c0_9, %c0_10], %11 {strides = array<i32>} : memref<1x16x1536xf32, #tpu.memory_space<vmem>>, vector<1x16x1536xf32>,
    return
  }
  func.func @transform_0(%arg0: i32, %arg1: i32) -> (i32, i32, i32) {
    %c0_i32 = arith.constant 0 : i32
    %c0_i32_0 = arith.constant 0 : i32
    return %arg0, %arg1, %c0_i32 : i32, i32, i32
  }
  func.func @transform_1(%arg0: i32, %arg1: i32) -> (i32, i32, i32) {
    %c0_i32 = arith.constant 0 : i32
    %c0_i32_0 = arith.constant 0 : i32
    %c0_i32_1 = arith.constant 0 : i32
    return %arg0, %c0_i32, %c0_i32_0 : i32, i32, i32
  }
  func.func @transform_2(%arg0: i32, %arg1: i32) -> (i32, i32, i32) {
    %c0_i32 = arith.constant 0 : i32
    %c0_i32_0 = arith.constant 0 : i32
    return %arg0, %arg1, %c0_i32 : i32, i32, i32
  }
  func.func @transform_3(%arg0: i32, %arg1: i32) -> (i32, i32, i32) {
    %c0_i32 = arith.constant 0 : i32
    %c0_i32_0 = arith.constant 0 : i32
    return %arg0, %arg1, %c0_i32 : i32, i32, i32
  }
}

module attributes {stable_mosaic.version = 11 : i64} {
  func.func @_apply_att_res_kernel(%arg0: i32, %arg1: i32, %arg2: memref<1x16x1536xf32, #tpu.memory_space<vmem>>, %arg3: memref<1x1x1536xf32, #tpu.memory_space<vmem>>, %arg4: memref<1x16x1536xf32, #tpu.memory_space<vmem>>, %arg5: memref<1x16x1536xf32, #tpu.memory_space<vmem>>, %arg6: memref<1x16x1536xf32, #tpu.memory_space<vmem>>) attributes {dimension_semantics = [#tpu.dimension_semantics<parallel>, #tpu.dimension_semantics<parallel>], iteration_bounds = array<i64: 2, 3>, scalar_prefetch = 0 : i64, scratch_operands = 0 : i64, tpu.core_type = #tpu.core_type<tc>, window_params = [{transform_indices = @transform_0, window_bounds = array<i64: 1, 16, 1536>}, {transform_indices = @transform_1, window_bounds = array<i64: 1, 1, 1536>}, {transform_indices = @transform_2, window_bounds = array<i64: 1, 16, 1536>}, {transform_indices = @transform_3, window_bounds = array<i64: 1, 16, 1536>}, {transform_indices = @transform_4, window_bounds = array<i64: 1, 16, 1536>}]} {
    %c0 = arith.constant 0 : index
    %c0_0 = arith.constant 0 : index
    %c0_1 = arith.constant 0 : index
    %0 = vector.load %arg2[%c0, %c0_0, %c0_1] : memref<1x16x1536xf32, #tpu.memory_space<vmem>>, vector<1x16x1536xf32>
    %1 = vector.shape_cast %0 : vector<1x16x1536xf32> to vector<16x1536xf32>
    %c0_2 = arith.constant 0 : index
    %c0_3 = arith.constant 0 : index
    %c0_4 = arith.constant 0 : index
    %2 = vector.load %arg3[%c0_2, %c0_3, %c0_4] : memref<1x1x1536xf32, #tpu.memory_space<vmem>>, vector<1x1x1536xf32>
    %3 = vector.shape_cast %2 : vector<1x1x1536xf32> to vector<1x1536xf32>
    %4 = vector.broadcast %3 : vector<1x1536xf32> to vector<16x1536xf32>
    %5 = arith.mulf %1, %4 : vector<16x1536xf32>
    %c0_5 = arith.constant 0 : index
    %c0_6 = arith.constant 0 : index
    %c0_7 = arith.constant 0 : index
    %6 = vector.load %arg4[%c0_5, %c0_6, %c0_7] : memref<1x16x1536xf32, #tpu.memory_space<vmem>>, vector<1x16x1536xf32>
    %7 = vector.shape_cast %6 : vector<1x16x1536xf32> to vector<16x1536xf32>
    %8 = arith.addf %5, %7 : vector<16x1536xf32>
    %c0_8 = arith.constant 0 : index
    %c0_9 = arith.constant 0 : index
    %c0_10 = arith.constant 0 : index
    %9 = vector.load %arg5[%c0_8, %c0_9, %c0_10] : memref<1x16x1536xf32, #tpu.memory_space<vmem>>, vector<1x16x1536xf32>
    %10 = vector.shape_cast %9 : vector<1x16x1536xf32> to vector<16x1536xf32>
    %11 = arith.addf %8, %10 : vector<16x1536xf32>
    %c0_11 = arith.constant 0 : index
    %c0_12 = arith.constant 0 : index
    %c0_13 = arith.constant 0 : index
    %12 = vector.load %arg6[%c0_11, %c0_12, %c0_13] : memref<1x16x1536xf32, #tpu.memory_space<vmem>>, vector<1x16x1536xf32>
    %13 = vector.shape_cast %12 : vector<1x16x1536xf32> to vector<16x1536xf32>
    %14 = vector.shape_cast %11 : vector<16x1536xf32> to vector<1x16x1536xf32>
    tpu.vector_store %arg6[%c0_11, %c0_12, %c0_13], %14 {strides = array<i32>} : memref<1x16x1536xf32, #tpu.memory_space<vmem>>, vector<1x16x1536xf32>,
    return
  }
  func.func @transform_0(%arg0: i32, %arg1: i32) -> (i32, i32, i32) {
    %c0_i32 = arith.constant 0 : i32
    %c0_i32_0 = arith.constant 0 : i32
    return %arg0, %arg1, %c0_i32 : i32, i32, i32
  }
  func.func @transform_1(%arg0: i32, %arg1: i32) -> (i32, i32, i32) {
    %c0_i32 = arith.constant 0 : i32
    %c0_i32_0 = arith.constant 0 : i32
    %c0_i32_1 = arith.constant 0 : i32
    return %arg0, %c0_i32, %c0_i32_0 : i32, i32, i32
  }
  func.func @transform_2(%arg0: i32, %arg1: i32) -> (i32, i32, i32) {
    %c0_i32 = arith.constant 0 : i32
    %c0_i32_0 = arith.constant 0 : i32
    return %arg0, %arg1, %c0_i32 : i32, i32, i32
  }
  func.func @transform_3(%arg0: i32, %arg1: i32) -> (i32, i32, i32) {
    %c0_i32 = arith.constant 0 : i32
    %c0_i32_0 = arith.constant 0 : i32
    return %arg0, %arg1, %c0_i32 : i32, i32, i32
  }
  func.func @transform_4(%arg0: i32, %arg1: i32) -> (i32, i32, i32) {
    %c0_i32 = arith.constant 0 : i32
    %c0_i32_0 = arith.constant 0 : i32
    return %arg0, %arg1, %c0_i32 : i32, i32, i32
  }
}

</mosaic_0001>

<bundles_post_ra>
// kernel: residual_group_forward.10
= control target key start
LH: loop header
LB: loop body
LE: loop exit
PB: predicated region body
PF: predicated region fallthrough
CT: control target
= control target key end

     0   :  { %s1765_s12 = smov 0   ;;  %s1767_s13 = smov 0   ;;  %s2197_s0 = inlined_call_operand.vmem [shape: bf16[2,2304,333], index: 0, kind: input, shape index: {}]   ;;  %s2198_s1 = inlined_call_operand.vmem [shape: bf16[333,64], index: 1, kind: input, shape index: {}]   ;;  %s2199_s2 = inlined_call_operand.vmem [shape: f32[1,64], index: 2, kind: input, shape index: {}]   ;;  %s2200_s3 = inlined_call_operand.vmem [shape: bf16[2,2304,64], index: 3, kind: output, shape index: {}]  }
   0x1   :  { %s1769_s14 = smov 0   ;;  %s1771_s15 = smov 0  }
   0x2   :  { %s1773_s16 = smov 0  }
   0x3 LB: > { %s22_s17 = sadd.s32 1, %s1734_s14  ;;  %s25_s18 = sadd.s32 1, %s1738_s15  ;;  %s1742_s16 = sphi %s1773_s16, %s13_s16   ;;  %s1738_s15 = sphi %s1771_s15, %s2204_s15   ;;  %s1734_s14 = sphi %s1769_s14, %s2203_s14   ;;  %s1730_s13 = sphi %s1767_s13, %s2202_s13   ;;  %s1726_s12 = sphi %s1765_s12, %s2201_s12  }
   0x4   : > { %p23_p0 = scmp.ge.s32.totalorder %s22_s17, 9  ;;  %p1270_p1 = scmp.ge.s32.totalorder %s1742_s16, 1 }
   0x5   : > { %p159_p2 = scmp.lt.s32.totalorder %s1742_s16, 19 }
   0x6   : > { %s2206_s17 = smov (%p23_p0, %s22_s17), 0  ;;  %s2208_s18 = smov (!%p23_p0, %s25_s18), %s1738_s15 }
   0x7   : > { %p160_p3 = pnand %p1270_p1, %p159_p2  ;;  %p27_p4 = scmp.ge.s32.totalorder %s2208_s18, 2 }
   0x8   : > { %s1271_s27 = sshll.u32 (!%p160_p3), %s1726_s12, 5  ;;  %p193_p5 = scmp.lt.s32.totalorder (!%p160_p3), %s1730_s13, 1 }
   0x9   : > { %s2210_s18 = smov (%p27_p4, %s2208_s18), 0  ;;  %163 = sbr.rel (%p160_p3) target bundleno = 379 (0x17b), region = 32 }
   0xa   : > { %p195_p6 = scmp.lt.s32.totalorder (!%p160_p3), %s1271_s27, 287 }
   0xe   : > { %v1624_v0 = vld [vmem:[%s2198_s1 + $0x38] sm:$0xff]  ;;  %v1549_v2 = vld [vmem:[%s2198_s1 + $0xa0] sm:$0xf]  ;;  %vm738_vm0 = vcmask 1045504   ;;  %vm739_vm1 = vcmask 1046528   ;;  %v1744_v5 = vmov 65535  }
   0xf   : > { %v1805_v1 = vld [vmem:[%s2198_s1 + $0x78] sm:$0xff]  ;;  %v1637_v3 = vld [vmem:[%s2198_s1 + $0xa0] sm:$0x70]  ;;  %745 = vmatpush.bf16.msra.mxu0 %v1624_v0  ;;  %1638 = vmatpush.bf16.msra.mxu3 %v1624_v0  ;;  %v740_v6 = vsel %vm738_vm0, 4294967295, %v1744_v5  ;;  %v1623_v7 = vld [vmem:[%s2198_s1 + $0x30] sm:$0xff]  ;;  %s2212_s13 = smov (!%p193_p5, %s1730_s13), 1 }
  0x10   : > { %v1550_v4 = vor.u32 %v1637_v3, %v1549_v2  ;;  %834 = vmatpush.bf16.msra.mxu1 %v1805_v1  ;;  %v741_v8 = vsel %vm739_vm1, %v740_v6, 0  ;;  %v1822_v9 = vld [vmem:[%s2198_s1 + $0x70] sm:$0xff]  ;;  %s2214_s27 = smov (!%p195_p6, %s1271_s27), 287  ;;  %v1835_v11 = vld [vmem:[%s2198_s1 + $0x98] sm:$0xff]  ;;  %v1622_v12 = vld [vmem:[%s2198_s1 + $0x28] sm:$0xff]  ;;  %s1660_s9 = smul.u32 864, %s2212_s13 }
  0x11   : > { %v1845_v13 = vld [vmem:[%s2198_s1 + $0x68] sm:$0xff]  ;;  %s1659_s12 = smul.u32 3, %s2214_s27  ;;  %v1852_v14 = vld [vmem:[%s2198_s1 + $0x90] sm:$0xff]  ;;  %v1621_v15 = vld [vmem:[%s2198_s1 + $0x20] sm:$0xff]  ;;  %vm689_vm2 = vcmask 629760   ;;  %vm1140_vm4 = vcmask 519168  }
  0x12   : > { %v1824_v10 = vand.u32 %v1550_v4, %v741_v8  ;;  %v1629_v16 = vld [vmem:[%s2198_s1 + $0x60] sm:$0xff]  ;;  %v1865_v17 = vld [vmem:[%s2198_s1 + $0x88] sm:$0xff]  ;;  %v1620_v18 = vld [vmem:[%s2198_s1 + $0x18] sm:$0xff]  ;;  %s1661_s4 = smul.u32 288, %s2212_s13 }
  0x13   : > { %746 = vmatpush.bf16.msra.mxu0 %v1623_v7  ;;  %1639 = vmatpush.bf16.msra.mxu3 %v1623_v7  ;;  %s199_s19 = sadd.s32 %s1660_s9, %s1659_s12  ;;  %v1628_v19 = vld [vmem:[%s2198_s1 + $0x58] sm:$0xff]  ;;  %v1881_v20 = vld [vmem:[%s2198_s1 + $0x80] sm:$0xff]  ;;  %v1619_v21 = vld [vmem:[%s2198_s1 + $0x10] sm:$0xff] }
  0x14   : > { %926 = vmatpush.bf16.msra.mxu2 %v1824_v10  ;;  %835 = vmatpush.bf16.msra.mxu1 %v1822_v9  ;;  %s1272_s26 = sshll.u32 %s199_s19, 2  ;;  %v1627_v24 = vld [vmem:[%s2198_s1 + $0x50] sm:$0xff]  ;;  %v1618_v26 = vld [vmem:[%s2198_s1 + $0x8] sm:$0xff]  ;;  %v1617_v28 = vld [vmem:[%s2198_s1] sm:$0xff]  ;;  %s1915_s5 = sadd.s32 %s1661_s4, %s2214_s27 }
  0x15   : > { %s1876_s9 = scalar_lea.vmem %s2197_s0, %s1272_s26  ;;  %v1626_v27 = vld [vmem:[%s2198_s1 + $0x48] sm:$0xff]  ;;  %v1625_v29 = vld [vmem:[%s2198_s1 + $0x40] sm:$0xff]  ;;  %s1274_s6 = sshll.u32 %s1915_s5, 2 }
  0x16   : > { %v1285_v22 = vld [vmem:[%s1876_s9 + $0x8] sm:$0xf]  ;;  %v1571_v23 = vld [vmem:[%s1876_s9 + $0x10] sm:$0xf0]  ;;  %v1277_v30 = vld [vmem:[%s1876_s9] sm:$0xf]  ;;  %s2011_s10 = scalar_lea.vmem %s2200_s3, %s1274_s6 }
  0x17   : > { %747 = vmatpush.bf16.msra.mxu0 %v1622_v12  ;;  %1640 = vmatpush.bf16.msra.mxu3 %v1622_v12  ;;  %v1286_v25 = vor.u32 %v1571_v23, %v1285_v22  ;;  %v1570_v31 = vld [vmem:[%s1876_s9 + $0x8] sm:$0xf0]  ;;  %v1421_v32 = vld [vmem:[%s1876_s9 + $0x120] sm:$0xf]  ;;  %v1569_v34 = vld [vmem:[%s1876_s9 + $0x4] sm:$0xf] }
  0x18   : > { %927 = vmatpush.bf16.msra.mxu2 %v1835_v11  ;;  %836 = vmatpush.bf16.msra.mxu1 %v1845_v13  ;;  %v1606_v33 = vld [vmem:[%s1876_s9 + $0x128] sm:$0xf0]  ;;  %v1279_v35 = vld [vmem:[%s1876_s9 + $0xc] sm:$0xf0]  ;;  %v1278_v36 = vor.u32 %v1570_v31, %v1277_v30  ;;  %v1297_v39 = vld [vmem:[%s1876_s9 + $0x20] sm:$0xf] }
  0x19   : > { %v1422_v37 = vor.u32 %v1606_v33, %v1421_v32  ;;  %v1282_v38 = vor.u32 %v1569_v34, %v1279_v35  ;;  %v1574_v40 = vld [vmem:[%s1876_s9 + $0x28] sm:$0xf0]  ;;  %v1289_v42 = vld [vmem:[%s1876_s9 + $0x18] sm:$0xf]  ;;  %v1573_v43 = vld [vmem:[%s1876_s9 + $0x20] sm:$0xf0] }
  0x1a   : > { %v1298_v41 = vor.u32 %v1574_v40, %v1297_v39  ;;  %v1433_v44 = vld [vmem:[%s1876_s9 + $0x138] sm:$0xf]  ;;  %v1609_v45 = vld [vmem:[%s1876_s9 + $0x140] sm:$0xf0]  ;;  %v1572_v46 = vld [vmem:[%s1876_s9 + $0x1c] sm:$0xf]  ;;  %v1290_v48 = vor.u32 %v1573_v43, %v1289_v42 }
  0x1b   : > { %748 = vmatpush.bf16.msra.mxu0 %v1621_v15  ;;  %1641 = vmatpush.bf16.msra.mxu3 %v1621_v15  ;;  %v1291_v47 = vld [vmem:[%s1876_s9 + $0x24] sm:$0xf0]  ;;  %v1434_v49 = vor.u32 %v1609_v45, %v1433_v44  ;;  %v1309_v51 = vld [vmem:[%s1876_s9 + $0x38] sm:$0xf]  ;;  %v1577_v52 = vld [vmem:[%s1876_s9 + $0x40] sm:$0xf0] }
  0x1c   : > { %928 = vmatpush.bf16.msra.mxu2 %v1852_v14  ;;  %837 = vmatpush.bf16.msra.mxu1 %v1629_v16  ;;  %v1294_v50 = vor.u32 %v1572_v46, %v1291_v47  ;;  %v1310_v53 = vor.u32 %v1577_v52, %v1309_v51  ;;  %v1301_v54 = vld [vmem:[%s1876_s9 + $0x30] sm:$0xf]  ;;  %v1576_v55 = vld [vmem:[%s1876_s9 + $0x38] sm:$0xf0]  ;;  %v1575_v58 = vld [vmem:[%s1876_s9 + $0x34] sm:$0xf] }
  0x1d   : > { %v1445_v56 = vld [vmem:[%s1876_s9 + $0x150] sm:$0xf]  ;;  %v1612_v57 = vld [vmem:[%s1876_s9 + $0x158] sm:$0xf0]  ;;  %v1303_v59 = vld [vmem:[%s1876_s9 + $0x3c] sm:$0xf0]  ;;  %v1302_v60 = vor.u32 %v1576_v55, %v1301_v54 }
  0x1e   : > { %v1446_v61 = vor.u32 %v1612_v57, %v1445_v56  ;;  %v1306_v62 = vor.u32 %v1575_v58, %v1303_v59  ;;  %v1321_v63 = vld [vmem:[%s1876_s9 + $0x50] sm:$0xf]  ;;  %v1580_v0 = vld [vmem:[%s1876_s9 + $0x58] sm:$0xf0]  ;;  %v1313_v2 = vld [vmem:[%s1876_s9 + $0x48] sm:$0xf] }
  0x1f   : > { %749 = vmatpush.bf16.msra.mxu0 %v1620_v18  ;;  %1642 = vmatpush.bf16.msra.mxu3 %v1620_v18  ;;  %v1579_v3 = vld [vmem:[%s1876_s9 + $0x50] sm:$0xf0]  ;;  %v1457_v4 = vld [vmem:[%s1876_s9 + $0x168] sm:$0xf]  ;;  %v1578_v6 = vld [vmem:[%s1876_s9 + $0x4c] sm:$0xf] }
  0x20   : > { %929 = vmatpush.bf16.msra.mxu2 %v1865_v17  ;;  %838 = vmatpush.bf16.msra.mxu1 %v1628_v19  ;;  %v1615_v5 = vld [vmem:[%s1876_s9 + $0x170] sm:$0xf0]  ;;  %v1315_v7 = vld [vmem:[%s1876_s9 + $0x54] sm:$0xf0]  ;;  %v1314_v8 = vor.u32 %v1579_v3, %v1313_v2  ;;  %v1582_v15 = vld [vmem:[%s1876_s9 + $0x68] sm:$0xf0] }
  0x21   : > { %v1583_v12 = vld [vmem:[%s1876_s9 + $0x70] sm:$0xf0]  ;;  %v1581_v18 = vld [vmem:[%s1876_s9 + $0x64] sm:$0xf]  ;;  %v1345_v23 = vld [vmem:[%s1876_s9 + $0x80] sm:$0xf] }
  0x22   : > { %v1584_v30 = vld [vmem:[%s1876_s9 + $0x7c] sm:$0xf]  ;;  %v1339_v31 = vld [vmem:[%s1876_s9 + $0x84] sm:$0xf0]  ;;  %v1357_v35 = vld [vmem:[%s1876_s9 + $0x98] sm:$0xf] }
  0x23   : > { %750 = vmatpush.bf16.msra.mxu0 %v1619_v21  ;;  %1643 = vmatpush.bf16.msra.mxu3 %v1619_v21  ;;  %v1342_v34 = vor.u32 %v1584_v30, %v1339_v31  ;;  %v1588_v39 = vld [vmem:[%s1876_s9 + $0x98] sm:$0xf0]  ;;  %v1611_v40 = vld [vmem:[%s1876_s9 + $0x154] sm:$0xf]  ;;  %v1351_v43 = vld [vmem:[%s1876_s9 + $0x9c] sm:$0xf0] }
  0x24   : > { %930 = vmatpush.bf16.msra.mxu2 %v1881_v20  ;;  %839 = vmatpush.bf16.msra.mxu1 %v1627_v24  ;;  %v1587_v42 = vld [vmem:[%s1876_s9 + $0x94] sm:$0xf]  ;;  %v1369_v47 = vld [vmem:[%s1876_s9 + $0xb0] sm:$0xf]  ;;  %v1614_v52 = vld [vmem:[%s1876_s9 + $0x16c] sm:$0xf] }
  0x25   : > { %v1354_v46 = vor.u32 %v1587_v42, %v1351_v43  ;;  %v1591_v51 = vld [vmem:[%s1876_s9 + $0xb0] sm:$0xf0]  ;;  %v1590_v54 = vld [vmem:[%s1876_s9 + $0xac] sm:$0xf]  ;;  %v1363_v55 = vld [vmem:[%s1876_s9 + $0xb4] sm:$0xf0] }
  0x26   : > { %v1366_v58 = vor.u32 %v1590_v54, %v1363_v55  ;;  %v1381_v59 = vld [vmem:[%s1876_s9 + $0xc8] sm:$0xf]  ;;  %v1610_v2 = vld [vmem:[%s1876_s9 + $0x148] sm:$0xf0]  ;;  %v1593_v3 = vld [vmem:[%s1876_s9 + $0xc4] sm:$0xf] }
  0x27   : > { %1551 = vmatmul.msk.bf16.vlgmr.msra.gmra.mxu2 %vm689_vm2, %v1286_v25  ;;  %751 = vmatpush.bf16.msra.mxu0 %v1618_v26  ;;  %v1613_v30 = vld [vmem:[%s1876_s9 + $0x160] sm:$0xf0]  ;;  %v1596_v31 = vld [vmem:[%s1876_s9 + $0xdc] sm:$0xf] }
  0x28   : > { %1644 = vmatpush.bf16.msra.mxu3 %v1618_v26  ;;  %840 = vmatpush.bf16.msra.mxu1 %v1626_v27  ;;  %v1337_v26 = vld [vmem:[%s1876_s9 + $0x78] sm:$0xf] }
  0x2b   : > { %752 = vmatpush.bf16.msra.mxu0 %v1617_v28 }
  0x2c   : > { %1645 = vmatpush.bf16.msra.mxu3 %v1617_v28  ;;  %841 = vmatpush.bf16.msra.mxu1 %v1625_v29  ;;  %v1608_v28 = vld [vmem:[%s1876_s9 + $0x13c] sm:$0xf] }
  0x2e   : > { %753 = vmatmul.bf16.vlgmr.msra.gmra.mxu0 %v1278_v36  ;;  %v1589_v36 = vld [vmem:[%s1876_s9 + $0xa0] sm:$0xf0] }
  0x2f   : > { %813 = vmatmul.bf16.vlgmr.msra.gmra.mxu3 %v1422_v37  ;;  %842 = vmatmul.bf16.vlgmr.msra.gmra.mxu1 %v1282_v38  ;;  %v1358_v37 = vor.u32 %v1589_v36, %v1357_v35  ;;  %v1349_v38 = vld [vmem:[%s1876_s9 + $0x90] sm:$0xf] }
  0x30   : > { %1646 = vmatpush.bf16.msrb.mxu3 %v1805_v1  ;;  %v1322_v1 = vor.u32 %v1580_v0, %v1321_v63  ;;  %v1350_v44 = vor.u32 %v1588_v39, %v1349_v38  ;;  %v1373_v63 = vld [vmem:[%s1876_s9 + $0xc0] sm:$0xf]  ;;  %v1594_v0 = vld [vmem:[%s1876_s9 + $0xc8] sm:$0xf0] }
  0x34   : > { %1647 = vmatpush.bf16.msrb.mxu3 %v1822_v9  ;;  %v1458_v9 = vor.u32 %v1615_v5, %v1457_v4  ;;  %v1375_v4 = vld [vmem:[%s1876_s9 + $0xcc] sm:$0xf0] }
  0x37   : > { %1552 = vmatmul.msk.bf16.gmra.mxu2 %vm689_vm2, %v1298_v41  ;;  %v1447_v41 = vld [vmem:[%s1876_s9 + $0x15c] sm:$0xf0] }
  0x38   : > { %1648 = vmatpush.bf16.msrb.mxu3 %v1845_v13  ;;  %v1450_v45 = vor.u32 %v1611_v40, %v1447_v41 }
  0x3c   : > { %1649 = vmatpush.bf16.msrb.mxu3 %v1629_v16  ;;  %v1605_v16 = vld [vmem:[%s1876_s9 + $0x124] sm:$0xf] }
  0x3e   : > { %758 = vmatmul.bf16.gmra.mxu0 %v1290_v48  ;;  %v1592_v48 = vld [vmem:[%s1876_s9 + $0xb8] sm:$0xf0] }
  0x3f   : > { %818 = vmatmul.bf16.gmra.mxu3 %v1434_v49  ;;  %847 = vmatmul.bf16.gmra.mxu1 %v1294_v50  ;;  %v1370_v49 = vor.u32 %v1592_v48, %v1369_v47  ;;  %v1361_v50 = vld [vmem:[%s1876_s9 + $0xa8] sm:$0xf] }
  0x40   : > { %1650 = vmatpush.bf16.msrb.mxu3 %v1628_v19  ;;  %v1327_v19 = vld [vmem:[%s1876_s9 + $0x6c] sm:$0xf0]  ;;  %v1362_v56 = vor.u32 %v1591_v51, %v1361_v50 }
  0x41   : > { %v1330_v22 = vor.u32 %v1581_v18, %v1327_v19 }
  0x44   : > { %1651 = vmatpush.bf16.msrb.mxu3 %v1627_v24  ;;  %v1586_v24 = vld [vmem:[%s1876_s9 + $0x88] sm:$0xf0] }
  0x45   : > { %v1346_v25 = vor.u32 %v1586_v24, %v1345_v23 }
  0x47   : > { %1553 = vmatmul.msk.bf16.gmra.mxu2 %vm689_vm2, %v1310_v53  ;;  %v1459_v53 = vld [vmem:[%s1876_s9 + $0x174] sm:$0xf0] }
  0x48   : > { %1652 = vmatpush.bf16.msrb.mxu3 %v1626_v27  ;;  %v1585_v27 = vld [vmem:[%s1876_s9 + $0x80] sm:$0xf0]  ;;  %v1462_v57 = vor.u32 %v1614_v52, %v1459_v53 }
  0x49   : > { %v1338_v32 = vor.u32 %v1585_v27, %v1337_v26  ;;  %v1385_v26 = vld [vmem:[%s1876_s9 + $0xd8] sm:$0xf]  ;;  %v1597_v27 = vld [vmem:[%s1876_s9 + $0xe0] sm:$0xf0] }
  0x4a   : > { %v1386_v36 = vor.u32 %v1597_v27, %v1385_v26 }
  0x4c   : > { %1653 = vmatpush.bf16.msrb.mxu3 %v1625_v29  ;;  %v1435_v29 = vld [vmem:[%s1876_s9 + $0x144] sm:$0xf0] }
  0x4d   : > { %v1438_v33 = vor.u32 %v1608_v28, %v1435_v29  ;;  %v1453_v28 = vld [vmem:[%s1876_s9 + $0x158] sm:$0xf] }
  0x4e   : > { %763 = vmatmul.bf16.gmra.mxu0 %v1302_v60  ;;  %v1595_v60 = vld [vmem:[%s1876_s9 + $0xd0] sm:$0xf0]  ;;  %v1454_v38 = vor.u32 %v1613_v30, %v1453_v28  ;;  %v1409_v28 = vld [vmem:[%s1876_s9 + $0x108] sm:$0xf] }
  0x4f   : > { %823 = vmatmul.bf16.gmra.mxu3 %v1446_v61  ;;  %852 = vmatmul.bf16.gmra.mxu1 %v1306_v62  ;;  %v1382_v61 = vor.u32 %v1595_v60, %v1381_v59  ;;  %v1993_v62 = vld [vmem:[%s2199_s2] ss:$0 sm:$0xff]  ;;  %v1600_v59 = vld [vmem:[%s1876_s9 + $0xf8] sm:$0xf0]  ;;  %v1465_v60 = vld [vmem:[%s1876_s9 + $0x170] sm:$0xf] }
  0x50   : > { %1654 = vmatpush.bf16.msra.mxu3 %v1824_v10  ;;  %v1318_v10 = vor.u32 %v1578_v6, %v1315_v7  ;;  %v1374_v6 = vor.u32 %v1594_v0, %v1373_v63  ;;  %v1616_v63 = vld [vmem:[%s1876_s9 + $0x178] sm:$0xf0]  ;;  %v1599_v0 = vld [vmem:[%s1876_s9 + $0xf4] sm:$0xf] }
  0x54   : > { %1655 = vmatpush.bf16.msra.mxu3 %v1835_v11  ;;  %v1333_v11 = vld [vmem:[%s1876_s9 + $0x68] sm:$0xf] }
  0x55   : > { %v1334_v13 = vor.u32 %v1583_v12, %v1333_v11 }
  0x57   : > { %1554 = vmatmul.msk.bf16.gmra.mxu2 %vm689_vm2, %v1322_v1  ;;  %v1441_v1 = vld [vmem:[%s1876_s9 + $0x140] sm:$0xf] }
  0x58   : > { %1656 = vmatpush.bf16.msra.mxu3 %v1852_v14  ;;  %v1325_v14 = vld [vmem:[%s1876_s9 + $0x60] sm:$0xf] }
  0x5c   : > { %1657 = vmatpush.bf16.msra.mxu3 %v1865_v17  ;;  %v1423_v17 = vld [vmem:[%s1876_s9 + $0x12c] sm:$0xf0] }
  0x5d   : > { %v1426_v21 = vor.u32 %v1605_v16, %v1423_v17 }
  0x5e   : > { %768 = vmatmul.bf16.gmra.mxu0 %v1314_v8  ;;  %v1442_v8 = vor.u32 %v1610_v2, %v1441_v1  ;;  %v1399_v1 = vld [vmem:[%s1876_s9 + $0xfc] sm:$0xf0] }
  0x5f   : > { %828 = vmatmul.bf16.gmra.mxu3 %v1458_v9  ;;  %857 = vmatmul.bf16.gmra.mxu1 %v1318_v10  ;;  %v1378_v9 = vor.u32 %v1593_v3, %v1375_v4 }
  0x60   : > { %1658 = vmatpush.bf16.msra.mxu3 %v1881_v20  ;;  %v1326_v20 = vor.u32 %v1582_v15, %v1325_v14  ;;  %v1598_v14 = vld [vmem:[%s1876_s9 + $0xe8] sm:$0xf0] }
  0x67   : > { %1555 = vmatmul.msk.bf16.gmra.mxu2 %vm689_vm2, %v1334_v13  ;;  %v1393_v13 = vld [vmem:[%s1876_s9 + $0xe0] sm:$0xf] }
  0x68   : > { %v1394_v19 = vor.u32 %v1598_v14, %v1393_v13  ;;  %v1417_v14 = vld [vmem:[%s1876_s9 + $0x110] sm:$0xf] }
  0x6e   : > { %773 = vmatmul.bf16.gmra.mxu0 %v1326_v20 }
  0x6f   : > { %902 = vmatmul.bf16.vlgmr.msrb.gmra.mxu3 %v1426_v21  ;;  %862 = vmatmul.bf16.gmra.mxu1 %v1330_v22 }
  0x77   : > { %1556 = vmatmul.msk.bf16.gmra.mxu2 %vm689_vm2, %v1346_v25 }
  0x7e   : > { %778 = vmatmul.bf16.gmra.mxu0 %v1338_v32  ;;  %v1387_v32 = vld [vmem:[%s1876_s9 + $0xe4] sm:$0xf0] }
  0x7f   : > { %907 = vmatmul.bf16.gmra.mxu3 %v1438_v33  ;;  %867 = vmatmul.bf16.gmra.mxu1 %v1342_v34  ;;  %v1390_v39 = vor.u32 %v1596_v31, %v1387_v32  ;;  %v1602_v31 = vld [vmem:[%s1876_s9 + $0x10c] sm:$0xf]  ;;  %v1411_v32 = vld [vmem:[%s1876_s9 + $0x114] sm:$0xf0] }
  0x87   : > { %1557 = vmatmul.msk.bf16.gmra.mxu2 %vm689_vm2, %v1358_v37 }
  0x8e   : > { %783 = vmatmul.bf16.gmra.mxu0 %v1350_v44 }
  0x8f   : > { %912 = vmatmul.bf16.gmra.mxu3 %v1450_v45  ;;  %872 = vmatmul.bf16.gmra.mxu1 %v1354_v46  ;;  %v1405_v45 = vld [vmem:[%s1876_s9 + $0xf8] sm:$0xf]  ;;  %v1601_v46 = vld [vmem:[%s1876_s9 + $0x100] sm:$0xf0] }
  0x90   : > { %v1406_v51 = vor.u32 %v1601_v46, %v1405_v45  ;;  %v1429_v45 = vld [vmem:[%s1876_s9 + $0x128] sm:$0xf]  ;;  %v1607_v46 = vld [vmem:[%s1876_s9 + $0x130] sm:$0xf0] }
  0x97   : > { %1558 = vmatmul.msk.bf16.gmra.mxu2 %vm689_vm2, %v1370_v49 }
  0x9e   : > { %788 = vmatmul.bf16.gmra.mxu0 %v1362_v56 }
  0x9f   : > { %917 = vmatmul.bf16.gmra.mxu3 %v1462_v57  ;;  %877 = vmatmul.bf16.gmra.mxu1 %v1366_v58  ;;  %v1397_v58 = vld [vmem:[%s1876_s9 + $0xf0] sm:$0xf] }
  0xa7   : > { %1559 = vmatmul.msk.bf16.gmra.mxu2 %vm689_vm2, %v1382_v61 }
  0xaa   : > { %v932_v5 = vpop.f32.mrf.mxu2 }
  0xab   : > { %v754_v7 = vpop.f32.mrf.mxu0 }
  0xac   : > { %v755_v10 = vadd.f32 %v1993_v62, %v754_v7  ;;  %v843_v11 = vpop.f32.mrf.mxu1  ;;  %v1466_v7 = vor.u32 %v1616_v63, %v1465_v60 }
  0xae   : > { %v844_v12 = vadd.f32 %v843_v11, %v755_v10  ;;  %793 = vmatmul.bf16.gmra.mxu0 %v1374_v6 }
  0xaf   : > { %1564 = vmatmul.msk.bf16.vlgmr.msra.gmra.mxu3 %vm689_vm2, %v1442_v8  ;;  %882 = vmatmul.bf16.gmra.mxu1 %v1378_v9  ;;  %v1402_v8 = vor.u32 %v1599_v0, %v1399_v1 }
  0xb0   : > { %v933_v15 = vadd.f32 %v932_v5, %v844_v12  ;;  %v1398_v5 = vor.u32 %v1600_v59, %v1397_v58 }
  0xb2   : > { %v934_v16 = vpop.f32.mrf.mxu2  ;;  %vm1012_vm3 = vcmp.ge.f32.partialorder %v933_v15, 0.0  ;;  %v1044_v17 = vmul.f32 0.2, %v933_v15  ;;  %v2006_v18 = vpop.f32.mrf.mxu3 }
  0xb3   : > { %v756_v20 = vpop.f32.mrf.mxu0 }
  0xb4   : > { %v1076_v21 = vsel %vm1012_vm3, %v933_v15, %v1044_v17  ;;  %v757_v22 = vadd.f32 %v1993_v62, %v756_v20  ;;  %v845_v23 = vpop.f32.mrf.mxu1  ;;  %v1604_v15 = vld [vmem:[%s1876_s9 + $0x118] sm:$0xf0] }
  0xb5   : > { %v1108_v24 = vpack.c.bf16 %v1076_v21, %v1076_v21  ;;  %v1418_v21 = vor.u32 %v1604_v15, %v1417_v14 }
  0xb6   : > { %v846_v25 = vadd.f32 %v845_v23, %v757_v22 }
  0xb7   : > { %1560 = vmatmul.msk.bf16.gmra.mxu2 %vm689_vm2, %v1394_v19  ;;  %1141 = vst.msk [vmem:[%s2011_s10] sm:$0xf] %vm1140_vm4, %v1108_v24 }
  0xb8   : > { %v935_v29 = vadd.f32 %v934_v16, %v846_v25 }
  0xba   : > { %v937_v33 = vpop.f32.mrf.mxu2  ;;  %vm1013_vm5 = vcmp.ge.f32.partialorder %v935_v29, 0.0  ;;  %v1045_v34 = vmul.f32 0.2, %v935_v29  ;;  %v2023_v35 = vpop.f32.mrf.mxu3 }
  0xbb   : > { %v759_v37 = vpop.f32.mrf.mxu0 }
  0xbc   : > { %v1077_v40 = vsel %vm1013_vm5, %v935_v29, %v1045_v34  ;;  %v760_v41 = vadd.f32 %v1993_v62, %v759_v37  ;;  %v848_v42 = vpop.f32.mrf.mxu1  ;;  %v1603_v29 = vld [vmem:[%s1876_s9 + $0x110] sm:$0xf0] }
  0xbd   : > { %v1109_v43 = vpack.c.bf16 %v1077_v40, %v1077_v40  ;;  %v1410_v37 = vor.u32 %v1603_v29, %v1409_v28 }
  0xbe   : > { %v849_v44 = vadd.f32 %v848_v42, %v760_v41  ;;  %798 = vmatmul.bf16.gmra.mxu0 %v1386_v36 }
  0xbf   : > { %1142 = vst.msk [vmem:[%s2011_s10 + $0x4] sm:$0xf] %vm1140_vm4, %v1109_v43  ;;  %1565 = vmatmul.msk.bf16.gmra.mxu3 %vm689_vm2, %v1454_v38  ;;  %887 = vmatmul.bf16.gmra.mxu1 %v1390_v39  ;;  %v1414_v39 = vor.u32 %v1602_v31, %v1411_v32 }
  0xc0   : > { %v938_v47 = vadd.f32 %v937_v33, %v849_v44 }
  0xc2   : > { %v939_v48 = vpop.f32.mrf.mxu2  ;;  %vm1014_vm6 = vcmp.ge.f32.partialorder %v938_v47, 0.0  ;;  %v1046_v49 = vmul.f32 0.2, %v938_v47  ;;  %v2031_v50 = vpop.f32.mrf.mxu3 }
  0xc3   : > { %v761_v52 = vpop.f32.mrf.mxu0 }
  0xc4   : > { %v1078_v53 = vsel %vm1014_vm6, %v938_v47, %v1046_v49  ;;  %v762_v54 = vadd.f32 %v1993_v62, %v761_v52  ;;  %v850_v55 = vpop.f32.mrf.mxu1  ;;  %v1430_v52 = vor.u32 %v1607_v46, %v1429_v45 }
  0xc5   : > { %v1110_v56 = vpack.c.bf16 %v1078_v53, %v1078_v53 }
  0xc6   : > { %v851_v57 = vadd.f32 %v850_v55, %v762_v54 }
  0xc7   : > { %1561 = vmatmul.msk.bf16.gmra.mxu2 %vm689_vm2, %v1406_v51  ;;  %1143 = vst.msk [vmem:[%s2011_s10 + $0x8] sm:$0xf] %vm1140_vm4, %v1110_v56 }
  0xc8   : > { %v940_v61 = vadd.f32 %v939_v48, %v851_v57 }
  0xca   : > { %v942_v2 = vpop.f32.mrf.mxu2  ;;  %vm1015_vm7 = vcmp.ge.f32.partialorder %v940_v61, 0.0  ;;  %v1047_v3 = vmul.f32 0.2, %v940_v61  ;;  %v2043_v4 = vpop.f32.mrf.mxu3 }
  0xcb   : > { %v764_v6 = vpop.f32.mrf.mxu0 }
  0xcc   : > { %v1079_v9 = vsel %vm1015_vm7, %v940_v61, %v1047_v3  ;;  %v765_v10 = vadd.f32 %v1993_v62, %v764_v6  ;;  %v853_v11 = vpop.f32.mrf.mxu1 }
  0xcd   : > { %v1111_v12 = vpack.c.bf16 %v1079_v9, %v1079_v9 }
  0xce   : > { %v854_v13 = vadd.f32 %v853_v11, %v765_v10  ;;  %803 = vmatmul.bf16.gmra.mxu0 %v1398_v5 }
  0xcf   : > { %1144 = vst.msk [vmem:[%s2011_s10 + $0xc] sm:$0xf] %vm1140_vm4, %v1111_v12  ;;  %1566 = vmatmul.msk.bf16.gmra.mxu3 %vm689_vm2, %v1466_v7  ;;  %892 = vmatmul.bf16.gmra.mxu1 %v1402_v8  ;;  %v815_v8 = vadd.f32 %v1993_v62, %v2006_v18  ;;  %v817_v18 = vadd.f32 %v1993_v62, %v2023_v35 }
  0xd0   : > { %v943_v16 = vadd.f32 %v942_v2, %v854_v13 }
  0xd2   : > { %v944_v17 = vpop.f32.mrf.mxu2  ;;  %vm1016_vm8 = vcmp.ge.f32.partialorder %v943_v16, 0.0  ;;  %v1048_v19 = vmul.f32 0.2, %v943_v16  ;;  %v2051_v20 = vpop.f32.mrf.mxu3 }
  0xd3   : > { %v766_v22 = vpop.f32.mrf.mxu0 }
  0xd4   : > { %v1080_v23 = vsel %vm1016_vm8, %v943_v16, %v1048_v19  ;;  %v767_v24 = vadd.f32 %v1993_v62, %v766_v22  ;;  %v855_v25 = vpop.f32.mrf.mxu1 }
  0xd5   : > { %v1112_v26 = vpack.c.bf16 %v1080_v23, %v1080_v23 }
  0xd6   : > { %v856_v27 = vadd.f32 %v855_v25, %v767_v24 }
  0xd7   : > { %1562 = vmatmul.msk.bf16.gmra.mxu2 %vm689_vm2, %v1418_v21  ;;  %1145 = vst.msk [vmem:[%s2011_s10 + $0x10] sm:$0xf] %vm1140_vm4, %v1112_v26 }
  0xd8   : > { %v945_v30 = vadd.f32 %v944_v17, %v856_v27 }
  0xda   : > { %v947_v33 = vpop.f32.mrf.mxu2  ;;  %vm1017_vm9 = vcmp.ge.f32.partialorder %v945_v30, 0.0  ;;  %v1049_v34 = vmul.f32 0.2, %v945_v30  ;;  %v2061_v36 = vpop.f32.mrf.mxu3 }
  0xdb   : > { %v769_v38 = vpop.f32.mrf.mxu0 }
  0xdc   : > { %v1081_v40 = vsel %vm1017_vm9, %v945_v30, %v1049_v34  ;;  %v770_v41 = vadd.f32 %v1993_v62, %v769_v38  ;;  %v858_v42 = vpop.f32.mrf.mxu1 }
  0xdd   : > { %v1113_v43 = vpack.c.bf16 %v1081_v40, %v1081_v40 }
  0xde   : > { %v859_v44 = vadd.f32 %v858_v42, %v770_v41  ;;  %808 = vmatmul.bf16.gmra.mxu0 %v1410_v37 }
  0xdf   : > { %1146 = vst.msk [vmem:[%s2011_s10 + $0x14] sm:$0xf] %vm1140_vm4, %v1113_v43  ;;  %897 = vmatmul.bf16.gmra.mxu1 %v1414_v39 }
  0xe0   : > { %v948_v47 = vadd.f32 %v947_v33, %v859_v44 }
  0xe2   : > { %v949_v48 = vpop.f32.mrf.mxu2  ;;  %vm1018_vm10 = vcmp.ge.f32.partialorder %v948_v47, 0.0  ;;  %v1050_v49 = vmul.f32 0.2, %v948_v47  ;;  %v2068_v51 = vpop.f32.mrf.mxu3 }
  0xe3   : > { %v771_v53 = vpop.f32.mrf.mxu0 }
  0xe4   : > { %v1082_v54 = vsel %vm1018_vm10, %v948_v47, %v1050_v49  ;;  %v772_v55 = vadd.f32 %v1993_v62, %v771_v53  ;;  %v860_v56 = vpop.f32.mrf.mxu1 }
  0xe5   : > { %v1114_v57 = vpack.c.bf16 %v1082_v54, %v1082_v54 }
  0xe6   : > { %v861_v58 = vadd.f32 %v860_v56, %v772_v55 }
  0xe7   : > { %1563 = vmatmul.msk.bf16.gmra.mxu2 %vm689_vm2, %v1430_v52  ;;  %1147 = vst.msk [vmem:[%s2011_s10 + $0x18] sm:$0xf] %vm1140_vm4, %v1114_v57 }
  0xe8   : > { %v950_v59 = vadd.f32 %v949_v48, %v861_v58 }
  0xea   : > { %v952_v60 = vpop.f32.mrf.mxu2  ;;  %vm1019_vm11 = vcmp.ge.f32.partialorder %v950_v59, 0.0  ;;  %v1051_v61 = vmul.f32 0.2, %v950_v59  ;;  %v2074_v63 = vpop.f32.mrf.mxu3 }
  0xeb   : > { %v774_v0 = vpop.f32.mrf.mxu0 }
  0xec   : > { %v1083_v1 = vsel %vm1019_vm11, %v950_v59, %v1051_v61  ;;  %v775_v2 = vadd.f32 %v1993_v62, %v774_v0  ;;  %v863_v3 = vpop.f32.mrf.mxu1 }
  0xed   : > { %v1115_v5 = vpack.c.bf16 %v1083_v1, %v1083_v1 }
  0xee   : > { %v864_v6 = vadd.f32 %v863_v3, %v775_v2 }
  0xef   : > { %1148 = vst.msk [vmem:[%s2011_s10 + $0x1c] sm:$0xf] %vm1140_vm4, %v1115_v5 }
  0xf0   : > { %v953_v7 = vadd.f32 %v952_v60, %v864_v6 }
  0xf2   : > { %v954_v9 = vpop.f32.mrf.mxu2  ;;  %vm1020_vm12 = vcmp.ge.f32.partialorder %v953_v7, 0.0  ;;  %v1052_v10 = vmul.f32 0.2, %v953_v7  ;;  %v903_v11 = vpop.f32.mrf.mxu3 }
  0xf3   : > { %v2081_v12 = vadd.f32 %v903_v11, %v815_v8  ;;  %v776_v13 = vpop.f32.mrf.mxu0 }
  0xf4   : > { %v1084_v14 = vsel %vm1020_vm12, %v953_v7, %v1052_v10  ;;  %v777_v15 = vadd.f32 %v1993_v62, %v776_v13  ;;  %v865_v16 = vpop.f32.mrf.mxu1 }
  0xf5   : > { %v1116_v17 = vpack.c.bf16 %v1084_v14, %v1084_v14 }
  0xf6   : > { %v866_v19 = vadd.f32 %v865_v16, %v777_v15 }
  0xf7   : > { %1149 = vst.msk [vmem:[%s2011_s10 + $0x20] sm:$0xf] %vm1140_vm4, %v1116_v17 }
  0xf8   : > { %v955_v21 = vadd.f32 %v954_v9, %v866_v19 }
  0xfa   : > { %v957_v22 = vpop.f32.mrf.mxu2  ;;  %vm1021_vm13 = vcmp.ge.f32.partialorder %v955_v21, 0.0  ;;  %v1053_v23 = vmul.f32 0.2, %v955_v21  ;;  %v905_v24 = vpop.f32.mrf.mxu3 }
  0xfb   : > { %v2088_v25 = vadd.f32 %v905_v24, %v817_v18  ;;  %v779_v26 = vpop.f32.mrf.mxu0 }
  0xfc   : > { %v1085_v27 = vsel %vm1021_vm13, %v955_v21, %v1053_v23  ;;  %v780_v28 = vadd.f32 %v1993_v62, %v779_v26  ;;  %v868_v29 = vpop.f32.mrf.mxu1 }
  0xfd   : > { %v1117_v30 = vpack.c.bf16 %v1085_v27, %v1085_v27 }
  0xfe   : > { %v869_v31 = vadd.f32 %v868_v29, %v780_v28 }
  0xff   : > { %1150 = vst.msk [vmem:[%s2011_s10 + $0x24] sm:$0xf] %vm1140_vm4, %v1117_v30 }
 0x100   : > { %v958_v32 = vadd.f32 %v957_v22, %v869_v31 }
 0x102   : > { %v959_v33 = vpop.f32.mrf.mxu2  ;;  %vm1022_vm14 = vcmp.ge.f32.partialorder %v958_v32, 0.0  ;;  %v1054_v35 = vmul.f32 0.2, %v958_v32  ;;  %v2093_v34 = vpop.f32.mrf.mxu3 }
 0x103   : > { %v781_v37 = vpop.f32.mrf.mxu0 }
 0x104   : > { %v1086_v38 = vsel %vm1022_vm14, %v958_v32, %v1054_v35  ;;  %v782_v39 = vadd.f32 %v1993_v62, %v781_v37  ;;  %v870_v40 = vpop.f32.mrf.mxu1 }
 0x105   : > { %v1118_v41 = vpack.c.bf16 %v1086_v38, %v1086_v38 }
 0x106   : > { %v871_v42 = vadd.f32 %v870_v40, %v782_v39  ;;  %v820_v39 = vadd.f32 %v1993_v62, %v2031_v50 }
 0x107   : > { %1151 = vst.msk [vmem:[%s2011_s10 + $0x28] sm:$0xf] %vm1140_vm4, %v1118_v41 }
 0x108   : > { %v960_v43 = vadd.f32 %v959_v33, %v871_v42  ;;  %v909_v41 = vadd.f32 %v2093_v34, %v820_v39 }
 0x10a   : > { %v962_v44 = vpop.f32.mrf.mxu2  ;;  %vm1023_vm15 = vcmp.ge.f32.partialorder %v960_v43, 0.0  ;;  %v1055_v45 = vmul.f32 0.2, %v960_v43  ;;  %v2098_v46 = vpop.f32.mrf.mxu3 }
 0x10b   : > { %v784_v47 = vpop.f32.mrf.mxu0 }
 0x10c   : > { %v1087_v48 = vsel %vm1023_vm15, %v960_v43, %v1055_v45  ;;  %v785_v49 = vadd.f32 %v1993_v62, %v784_v47  ;;  %v873_v52 = vpop.f32.mrf.mxu1 }
 0x10d   : > { %v1119_v53 = vpack.c.bf16 %v1087_v48, %v1087_v48 }
 0x10e   : > { %v874_v54 = vadd.f32 %v873_v52, %v785_v49 }
 0x10f   : > { %1152 = vst.msk [vmem:[%s2011_s10 + $0x2c] sm:$0xf] %vm1140_vm4, %v1119_v53 }
 0x110   : > { %v963_v55 = vadd.f32 %v962_v44, %v874_v54 }
 0x112   : > { %v964_v56 = vpop.f32.mrf.mxu2  ;;  %vm1024_vm0 = vcmp.ge.f32.partialorder %v963_v55, 0.0  ;;  %v1056_v57 = vmul.f32 0.2, %v963_v55  ;;  %v2103_v58 = vpop.f32.mrf.mxu3 }
 0x113   : > { %v786_v59 = vpop.f32.mrf.mxu0 }
 0x114   : > { %v1088_v60 = vsel %vm1024_vm0, %v963_v55, %v1056_v57  ;;  %v787_v61 = vadd.f32 %v1993_v62, %v786_v59  ;;  %v875_v0 = vpop.f32.mrf.mxu1  ;;  %v822_v55 = vadd.f32 %v1993_v62, %v2043_v4 }
 0x115   : > { %v1120_v1 = vpack.c.bf16 %v1088_v60, %v1088_v60 }
 0x116   : > { %v876_v2 = vadd.f32 %v875_v0, %v787_v61  ;;  %v911_v59 = vadd.f32 %v2098_v46, %v822_v55  ;;  %v825_v46 = vadd.f32 %v1993_v62, %v2051_v20 }
 0x117   : > { %1153 = vst.msk [vmem:[%s2011_s10 + $0x30] sm:$0xf] %vm1140_vm4, %v1120_v1 }
 0x118   : > { %v965_v3 = vadd.f32 %v964_v56, %v876_v2 }
 0x11a   : > { %v967_v5 = vpop.f32.mrf.mxu2  ;;  %vm1025_vm1 = vcmp.ge.f32.partialorder %v965_v3, 0.0  ;;  %v1057_v6 = vmul.f32 0.2, %v965_v3  ;;  %v2108_v7 = vpop.f32.mrf.mxu3 }
 0x11b   : > { %v789_v8 = vpop.f32.mrf.mxu0 }
 0x11c   : > { %v1089_v9 = vsel %vm1025_vm1, %v965_v3, %v1057_v6  ;;  %v790_v10 = vadd.f32 %v1993_v62, %v789_v8  ;;  %v878_v11 = vpop.f32.mrf.mxu1 }
 0x11d   : > { %v1121_v13 = vpack.c.bf16 %v1089_v9, %v1089_v9 }
 0x11e   : > { %v879_v14 = vadd.f32 %v878_v11, %v790_v10 }
 0x11f   : > { %1154 = vst.msk [vmem:[%s2011_s10 + $0x34] sm:$0xf] %vm1140_vm4, %v1121_v13 }
 0x120   : > { %v968_v15 = vadd.f32 %v967_v5, %v879_v14  ;;  %v914_v14 = vadd.f32 %v2103_v58, %v825_v46  ;;  %v827_v58 = vadd.f32 %v1993_v62, %v2061_v36 }
 0x122   : > { %v969_v16 = vpop.f32.mrf.mxu2  ;;  %vm1026_vm2 = vcmp.ge.f32.partialorder %v968_v15, 0.0  ;;  %v1058_v17 = vmul.f32 0.2, %v968_v15  ;;  %v2113_v19 = vpop.f32.mrf.mxu3 }
 0x123   : > { %v791_v21 = vpop.f32.mrf.mxu0 }
 0x124   : > { %v1090_v18 = vsel %vm1026_vm2, %v968_v15, %v1058_v17  ;;  %v792_v22 = vadd.f32 %v1993_v62, %v791_v21  ;;  %v880_v23 = vpop.f32.mrf.mxu1 }
 0x125   : > { %v1122_v24 = vpack.c.bf16 %v1090_v18, %v1090_v18 }
 0x126   : > { %v881_v26 = vadd.f32 %v880_v23, %v792_v22 }
 0x127   : > { %1155 = vst.msk [vmem:[%s2011_s10 + $0x38] sm:$0xf] %vm1140_vm4, %v1122_v24 }
 0x128   : > { %v970_v27 = vadd.f32 %v969_v16, %v881_v26 }
 0x12a   : > { %v972_v28 = vpop.f32.mrf.mxu2  ;;  %vm1027_vm3 = vcmp.ge.f32.partialorder %v970_v27, 0.0  ;;  %v1059_v29 = vmul.f32 0.2, %v970_v27  ;;  %v2118_v30 = vpop.f32.mrf.mxu3 }
 0x12b   : > { %v794_v31 = vpop.f32.mrf.mxu0 }
 0x12c   : > { %v1091_v32 = vsel %vm1027_vm3, %v970_v27, %v1059_v29  ;;  %v795_v33 = vadd.f32 %v1993_v62, %v794_v31  ;;  %v883_v35 = vpop.f32.mrf.mxu1 }
 0x12d   : > { %v1123_v37 = vpack.c.bf16 %v1091_v32, %v1091_v32  ;;  %v916_v32 = vadd.f32 %v2108_v7, %v827_v58  ;;  %v830_v7 = vadd.f32 %v1993_v62, %v2068_v51 }
 0x12e   : > { %v884_v38 = vadd.f32 %v883_v35, %v795_v33 }
 0x12f   : > { %1156 = vst.msk [vmem:[%s2011_s10 + $0x3c] sm:$0xf] %vm1140_vm4, %v1123_v37 }
 0x130   : > { %v973_v40 = vadd.f32 %v972_v28, %v884_v38 }
 0x132   : > { %v974_v42 = vpop.f32.mrf.mxu2  ;;  %vm1028_vm5 = vcmp.ge.f32.partialorder %v973_v40, 0.0  ;;  %v1060_v43 = vmul.f32 0.2, %v973_v40  ;;  %v997_v44 = vpop.f32.mrf.mxu3 }
 0x133   : > { %v998_v45 = vadd.f32 %v997_v44, %v909_v41  ;;  %v796_v47 = vpop.f32.mrf.mxu0 }
 0x134   : > { %v1092_v48 = vsel %vm1028_vm5, %v973_v40, %v1060_v43  ;;  %v797_v49 = vadd.f32 %v1993_v62, %v796_v47  ;;  %v885_v52 = vpop.f32.mrf.mxu1 }
 0x135   : > { %v1124_v53 = vpack.c.bf16 %v1092_v48, %v1092_v48  ;;  %vm1038_vm6 = vcmp.ge.f32.partialorder %v998_v45, 0.0  ;;  %v1070_v50 = vmul.f32 0.2, %v998_v45 }
 0x136   : > { %v886_v54 = vadd.f32 %v885_v52, %v797_v49  ;;  %v919_v49 = vadd.f32 %v2113_v19, %v830_v7  ;;  %v832_v19 = vadd.f32 %v1993_v62, %v2074_v63 }
 0x137   : > { %1157 = vst.msk [vmem:[%s2011_s10 + $0x40] sm:$0xf] %vm1140_vm4, %v1124_v53  ;;  %v1102_v34 = vsel %vm1038_vm6, %v998_v45, %v1070_v50 }
 0x138   : > { %v1134_v56 = vpack.c.bf16 %v1102_v34, %v1102_v34  ;;  %v975_v57 = vadd.f32 %v974_v42, %v886_v54 }
 0x13a   : > { %v977_v60 = vpop.f32.mrf.mxu2  ;;  %1167 = vst.msk [vmem:[%s2011_s10 + $0x68] sm:$0xf] %vm1140_vm4, %v1134_v56  ;;  %vm1029_vm7 = vcmp.ge.f32.partialorder %v975_v57, 0.0  ;;  %v1061_v61 = vmul.f32 0.2, %v975_v57  ;;  %v999_v0 = vpop.f32.mrf.mxu3 }
 0x13b   : > { %v1000_v1 = vadd.f32 %v999_v0, %v911_v59  ;;  %v799_v2 = vpop.f32.mrf.mxu0 }
 0x13c   : > { %v1093_v3 = vsel %vm1029_vm7, %v975_v57, %v1061_v61  ;;  %v800_v4 = vadd.f32 %v1993_v62, %v799_v2  ;;  %v888_v5 = vpop.f32.mrf.mxu1  ;;  %v921_v2 = vadd.f32 %v2118_v30, %v832_v19 }
 0x13d   : > { %v1125_v6 = vpack.c.bf16 %v1093_v3, %v1093_v3  ;;  %vm1039_vm8 = vcmp.ge.f32.partialorder %v1000_v1, 0.0  ;;  %v1071_v8 = vmul.f32 0.2, %v1000_v1 }
 0x13e   : > { %v889_v9 = vadd.f32 %v888_v5, %v800_v4 }
 0x13f   : > { %1158 = vst.msk [vmem:[%s2011_s10 + $0x44] sm:$0xf] %vm1140_vm4, %v1125_v6  ;;  %v1103_v10 = vsel %vm1039_vm8, %v1000_v1, %v1071_v8 }
 0x140   : > { %v1135_v11 = vpack.c.bf16 %v1103_v10, %v1103_v10  ;;  %v978_v13 = vadd.f32 %v977_v60, %v889_v9 }
 0x142   : > { %v979_v15 = vpop.f32.mrf.mxu2  ;;  %1168 = vst.msk [vmem:[%s2011_s10 + $0x6c] sm:$0xf] %vm1140_vm4, %v1135_v11  ;;  %vm1030_vm9 = vcmp.ge.f32.partialorder %v978_v13, 0.0  ;;  %v1062_v16 = vmul.f32 0.2, %v978_v13  ;;  %v1002_v17 = vpop.f32.mrf.mxu3 }
 0x143   : > { %v1003_v21 = vadd.f32 %v1002_v17, %v914_v14  ;;  %v801_v18 = vpop.f32.mrf.mxu0 }
 0x144   : > { %v1094_v22 = vsel %vm1030_vm9, %v978_v13, %v1062_v16  ;;  %v802_v20 = vadd.f32 %v1993_v62, %v801_v18  ;;  %v890_v23 = vpop.f32.mrf.mxu1 }
 0x145   : > { %v1126_v24 = vpack.c.bf16 %v1094_v22, %v1094_v22  ;;  %vm1040_vm10 = vcmp.ge.f32.partialorder %v1003_v21, 0.0  ;;  %v1072_v26 = vmul.f32 0.2, %v1003_v21 }
 0x146   : > { %v891_v27 = vadd.f32 %v890_v23, %v802_v20 }
 0x147   : > { %1159 = vst.msk [vmem:[%s2011_s10 + $0x48] sm:$0xf] %vm1140_vm4, %v1126_v24  ;;  %v1104_v28 = vsel %vm1040_vm10, %v1003_v21, %v1072_v26 }
 0x148   : > { %v1136_v29 = vpack.c.bf16 %v1104_v28, %v1104_v28  ;;  %v980_v31 = vadd.f32 %v979_v15, %v891_v27 }
 0x14a   : > { %v982_v33 = vpop.f32.mrf.mxu2  ;;  %1169 = vst.msk [vmem:[%s2011_s10 + $0x70] sm:$0xf] %vm1140_vm4, %v1136_v29  ;;  %vm1031_vm11 = vcmp.ge.f32.partialorder %v980_v31, 0.0  ;;  %v1063_v35 = vmul.f32 0.2, %v980_v31  ;;  %v1004_v37 = vpop.f32.mrf.mxu3 }
 0x14b   : > { %v1005_v38 = vadd.f32 %v1004_v37, %v916_v32  ;;  %v804_v39 = vpop.f32.mrf.mxu0 }
 0x14c   : > { %v1095_v40 = vsel %vm1031_vm11, %v980_v31, %v1063_v35  ;;  %v805_v36 = vadd.f32 %v1993_v62, %v804_v39  ;;  %v893_v41 = vpop.f32.mrf.mxu1 }
 0x14d   : > { %v1127_v42 = vpack.c.bf16 %v1095_v40, %v1095_v40  ;;  %vm1041_vm12 = vcmp.ge.f32.partialorder %v1005_v38, 0.0  ;;  %v1073_v43 = vmul.f32 0.2, %v1005_v38 }
 0x14e   : > { %v894_v44 = vadd.f32 %v893_v41, %v805_v36 }
 0x14f   : > { %1160 = vst.msk [vmem:[%s2011_s10 + $0x4c] sm:$0xf] %vm1140_vm4, %v1127_v42  ;;  %v1105_v45 = vsel %vm1041_vm12, %v1005_v38, %v1073_v43 }
 0x150   : > { %v1137_v47 = vpack.c.bf16 %v1105_v45, %v1105_v45  ;;  %v983_v48 = vadd.f32 %v982_v33, %v894_v44 }
 0x152   : > { %v984_v52 = vpop.f32.mrf.mxu2  ;;  %1170 = vst.msk [vmem:[%s2011_s10 + $0x74] sm:$0xf] %vm1140_vm4, %v1137_v47  ;;  %vm1032_vm13 = vcmp.ge.f32.partialorder %v983_v48, 0.0  ;;  %v1064_v53 = vmul.f32 0.2, %v983_v48  ;;  %v1007_v50 = vpop.f32.mrf.mxu3 }
 0x153   : > { %v1008_v54 = vadd.f32 %v1007_v50, %v919_v49  ;;  %v806_v55 = vpop.f32.mrf.mxu0 }
 0x154   : > { %v1096_v34 = vsel %vm1032_vm13, %v983_v48, %v1064_v53  ;;  %v807_v51 = vadd.f32 %v1993_v62, %v806_v55  ;;  %v895_v56 = vpop.f32.mrf.mxu1 }
 0x155   : > { %v1128_v57 = vpack.c.bf16 %v1096_v34, %v1096_v34  ;;  %vm1042_vm14 = vcmp.ge.f32.partialorder %v1008_v54, 0.0  ;;  %v1074_v59 = vmul.f32 0.2, %v1008_v54 }
 0x156   : > { %v896_v60 = vadd.f32 %v895_v56, %v807_v51 }
 0x157   : > { %1161 = vst.msk [vmem:[%s2011_s10 + $0x50] sm:$0xf] %vm1140_vm4, %v1128_v57  ;;  %v1106_v61 = vsel %vm1042_vm14, %v1008_v54, %v1074_v59 }
 0x158   : > { %v1138_v0 = vpack.c.bf16 %v1106_v61, %v1106_v61  ;;  %v985_v1 = vadd.f32 %v984_v52, %v896_v60 }
 0x15a   : > { %v987_v3 = vpop.f32.mrf.mxu2  ;;  %1171 = vst.msk [vmem:[%s2011_s10 + $0x78] sm:$0xf] %vm1140_vm4, %v1138_v0  ;;  %vm1033_vm15 = vcmp.ge.f32.partialorder %v985_v1, 0.0  ;;  %v1065_v4 = vmul.f32 0.2, %v985_v1  ;;  %v1009_v5 = vpop.f32.mrf.mxu3 }
 0x15b   : > { %v1010_v6 = vadd.f32 %v1009_v5, %v921_v2  ;;  %v809_v8 = vpop.f32.mrf.mxu0 }
 0x15c   : > { %v1097_v9 = vsel %vm1033_vm15, %v985_v1, %v1065_v4  ;;  %v810_v63 = vadd.f32 %v1993_v62, %v809_v8  ;;  %v898_v46 = vpop.f32.mrf.mxu1 }
 0x15d   : > { %v1129_v10 = vpack.c.bf16 %v1097_v9, %v1097_v9  ;;  %vm1043_vm0 = vcmp.ge.f32.partialorder %v1010_v6, 0.0  ;;  %v1075_v11 = vmul.f32 0.2, %v1010_v6 }
 0x15e   : > { %v899_v13 = vadd.f32 %v898_v46, %v810_v63 }
 0x15f   : > { %1162 = vst.msk [vmem:[%s2011_s10 + $0x54] sm:$0xf] %vm1140_vm4, %v1129_v10  ;;  %v1107_v30 = vsel %vm1043_vm0, %v1010_v6, %v1075_v11 }
 0x160   : > { %v1139_v14 = vpack.c.bf16 %v1107_v30, %v1107_v30  ;;  %v988_v15 = vadd.f32 %v987_v3, %v899_v13 }
 0x162   : > { %v989_v16 = vpop.f32.mrf.mxu2  ;;  %1172 = vst.msk [vmem:[%s2011_s10 + $0x7c] sm:$0xf] %vm1140_vm4, %v1139_v14  ;;  %vm1034_vm1 = vcmp.ge.f32.partialorder %v988_v15, 0.0  ;;  %v1066_v17 = vmul.f32 0.2, %v988_v15 }
 0x163   : > { %v811_v21 = vpop.f32.mrf.mxu0 }
 0x164   : > { %v1098_v18 = vsel %vm1034_vm1, %v988_v15, %v1066_v17  ;;  %v812_v22 = vadd.f32 %v1993_v62, %v811_v21  ;;  %v900_v20 = vpop.f32.mrf.mxu1 }
 0x165   : > { %v1130_v23 = vpack.c.bf16 %v1098_v18, %v1098_v18 }
 0x166   : > { %v901_v24 = vadd.f32 %v900_v20, %v812_v22 }
 0x167   : > { %1163 = vst.msk [vmem:[%s2011_s10 + $0x58] sm:$0xf] %vm1140_vm4, %v1130_v23 }
 0x168   : > { %v990_v26 = vadd.f32 %v989_v16, %v901_v24 }
 0x16a   : > { %v992_v27 = vpop.f32.mrf.mxu2  ;;  %vm1035_vm2 = vcmp.ge.f32.partialorder %v990_v26, 0.0  ;;  %v1067_v58 = vmul.f32 0.2, %v990_v26 }
 0x16b   : > { %v993_v28 = vadd.f32 %v992_v27, %v2081_v12 }
 0x16c   : > { %v1099_v29 = vsel %vm1035_vm2, %v990_v26, %v1067_v58 }
 0x16d   : > { %vm1036_vm3 = vcmp.ge.f32.partialorder %v993_v28, 0.0  ;;  %v1068_v31 = vmul.f32 0.2, %v993_v28  ;;  %v1131_v32 = vpack.c.bf16 %v1099_v29, %v1099_v29 }
 0x16f   : > { %v1100_v33 = vsel %vm1036_vm3, %v993_v28, %v1068_v31  ;;  %1164 = vst.msk [vmem:[%s2011_s10 + $0x5c] sm:$0xf] %vm1140_vm4, %v1131_v32 }
 0x170   : > { %v1132_v62 = vpack.c.bf16 %v1100_v33, %v1100_v33 }
 0x172   : > { %1165 = vst.msk [vmem:[%s2011_s10 + $0x60] sm:$0xf] %vm1140_vm4, %v1132_v62  ;;  %v994_v35 = vpop.f32.mrf.mxu2 }
 0x173   : > { %v995_v37 = vadd.f32 %v994_v35, %v2088_v25 }
 0x175   : > { %vm1037_vm5 = vcmp.ge.f32.partialorder %v995_v37, 0.0  ;;  %v1069_v38 = vmul.f32 0.2, %v995_v37 }
 0x177   : > { %v1101_v39 = vsel %vm1037_vm5, %v995_v37, %v1069_v38 }
 0x178   : > { %v1133_v40 = vpack.c.bf16 %v1101_v39, %v1101_v39 }
 0x17a   : > { %1166 = vst.msk [vmem:[%s2011_s10 + $0x64] sm:$0xf] %vm1140_vm4, %v1133_v40 }
 0x17b PF: > { %s13_s16 = sadd.s32 1, %s1742_s16   ;;  %s2201_s12 = smov %s1734_s14 }
 0x17c   : > { %p10_p7 = scmp.ge.s32.totalorder %s13_s16, 20   ;;  %s2202_s13 = smov %s1738_s15 }
 0x17d   : > { %s2203_s14 = smov %s2206_s17  ;;  %s2204_s15 = smov %s2210_s18 }
 0x17e   :  { %12 = sbr.rel (!%p10_p7) target bundleno = 3 (0x3), region = 62 }

// kernel: residual_group_forward.11
= control target key start
LH: loop header
LB: loop body
LE: loop exit
PB: predicated region body
PF: predicated region fallthrough
CT: control target
= control target key end

     0   :  { %s3439_s15 = smov 0   ;;  %s3441_s16 = smov 0   ;;  %s4722_s0 = inlined_call_operand.vmem [shape: bf16[2,2304,576], index: 0, kind: input, shape index: {}]   ;;  %s4723_s1 = inlined_call_operand.vmem [shape: bf16[576,64], index: 1, kind: input, shape index: {}]   ;;  %s4724_s2 = inlined_call_operand.vmem [shape: f32[1,64], index: 2, kind: input, shape index: {}]   ;;  %s4725_s3 = inlined_call_operand.vmem [shape: f32[2,2304,32], index: 3, kind: input, shape index: {}]   ;;  %s4726_s4 = inlined_call_operand.vmem [shape: f32[2,2304,32], index: 4, kind: output, shape index: {}]  }
   0x1   :  { %s3443_s17 = smov 0   ;;  %s3445_s18 = smov 0  }
   0x2   :  { %s3447_s19 = smov 0  }
   0x3 LB: > { %s23_s20 = sadd.s32 1, %s3403_s17  ;;  %s26_s21 = sadd.s32 1, %s3407_s18  ;;  %s3411_s19 = sphi %s3447_s19, %s14_s19   ;;  %s3407_s18 = sphi %s3445_s18, %s4760_s18   ;;  %s3403_s17 = sphi %s3443_s17, %s4759_s17   ;;  %s3399_s16 = sphi %s3441_s16, %s4758_s16   ;;  %s3395_s15 = sphi %s3439_s15, %s4757_s15  }
   0x4   : > { %p24_p0 = scmp.ge.s32.totalorder %s23_s20, 9  ;;  %p2539_p1 = scmp.ge.s32.totalorder %s3411_s19, 1 }
   0x5   : > { %p201_p2 = scmp.lt.s32.totalorder %s3411_s19, 19 }
   0x6   : > { %s4762_s20 = smov (%p24_p0, %s23_s20), 0  ;;  %s4764_s21 = smov (!%p24_p0, %s26_s21), %s3407_s18 }
   0x7   : > { %p202_p3 = pnand %p2539_p1, %p201_p2  ;;  %p28_p4 = scmp.ge.s32.totalorder %s4764_s21, 2 }
   0x8   : > { %s2540_s24 = sshll.u32 (!%p202_p3), %s3395_s15, 5  ;;  %p246_p5 = scmp.lt.s32.totalorder (!%p202_p3), %s3399_s16, 1 }
   0x9   : > { %s4766_s21 = smov (%p28_p4, %s4764_s21), 0  ;;  %205 = sbr.rel (%p202_p3) target bundleno = 614 (0x266), region = 36 }
   0xa   : > { %p248_p6 = scmp.lt.s32.totalorder (!%p202_p3), %s2540_s24, 287 }
   0xe   : > { %v3147_v0 = vld [vmem:[%s4723_s1 + $0x38] sm:$0xff]  ;;  %v3146_v1 = vld [vmem:[%s4723_s1 + $0x30] sm:$0xff]  ;;  %v3145_v2 = vld [vmem:[%s4723_s1 + $0x28] sm:$0xff]  ;;  %s4768_s16 = smov (!%p246_p5, %s3399_s16), 1  ;;  %s4770_s24 = smov (!%p248_p6, %s2540_s24), 287  ;;  %vm1065_vm0 = vcmask 523264  }
   0xf   : > { %3176 = vmatpush.bf16.msra.mxu1 %v3147_v0  ;;  %3177 = vmatpush.bf16.msra.mxu2 %v3147_v0  ;;  %v3144_v3 = vld [vmem:[%s4723_s1 + $0x20] sm:$0xff]  ;;  %s3201_s5 = smul.u32 1440, %s4768_s16  ;;  %v3143_v4 = vld [vmem:[%s4723_s1 + $0x18] sm:$0xff]  ;;  %v3142_v5 = vld [vmem:[%s4723_s1 + $0x10] sm:$0xff]  ;;  %vm2391_vm8 = vcmask 261120  }
  0x10   : > { %3178 = vmatpush.bf16.msra.mxu3 %v3147_v0  ;;  %1114 = vmatpush.bf16.msra.mxu0 %v3147_v0  ;;  %s3200_s6 = smul.u32 5, %s4770_s24  ;;  %v3141_v6 = vld [vmem:[%s4723_s1 + $0x8] sm:$0xff]  ;;  %v3140_v7 = vld [vmem:[%s4723_s1] sm:$0xff]  ;;  %v3163_v16 = vld [vmem:[%s4723_s1 + $0xb8] sm:$0xff] }
  0x11   : > { %v3171_v17 = vld [vmem:[%s4723_s1 + $0xf8] sm:$0xff]  ;;  %v3162_v24 = vld [vmem:[%s4723_s1 + $0xb0] sm:$0xff]  ;;  %v3161_v28 = vld [vmem:[%s4723_s1 + $0xa8] sm:$0xff] }
  0x12   : > { %s252_s9 = sadd.s32 %s3201_s5, %s3200_s6  ;;  %v3155_v22 = vld [vmem:[%s4723_s1 + $0x78] sm:$0xff]  ;;  %v3170_v25 = vld [vmem:[%s4723_s1 + $0xf0] sm:$0xff]  ;;  %v3169_v29 = vld [vmem:[%s4723_s1 + $0xe8] sm:$0xff]  ;;  %s3413_s5 = smov 96  }
  0x13   : > { %3179 = vmatpush.bf16.msra.mxu1 %v3146_v1  ;;  %3180 = vmatpush.bf16.msra.mxu2 %v3146_v1  ;;  %s2541_s12 = sshll.u32 %s252_s9, 2  ;;  %v3175_v23 = vld [vmem:[%s4723_s1 + $0x118] sm:$0xff]  ;;  %v3154_v26 = vld [vmem:[%s4723_s1 + $0x70] sm:$0xff]  ;;  %v3153_v30 = vld [vmem:[%s4723_s1 + $0x68] sm:$0xff]  ;;  %s3202_s6 = smul.u32 288, %s4768_s16 }
  0x14   : > { %3181 = vmatpush.bf16.msra.mxu3 %v3146_v1  ;;  %1115 = vmatpush.bf16.msra.mxu0 %v3146_v1  ;;  %s3502_s23 = scalar_lea.vmem %s4722_s0, %s2541_s12  ;;  %v3174_v27 = vld [vmem:[%s4723_s1 + $0x110] sm:$0xff]  ;;  %v3173_v31 = vld [vmem:[%s4723_s1 + $0x108] sm:$0xff]  ;;  %v3160_v32 = vld [vmem:[%s4723_s1 + $0xa0] sm:$0xff] }
  0x15   : > { %v2628_v8 = vld [vmem:[%s3502_s23 + $0xa0] sm:$0xf]  ;;  %v3082_v9 = vld [vmem:[%s3502_s23 + $0xb0] sm:$0xf0]  ;;  %v2648_v34 = vld [vmem:[%s3502_s23 + $0xc8] sm:$0xf]  ;;  %s3969_s16 = sadd.s32 %s3202_s6, %s4770_s24 }
  0x16   : > { %v2708_v10 = vld [vmem:[%s3502_s23 + $0x140] sm:$0xf]  ;;  %v3102_v11 = vld [vmem:[%s3502_s23 + $0x150] sm:$0xf0]  ;;  %v2629_v18 = vor.u32 %v3082_v9, %v2628_v8  ;;  %v3087_v35 = vld [vmem:[%s3502_s23 + $0xd8] sm:$0xf0] }
  0x17   : > { %3182 = vmatpush.bf16.msra.mxu1 %v3145_v2  ;;  %3183 = vmatpush.bf16.msra.mxu2 %v3145_v2  ;;  %v2788_v12 = vld [vmem:[%s3502_s23 + $0x1e0] sm:$0xf]  ;;  %v3122_v13 = vld [vmem:[%s3502_s23 + $0x1f0] sm:$0xf0]  ;;  %v2709_v19 = vor.u32 %v3102_v11, %v2708_v10  ;;  %v2728_v36 = vld [vmem:[%s3502_s23 + $0x168] sm:$0xf]  ;;  %v2649_v45 = vor.u32 %v3087_v35, %v2648_v34 }
  0x18   : > { %3184 = vmatpush.bf16.msra.mxu3 %v3145_v2  ;;  %1116 = vmatpush.bf16.msra.mxu0 %v3145_v2  ;;  %v2548_v14 = vld [vmem:[%s3502_s23] sm:$0xf]  ;;  %v3062_v15 = vld [vmem:[%s3502_s23 + $0x10] sm:$0xf0]  ;;  %v2789_v20 = vor.u32 %v3122_v13, %v2788_v12  ;;  %v3107_v37 = vld [vmem:[%s3502_s23 + $0x178] sm:$0xf0] }
  0x19   : > { %v2549_v21 = vor.u32 %v3062_v15, %v2548_v14  ;;  %v3168_v33 = vld [vmem:[%s4723_s1 + $0xe0] sm:$0xff]  ;;  %v2808_v38 = vld [vmem:[%s3502_s23 + $0x208] sm:$0xf]  ;;  %v3127_v39 = vld [vmem:[%s3502_s23 + $0x218] sm:$0xf0]  ;;  %v2729_v46 = vor.u32 %v3107_v37, %v2728_v36  ;;  %s2543_s24 = sshll.u32 %s3969_s16, 3 }
  0x1a   : > { %v2568_v40 = vld [vmem:[%s3502_s23 + $0x28] sm:$0xf]  ;;  %v3067_v41 = vld [vmem:[%s3502_s23 + $0x38] sm:$0xf0]  ;;  %v3152_v42 = vld [vmem:[%s4723_s1 + $0x60] sm:$0xff]  ;;  %v2809_v47 = vor.u32 %v3127_v39, %v2808_v38  ;;  %s4005_s8 = scalar_lea.vmem %s4725_s3, %s2543_s24  ;;  %s4036_s11 = scalar_lea.vmem %s4726_s4, %s2543_s24 }
  0x1b   : > { %3185 = vmatpush.bf16.msra.mxu1 %v3144_v3  ;;  %3186 = vmatpush.bf16.msra.mxu2 %v3144_v3  ;;  %v3159_v43 = vld [vmem:[%s4723_s1 + $0x98] sm:$0xff]  ;;  %v2569_v48 = vor.u32 %v3067_v41, %v2568_v40  ;;  %v3158_v50 = vld [vmem:[%s4723_s1 + $0x90] sm:$0xff]  ;;  %v3172_v53 = vld [vmem:[%s4723_s1 + $0x100] sm:$0xff] }
  0x1c   : > { %3187 = vmatpush.bf16.msra.mxu3 %v3144_v3  ;;  %1117 = vmatpush.bf16.msra.mxu0 %v3144_v3  ;;  %v3167_v44 = vld [vmem:[%s4723_s1 + $0xd8] sm:$0xff]  ;;  %v3166_v51 = vld [vmem:[%s4723_s1 + $0xd0] sm:$0xff]  ;;  %v3157_v54 = vld [vmem:[%s4723_s1 + $0x88] sm:$0xff] }
  0x1d   : > { %v3151_v49 = vld [vmem:[%s4723_s1 + $0x58] sm:$0xff]  ;;  %v3150_v52 = vld [vmem:[%s4723_s1 + $0x50] sm:$0xff]  ;;  %v3165_v55 = vld [vmem:[%s4723_s1 + $0xc8] sm:$0xff] }
  0x1e   : > { %v3149_v56 = vld [vmem:[%s4723_s1 + $0x48] sm:$0xff]  ;;  %v3156_v57 = vld [vmem:[%s4723_s1 + $0x80] sm:$0xff]  ;;  %v2668_v59 = vld [vmem:[%s3502_s23 + $0xf0] sm:$0xf] }
  0x1f   : > { %3188 = vmatpush.bf16.msra.mxu1 %v3143_v4  ;;  %3189 = vmatpush.bf16.msra.mxu2 %v3143_v4  ;;  %v3164_v58 = vld [vmem:[%s4723_s1 + $0xc0] sm:$0xff]  ;;  %v2748_v61 = vld [vmem:[%s3502_s23 + $0x190] sm:$0xf]  ;;  %v2688_v8 = vld [vmem:[%s3502_s23 + $0x118] sm:$0xf] }
  0x20   : > { %3190 = vmatpush.bf16.msra.mxu3 %v3143_v4  ;;  %1118 = vmatpush.bf16.msra.mxu0 %v3143_v4  ;;  %v3092_v60 = vld [vmem:[%s3502_s23 + $0x100] sm:$0xf0]  ;;  %v2828_v63 = vld [vmem:[%s3502_s23 + $0x230] sm:$0xf]  ;;  %v3097_v9 = vld [vmem:[%s3502_s23 + $0x128] sm:$0xf0] }
  0x21   : > { %v3112_v62 = vld [vmem:[%s3502_s23 + $0x1a0] sm:$0xf0]  ;;  %v2588_v1 = vld [vmem:[%s3502_s23 + $0x50] sm:$0xf]  ;;  %v2669_v4 = vor.u32 %v3092_v60, %v2668_v59  ;;  %v2768_v10 = vld [vmem:[%s3502_s23 + $0x1b8] sm:$0xf] }
  0x22   : > { %v3132_v0 = vld [vmem:[%s3502_s23 + $0x240] sm:$0xf0]  ;;  %v3117_v11 = vld [vmem:[%s3502_s23 + $0x1c8] sm:$0xf0]  ;;  %v2848_v12 = vld [vmem:[%s3502_s23 + $0x258] sm:$0xf] }
  0x23   : > { %3191 = vmatpush.bf16.msra.mxu1 %v3142_v5  ;;  %3192 = vmatpush.bf16.msra.mxu2 %v3142_v5  ;;  %v3072_v2 = vld [vmem:[%s3502_s23 + $0x60] sm:$0xf0]  ;;  %v3137_v13 = vld [vmem:[%s3502_s23 + $0x268] sm:$0xf0]  ;;  %v2608_v14 = vld [vmem:[%s3502_s23 + $0x78] sm:$0xf] }
  0x24   : > { %3193 = vmatpush.bf16.msra.mxu3 %v3142_v5  ;;  %1119 = vmatpush.bf16.msra.mxu0 %v3142_v5  ;;  %v3148_v3 = vld [vmem:[%s4723_s1 + $0x40] sm:$0xff]  ;;  %v2749_v5 = vor.u32 %v3112_v62, %v2748_v61  ;;  %v3077_v15 = vld [vmem:[%s3502_s23 + $0x88] sm:$0xf0]  ;;  %v2576_v34 = vld [vmem:[%s3502_s23 + $0x30] sm:$0xf] }
  0x25   : > { %v3068_v35 = vld [vmem:[%s3502_s23 + $0x40] sm:$0xf0]  ;;  %v3066_v36 = vld [vmem:[%s3502_s23 + $0x34] sm:$0xf]  ;;  %v2578_v37 = vld [vmem:[%s3502_s23 + $0x44] sm:$0xf0] }
  0x26   : > { %v2584_v38 = vld [vmem:[%s3502_s23 + $0x38] sm:$0xf]  ;;  %v3069_v39 = vld [vmem:[%s3502_s23 + $0x48] sm:$0xf0]  ;;  %v2577_v41 = vor.u32 %v3068_v35, %v2576_v34  ;;  %v3078_v59 = vld [vmem:[%s3502_s23 + $0x90] sm:$0xf0] }
  0x27   : > { %3194 = vmatpush.bf16.msra.mxu1 %v3141_v6  ;;  %3195 = vmatpush.bf16.msra.mxu2 %v3141_v6  ;;  %v3076_v60 = vld [vmem:[%s3502_s23 + $0x84] sm:$0xf]  ;;  %v2618_v61 = vld [vmem:[%s3502_s23 + $0x94] sm:$0xf0]  ;;  %v2624_v62 = vld [vmem:[%s3502_s23 + $0x88] sm:$0xf] }
  0x28   : > { %3196 = vmatpush.bf16.msra.mxu3 %v3141_v6  ;;  %1120 = vmatpush.bf16.msra.mxu0 %v3141_v6  ;;  %v2829_v6 = vor.u32 %v3132_v0, %v2828_v63  ;;  %v3079_v63 = vld [vmem:[%s3502_s23 + $0x98] sm:$0xf0]  ;;  %v3089_v34 = vld [vmem:[%s3502_s23 + $0xe8] sm:$0xf0] }
  0x2b   : > { %3197 = vmatpush.bf16.msra.mxu1 %v3140_v7  ;;  %3198 = vmatpush.bf16.msra.mxu2 %v3140_v7 }
  0x2c   : > { %3199 = vmatpush.bf16.msra.mxu3 %v3140_v7  ;;  %1121 = vmatpush.bf16.msra.mxu0 %v3140_v7  ;;  %v2589_v7 = vor.u32 %v3072_v2, %v2588_v1  ;;  %v2621_v2 = vor.u32 %v3076_v60, %v2618_v61  ;;  %v3094_v60 = vld [vmem:[%s3502_s23 + $0x110] sm:$0xf0] }
  0x2e   : > { %1142 = vmatmul.bf16.vlgmr.msra.gmra.mxu1 %v2629_v18  ;;  %1162 = vmatmul.bf16.vlgmr.msra.gmra.mxu2 %v2709_v19  ;;  %v2849_v18 = vor.u32 %v3137_v13, %v2848_v12  ;;  %v2609_v19 = vor.u32 %v3077_v15, %v2608_v14  ;;  %v3084_v12 = vld [vmem:[%s3502_s23 + $0xc0] sm:$0xf0] }
  0x2f   : > { %1292 = vmatpush.bf16.msrb.mxu2 %v3163_v16  ;;  %1182 = vmatmul.bf16.vlgmr.msra.gmra.mxu3 %v2789_v20  ;;  %v2689_v16 = vor.u32 %v3097_v9, %v2688_v8  ;;  %v3060_v20 = vld [vmem:[%s3502_s23 + $0x4] sm:$0xf]  ;;  %v3083_v8 = vld [vmem:[%s3502_s23 + $0xb8] sm:$0xf0]  ;;  %v3081_v9 = vld [vmem:[%s3502_s23 + $0xac] sm:$0xf] }
  0x30   : > { %1381 = vmatpush.bf16.msrb.mxu3 %v3171_v17  ;;  %1122 = vmatmul.bf16.vlgmr.msra.gmra.mxu0 %v2549_v21  ;;  %v2769_v17 = vor.u32 %v3117_v11, %v2768_v10  ;;  %v2550_v21 = vld [vmem:[%s3502_s23 + $0x14] sm:$0xf0]  ;;  %v2638_v10 = vld [vmem:[%s3502_s23 + $0xbc] sm:$0xf0]  ;;  %v2644_v11 = vld [vmem:[%s3502_s23 + $0xb0] sm:$0xf] }
  0x31   : > { %1203 = vmatpush.bf16.msrb.mxu1 %v3155_v22  ;;  %1474 = vmatpush.bf16.msrb.mxu0 %v3175_v23  ;;  %v2556_v22 = vld [vmem:[%s3502_s23 + $0x8] sm:$0xf]  ;;  %v3063_v23 = vld [vmem:[%s3502_s23 + $0x18] sm:$0xf0] }
  0x33   : > { %1293 = vmatpush.bf16.msrb.mxu2 %v3162_v24  ;;  %v3061_v24 = vld [vmem:[%s3502_s23 + $0xc] sm:$0xf] }
  0x34   : > { %1382 = vmatpush.bf16.msrb.mxu3 %v3170_v25  ;;  %v2558_v25 = vld [vmem:[%s3502_s23 + $0x1c] sm:$0xf0] }
  0x35   : > { %1204 = vmatpush.bf16.msrb.mxu1 %v3154_v26  ;;  %1475 = vmatpush.bf16.msrb.mxu0 %v3174_v27  ;;  %v2564_v26 = vld [vmem:[%s3502_s23 + $0x10] sm:$0xf]  ;;  %v3064_v27 = vld [vmem:[%s3502_s23 + $0x20] sm:$0xf0] }
  0x37   : > { %1294 = vmatpush.bf16.msrb.mxu2 %v3161_v28  ;;  %v2553_v28 = vor.u32 %v3060_v20, %v2550_v21 }
  0x38   : > { %1383 = vmatpush.bf16.msrb.mxu3 %v3169_v29  ;;  %v2557_v29 = vor.u32 %v3063_v23, %v2556_v22 }
  0x39   : > { %1205 = vmatpush.bf16.msrb.mxu1 %v3153_v30  ;;  %1476 = vmatpush.bf16.msrb.mxu0 %v3173_v31  ;;  %v2561_v30 = vor.u32 %v3061_v24, %v2558_v25  ;;  %v2565_v31 = vor.u32 %v3064_v27, %v2564_v26  ;;  %v3085_v27 = vld [vmem:[%s3502_s23 + $0xcc] sm:$0xf] }
  0x3b   : > { %1295 = vmatpush.bf16.msrb.mxu2 %v3160_v32  ;;  %v3065_v32 = vld [vmem:[%s3502_s23 + $0x2c] sm:$0xf] }
  0x3c   : > { %1384 = vmatpush.bf16.msrb.mxu3 %v3168_v33  ;;  %v2570_v33 = vld [vmem:[%s3502_s23 + $0x3c] sm:$0xf0] }
  0x3d   : > { %1206 = vmatpush.bf16.msrb.mxu1 %v3152_v42  ;;  %1477 = vmatpush.bf16.msrb.mxu0 %v3172_v53  ;;  %v2573_v40 = vor.u32 %v3065_v32, %v2570_v33  ;;  %v2581_v42 = vor.u32 %v3066_v36, %v2578_v37  ;;  %v2658_v32 = vld [vmem:[%s3502_s23 + $0xe4] sm:$0xf0]  ;;  %v2664_v33 = vld [vmem:[%s3502_s23 + $0xd8] sm:$0xf] }
  0x3e   : > { %1147 = vmatmul.bf16.gmra.mxu1 %v2649_v45  ;;  %1167 = vmatmul.bf16.gmra.mxu2 %v2729_v46  ;;  %v2590_v45 = vld [vmem:[%s3502_s23 + $0x64] sm:$0xf0]  ;;  %v2596_v46 = vld [vmem:[%s3502_s23 + $0x58] sm:$0xf] }
  0x3f   : > { %1296 = vmatpush.bf16.msrb.mxu2 %v3159_v43  ;;  %1187 = vmatmul.bf16.gmra.mxu3 %v2809_v47  ;;  %v2585_v43 = vor.u32 %v3069_v39, %v2584_v38  ;;  %v3073_v47 = vld [vmem:[%s3502_s23 + $0x68] sm:$0xf0] }
  0x40   : > { %1385 = vmatpush.bf16.msrb.mxu3 %v3167_v44  ;;  %1127 = vmatmul.bf16.gmra.mxu0 %v2569_v48  ;;  %v3070_v44 = vld [vmem:[%s3502_s23 + $0x54] sm:$0xf]  ;;  %v3071_v48 = vld [vmem:[%s3502_s23 + $0x5c] sm:$0xf]  ;;  %v2597_v53 = vor.u32 %v3073_v47, %v2596_v46 }
  0x41   : > { %1207 = vmatpush.bf16.msrb.mxu1 %v3151_v49  ;;  %v2598_v49 = vld [vmem:[%s3502_s23 + $0x6c] sm:$0xf0] }
  0x43   : > { %1297 = vmatpush.bf16.msrb.mxu2 %v3158_v50  ;;  %v2604_v50 = vld [vmem:[%s3502_s23 + $0x60] sm:$0xf] }
  0x44   : > { %1386 = vmatpush.bf16.msrb.mxu3 %v3166_v51  ;;  %v3074_v51 = vld [vmem:[%s3502_s23 + $0x70] sm:$0xf0] }
  0x45   : > { %1208 = vmatpush.bf16.msrb.mxu1 %v3150_v52  ;;  %v2593_v52 = vor.u32 %v3070_v44, %v2590_v45 }
  0x47   : > { %1298 = vmatpush.bf16.msrb.mxu2 %v3157_v54  ;;  %v2601_v54 = vor.u32 %v3071_v48, %v2598_v49 }
  0x48   : > { %1387 = vmatpush.bf16.msrb.mxu3 %v3165_v55  ;;  %v2605_v55 = vor.u32 %v3074_v51, %v2604_v50 }
  0x49   : > { %1209 = vmatpush.bf16.msrb.mxu1 %v3149_v56  ;;  %v3075_v56 = vld [vmem:[%s3502_s23 + $0x7c] sm:$0xf] }
  0x4b   : > { %1299 = vmatpush.bf16.msrb.mxu2 %v3156_v57  ;;  %v2610_v57 = vld [vmem:[%s3502_s23 + $0x8c] sm:$0xf0] }
  0x4c   : > { %1388 = vmatpush.bf16.msrb.mxu3 %v3164_v58  ;;  %v2616_v58 = vld [vmem:[%s3502_s23 + $0x80] sm:$0xf]  ;;  %v2613_v0 = vor.u32 %v3075_v56, %v2610_v57  ;;  %v3093_v56 = vld [vmem:[%s3502_s23 + $0x108] sm:$0xf0]  ;;  %v3091_v57 = vld [vmem:[%s3502_s23 + $0xfc] sm:$0xf] }
  0x4d   : > { %1210 = vmatpush.bf16.msrb.mxu1 %v3148_v3  ;;  %v2617_v1 = vor.u32 %v3078_v59, %v2616_v58  ;;  %v2625_v3 = vor.u32 %v3079_v63, %v2624_v62  ;;  %v2678_v58 = vld [vmem:[%s3502_s23 + $0x10c] sm:$0xf0]  ;;  %v2684_v59 = vld [vmem:[%s3502_s23 + $0x100] sm:$0xf] }
  0x4e   : > { %1152 = vmatmul.bf16.gmra.mxu1 %v2669_v4  ;;  %1172 = vmatmul.bf16.gmra.mxu2 %v2749_v5  ;;  %v3662_v4 = vld [vmem:[%s4724_s2] ss:$0 sm:$0xff]  ;;  %v3080_v5 = vld [vmem:[%s3502_s23 + $0xa4] sm:$0xf] }
  0x4f   : > { %1192 = vmatmul.bf16.gmra.mxu3 %v2829_v6  ;;  %v2630_v6 = vld [vmem:[%s3502_s23 + $0xb4] sm:$0xf0] }
  0x50   : > { %1132 = vmatmul.bf16.gmra.mxu0 %v2589_v7  ;;  %v2636_v7 = vld [vmem:[%s3502_s23 + $0xa8] sm:$0xf]  ;;  %v2633_v13 = vor.u32 %v3080_v5, %v2630_v6  ;;  %v2681_v5 = vor.u32 %v3091_v57, %v2678_v58  ;;  %v2685_v6 = vor.u32 %v3094_v60, %v2684_v59  ;;  %v2710_v57 = vld [vmem:[%s3502_s23 + $0x154] sm:$0xf0]  ;;  %v3103_v59 = vld [vmem:[%s3502_s23 + $0x158] sm:$0xf0] }
  0x51   : > { %v2637_v14 = vor.u32 %v3083_v8, %v2636_v7  ;;  %v2716_v58 = vld [vmem:[%s3502_s23 + $0x148] sm:$0xf]  ;;  %v3101_v60 = vld [vmem:[%s3502_s23 + $0x14c] sm:$0xf] }
  0x5e   : > { %1157 = vmatmul.bf16.gmra.mxu1 %v2689_v16  ;;  %1177 = vmatmul.bf16.gmra.mxu2 %v2769_v17  ;;  %v2641_v16 = vor.u32 %v3081_v9, %v2638_v10  ;;  %v2645_v17 = vor.u32 %v3084_v12, %v2644_v11 }
  0x5f   : > { %1197 = vmatmul.bf16.gmra.mxu3 %v2849_v18 }
  0x60   : > { %1137 = vmatmul.bf16.gmra.mxu0 %v2609_v19 }
  0x6e   : > { %1211 = vmatmul.bf16.vlgmr.msrb.gmra.mxu1 %v2553_v28  ;;  %1300 = vmatmul.bf16.vlgmr.msrb.gmra.mxu2 %v2557_v29  ;;  %v2650_v28 = vld [vmem:[%s3502_s23 + $0xdc] sm:$0xf0]  ;;  %v2656_v29 = vld [vmem:[%s3502_s23 + $0xd0] sm:$0xf] }
  0x6f   : > { %1389 = vmatmul.bf16.vlgmr.msrb.gmra.mxu3 %v2561_v30  ;;  %v3088_v30 = vld [vmem:[%s3502_s23 + $0xe0] sm:$0xf0]  ;;  %v2653_v38 = vor.u32 %v3085_v27, %v2650_v28  ;;  %v2698_v27 = vld [vmem:[%s3502_s23 + $0x134] sm:$0xf0]  ;;  %v2704_v28 = vld [vmem:[%s3502_s23 + $0x128] sm:$0xf] }
  0x70   : > { %3010 = vmatmul.msk.bf16.vlgmr.msrb.gmra.mxu0 %vm1065_vm0, %v2565_v31  ;;  %v3086_v31 = vld [vmem:[%s3502_s23 + $0xd4] sm:$0xf]  ;;  %v2657_v39 = vor.u32 %v3088_v30, %v2656_v29  ;;  %v3099_v29 = vld [vmem:[%s3502_s23 + $0x138] sm:$0xf0] }
  0x7e   : > { %1216 = vmatmul.bf16.gmra.mxu1 %v2573_v40  ;;  %1305 = vmatmul.bf16.gmra.mxu2 %v2577_v41 }
  0x7f   : > { %1394 = vmatmul.bf16.gmra.mxu3 %v2581_v42  ;;  %v2661_v42 = vor.u32 %v3086_v31, %v2658_v32 }
  0x80   : > { %3011 = vmatmul.msk.bf16.gmra.mxu0 %vm1065_vm0, %v2585_v43  ;;  %v2665_v43 = vor.u32 %v3089_v34, %v2664_v33 }
  0x8e   : > { %1221 = vmatmul.bf16.gmra.mxu1 %v2593_v52  ;;  %1310 = vmatmul.bf16.gmra.mxu2 %v2597_v53  ;;  %v3090_v53 = vld [vmem:[%s3502_s23 + $0xf4] sm:$0xf] }
  0x8f   : > { %1399 = vmatmul.bf16.gmra.mxu3 %v2601_v54  ;;  %v2670_v54 = vld [vmem:[%s3502_s23 + $0x104] sm:$0xf0] }
  0x90   : > { %3012 = vmatmul.msk.bf16.gmra.mxu0 %vm1065_vm0, %v2605_v55  ;;  %v2676_v55 = vld [vmem:[%s3502_s23 + $0xf8] sm:$0xf] }
  0x9e   : > { %1226 = vmatmul.bf16.gmra.mxu1 %v2613_v0  ;;  %1315 = vmatmul.bf16.gmra.mxu2 %v2617_v1  ;;  %v2673_v0 = vor.u32 %v3090_v53, %v2670_v54  ;;  %v2677_v1 = vor.u32 %v3093_v56, %v2676_v55  ;;  %v3100_v56 = vld [vmem:[%s3502_s23 + $0x144] sm:$0xf] }
  0x9f   : > { %1404 = vmatmul.bf16.gmra.mxu3 %v2621_v2 }
  0xa0   : > { %3013 = vmatmul.msk.bf16.gmra.mxu0 %vm1065_vm0, %v2625_v3 }
  0xab   : > { %v1143_v15 = vpop.f32.mrf.mxu1 }
  0xac   : > { %v3673_v18 = vadd.f32 %v3662_v4, %v1143_v15 }
  0xad   : > { %v3675_v19 = vpop.f32.mrf.mxu0 }
  0xae   : > { %1231 = vmatmul.bf16.gmra.mxu1 %v2633_v13  ;;  %1320 = vmatmul.bf16.gmra.mxu2 %v2637_v14 }
  0xaf   : > { %1409 = vmatmul.bf16.gmra.mxu3 %v2641_v16  ;;  %v3095_v16 = vld [vmem:[%s3502_s23 + $0x11c] sm:$0xf] }
  0xb0   : > { %3014 = vmatmul.msk.bf16.gmra.mxu0 %vm1065_vm0, %v2645_v17  ;;  %v2690_v17 = vld [vmem:[%s3502_s23 + $0x12c] sm:$0xf0] }
  0xb1   : > { %v1163_v20 = vpop.f32.mrf.mxu2  ;;  %v2693_v33 = vor.u32 %v3095_v16, %v2690_v17 }
  0xb2   : > { %v3679_v21 = vadd.f32 %v3662_v4, %v1163_v20  ;;  %v1183_v22 = vpop.f32.mrf.mxu3  ;;  %v2696_v20 = vld [vmem:[%s3502_s23 + $0x120] sm:$0xf] }
  0xb3   : > { %v3682_v23 = vadd.f32 %v3662_v4, %v1183_v22  ;;  %v1145_v24 = vpop.f32.mrf.mxu1  ;;  %v3098_v22 = vld [vmem:[%s3502_s23 + $0x130] sm:$0xf0] }
  0xb4   : > { %v3685_v25 = vadd.f32 %v3662_v4, %v1145_v24  ;;  %v3096_v24 = vld [vmem:[%s3502_s23 + $0x124] sm:$0xf]  ;;  %v2697_v34 = vor.u32 %v3098_v22, %v2696_v20  ;;  %v1124_v22 = vadd.f32 %v3662_v4, %v3675_v19 }
  0xb5   : > { %v3687_v26 = vpop.f32.mrf.mxu0 }
  0xb6   : > { %v1126_v19 = vadd.f32 %v3662_v4, %v3687_v26 }
  0xb9   : > { %v1165_v35 = vpop.f32.mrf.mxu2 }
  0xba   : > { %v3698_v36 = vadd.f32 %v3662_v4, %v1165_v35  ;;  %v1185_v37 = vpop.f32.mrf.mxu3 }
  0xbb   : > { %v3701_v40 = vadd.f32 %v3662_v4, %v1185_v37  ;;  %v1148_v41 = vpop.f32.mrf.mxu1 }
  0xbc   : > { %v3704_v44 = vadd.f32 %v3662_v4, %v1148_v41 }
  0xbd   : > { %v3706_v45 = vpop.f32.mrf.mxu0 }
  0xbe   : > { %1236 = vmatmul.bf16.gmra.mxu1 %v2653_v38  ;;  %1325 = vmatmul.bf16.gmra.mxu2 %v2657_v39  ;;  %v2701_v38 = vor.u32 %v3096_v24, %v2698_v27  ;;  %v2705_v39 = vor.u32 %v3099_v29, %v2704_v28 }
  0xbf   : > { %1414 = vmatmul.bf16.gmra.mxu3 %v2661_v42 }
  0xc0   : > { %3015 = vmatmul.msk.bf16.gmra.mxu0 %vm1065_vm0, %v2665_v43 }
  0xc1   : > { %v1168_v46 = vpop.f32.mrf.mxu2 }
  0xc2   : > { %v3710_v47 = vadd.f32 %v3662_v4, %v1168_v46  ;;  %v1188_v48 = vpop.f32.mrf.mxu3 }
  0xc3   : > { %v3713_v49 = vadd.f32 %v3662_v4, %v1188_v48  ;;  %v1150_v50 = vpop.f32.mrf.mxu1 }
  0xc4   : > { %v3716_v51 = vadd.f32 %v3662_v4, %v1150_v50 }
  0xc5   : > { %v3718_v52 = vpop.f32.mrf.mxu0 }
  0xc9   : > { %v1170_v61 = vpop.f32.mrf.mxu2 }
  0xca   : > { %v3729_v62 = vadd.f32 %v3662_v4, %v1170_v61  ;;  %v1190_v63 = vpop.f32.mrf.mxu3  ;;  %v2718_v61 = vld [vmem:[%s3502_s23 + $0x15c] sm:$0xf0] }
  0xcb   : > { %v3732_v2 = vadd.f32 %v3662_v4, %v1190_v63  ;;  %v1153_v3 = vpop.f32.mrf.mxu1  ;;  %v2724_v63 = vld [vmem:[%s3502_s23 + $0x150] sm:$0xf]  ;;  %v2721_v16 = vor.u32 %v3101_v60, %v2718_v61 }
  0xcc   : > { %v3735_v7 = vadd.f32 %v3662_v4, %v1153_v3 }
  0xcd   : > { %v3737_v8 = vpop.f32.mrf.mxu0 }
  0xce   : > { %1241 = vmatmul.bf16.gmra.mxu1 %v2673_v0  ;;  %1330 = vmatmul.bf16.gmra.mxu2 %v2677_v1  ;;  %v3104_v0 = vld [vmem:[%s3502_s23 + $0x160] sm:$0xf0] }
  0xcf   : > { %1419 = vmatmul.bf16.gmra.mxu3 %v2681_v5  ;;  %v2725_v17 = vor.u32 %v3104_v0, %v2724_v63 }
  0xd0   : > { %3016 = vmatmul.msk.bf16.gmra.mxu0 %vm1065_vm0, %v2685_v6  ;;  %v2713_v6 = vor.u32 %v3100_v56, %v2710_v57  ;;  %v2738_v56 = vld [vmem:[%s3502_s23 + $0x184] sm:$0xf0]  ;;  %v2744_v57 = vld [vmem:[%s3502_s23 + $0x178] sm:$0xf] }
  0xd1   : > { %v1173_v9 = vpop.f32.mrf.mxu2 }
  0xd2   : > { %v3741_v10 = vadd.f32 %v3662_v4, %v1173_v9  ;;  %v1193_v11 = vpop.f32.mrf.mxu3  ;;  %v2717_v9 = vor.u32 %v3103_v59, %v2716_v58  ;;  %v3109_v58 = vld [vmem:[%s3502_s23 + $0x188] sm:$0xf0] }
  0xd3   : > { %v3744_v12 = vadd.f32 %v3662_v4, %v1193_v11  ;;  %v1155_v13 = vpop.f32.mrf.mxu1 }
  0xd4   : > { %v3747_v14 = vadd.f32 %v3662_v4, %v1155_v13 }
  0xd5   : > { %v3749_v15 = vpop.f32.mrf.mxu0 }
  0xd9   : > { %v1175_v30 = vpop.f32.mrf.mxu2 }
  0xda   : > { %v3760_v31 = vadd.f32 %v3662_v4, %v1175_v30  ;;  %v1195_v32 = vpop.f32.mrf.mxu3 }
  0xdb   : > { %v3763_v35 = vadd.f32 %v3662_v4, %v1195_v32  ;;  %v1158_v37 = vpop.f32.mrf.mxu1 }
  0xdc   : > { %v3766_v41 = vadd.f32 %v3662_v4, %v1158_v37  ;;  %v3105_v37 = vld [vmem:[%s3502_s23 + $0x16c] sm:$0xf] }
  0xdd   : > { %v3768_v42 = vpop.f32.mrf.mxu0 }
  0xde   : > { %1246 = vmatmul.bf16.gmra.mxu1 %v2693_v33  ;;  %1335 = vmatmul.bf16.gmra.mxu2 %v2697_v34 }
  0xdf   : > { %1424 = vmatmul.bf16.gmra.mxu3 %v2701_v38  ;;  %v2730_v38 = vld [vmem:[%s3502_s23 + $0x17c] sm:$0xf0] }
  0xe0   : > { %3017 = vmatmul.msk.bf16.gmra.mxu0 %vm1065_vm0, %v2705_v39  ;;  %v2736_v39 = vld [vmem:[%s3502_s23 + $0x170] sm:$0xf]  ;;  %v2733_v63 = vor.u32 %v3105_v37, %v2730_v38  ;;  %v3113_v37 = vld [vmem:[%s3502_s23 + $0x1a8] sm:$0xf0]  ;;  %v3111_v38 = vld [vmem:[%s3502_s23 + $0x19c] sm:$0xf] }
  0xe1   : > { %v1178_v43 = vpop.f32.mrf.mxu2 }
  0xe2   : > { %v3772_v46 = vadd.f32 %v3662_v4, %v1178_v43  ;;  %v1198_v48 = vpop.f32.mrf.mxu3  ;;  %v3108_v43 = vld [vmem:[%s3502_s23 + $0x180] sm:$0xf0] }
  0xe3   : > { %v3775_v50 = vadd.f32 %v3662_v4, %v1198_v48  ;;  %v1160_v53 = vpop.f32.mrf.mxu1  ;;  %v3106_v48 = vld [vmem:[%s3502_s23 + $0x174] sm:$0xf]  ;;  %v2737_v26 = vor.u32 %v3108_v43, %v2736_v39  ;;  %v2758_v43 = vld [vmem:[%s3502_s23 + $0x1ac] sm:$0xf0] }
  0xe4   : > { %v3778_v54 = vadd.f32 %v3662_v4, %v1160_v53 }
  0xe5   : > { %v3780_v55 = vpop.f32.mrf.mxu0 }
  0xe9   : > { %v1180_v1 = vpop.f32.mrf.mxu2 }
  0xea   : > { %v3791_v3 = vadd.f32 %v3662_v4, %v1180_v1  ;;  %v1200_v5 = vpop.f32.mrf.mxu3  ;;  %v2741_v1 = vor.u32 %v3106_v48, %v2738_v56  ;;  %v2764_v48 = vld [vmem:[%s3502_s23 + $0x1a0] sm:$0xf] }
  0xeb   : > { %v3794_v11 = vadd.f32 %v3662_v4, %v1200_v5  ;;  %v1212_v13 = vpop.f32.mrf.mxu1  ;;  %v2745_v5 = vor.u32 %v3109_v58, %v2744_v57 }
  0xec   : > { %v1213_v24 = vadd.f32 %v1212_v13, %v1124_v22  ;;  %v1129_v13 = vadd.f32 %v3662_v4, %v3706_v45 }
  0xed   : > { %v1479_v20 = vpop.f32.mrf.mxu0 }
  0xee   : > { %1251 = vmatmul.bf16.gmra.mxu1 %v2713_v6  ;;  %1340 = vmatmul.bf16.gmra.mxu2 %v2717_v9 }
  0xef   : > { %1429 = vmatmul.bf16.gmra.mxu3 %v2721_v16 }
  0xf0   : > { %3018 = vmatmul.msk.bf16.gmra.mxu0 %vm1065_vm0, %v2725_v17 }
  0xf1   : > { %v1301_v27 = vpop.f32.mrf.mxu2 }
  0xf2   : > { %v1302_v28 = vadd.f32 %v1301_v27, %v1213_v24  ;;  %v1390_v29 = vpop.f32.mrf.mxu3 }
  0xf3   : > { %v1214_v30 = vpop.f32.mrf.mxu1 }
  0xf4   : > { %v1391_v32 = vadd.f32 %v1390_v29, %v1302_v28  ;;  %v1215_v53 = vadd.f32 %v1214_v30, %v1126_v19  ;;  %v1131_v29 = vadd.f32 %v3662_v4, %v3718_v52  ;;  %v2756_v19 = vld [vmem:[%s3502_s23 + $0x198] sm:$0xf] }
  0xf5   : > { %v1481_v33 = vpop.f32.mrf.mxu0 }
  0xf6   : > { %v3801_v34 = vadd.f32 %v1479_v20, %v1391_v32  ;;  %v3110_v32 = vld [vmem:[%s3502_s23 + $0x194] sm:$0xf] }
  0xf8   : > { %2263 = vrot.lane.b32.xlu0 %v3801_v34, %s3413_s5 }
  0xf9   : > { %v1303_v59 = vpop.f32.mrf.mxu2 }
  0xfa   : > { %v1304_v60 = vadd.f32 %v1303_v59, %v1215_v53  ;;  %v1392_v61 = vpop.f32.mrf.mxu3  ;;  %v3114_v53 = vld [vmem:[%s3502_s23 + $0x1b0] sm:$0xf0] }
  0xfb   : > { %v1217_v0 = vpop.f32.mrf.mxu1 }
  0xfc   : > { %v1393_v6 = vadd.f32 %v1392_v61, %v1304_v60  ;;  %v1218_v17 = vadd.f32 %v1217_v0, %v1129_v13  ;;  %v2757_v60 = vor.u32 %v3113_v37, %v2756_v19  ;;  %v2761_v61 = vor.u32 %v3111_v38, %v2758_v43  ;;  %v2778_v37 = vld [vmem:[%s3502_s23 + $0x1d4] sm:$0xf0]  ;;  %v2784_v38 = vld [vmem:[%s3502_s23 + $0x1c8] sm:$0xf] }
  0xfd   : > { %v1484_v9 = vpop.f32.mrf.mxu0 }
  0xfe   : > { %v3815_v16 = vadd.f32 %v1481_v33, %v1393_v6  ;;  %1256 = vmatmul.bf16.gmra.mxu1 %v2733_v63  ;;  %1345 = vmatmul.bf16.gmra.mxu2 %v2737_v26  ;;  %v2750_v33 = vld [vmem:[%s3502_s23 + $0x1a4] sm:$0xf0]  ;;  %v2765_v63 = vor.u32 %v3114_v53, %v2764_v48 }
  0xff   : > { %1434 = vmatmul.bf16.gmra.mxu3 %v2741_v1  ;;  %v2753_v59 = vor.u32 %v3110_v32, %v2750_v33  ;;  %v1134_v1 = vadd.f32 %v3662_v4, %v3737_v8  ;;  %v3118_v32 = vld [vmem:[%s3502_s23 + $0x1d0] sm:$0xf0]  ;;  %v3116_v33 = vld [vmem:[%s3502_s23 + $0x1c4] sm:$0xf] }
 0x100   : > { %3019 = vmatmul.msk.bf16.gmra.mxu0 %vm1065_vm0, %v2745_v5  ;;  %2265 = vrot.lane.b32.xlu0 %v3815_v16, %s3413_s5 }
 0x101   : > { %v1306_v20 = vpop.f32.mrf.mxu2 }
 0x102   : > { %v1307_v45 = vadd.f32 %v1306_v20, %v1218_v17  ;;  %v1395_v22 = vpop.f32.mrf.mxu3 }
 0x103   : > { %v1219_v24 = vpop.f32.mrf.mxu1 }
 0x104   : > { %v1396_v27 = vadd.f32 %v1395_v22, %v1307_v45  ;;  %v1220_v39 = vadd.f32 %v1219_v24, %v1131_v29  ;;  %v1136_v22 = vadd.f32 %v3662_v4, %v3749_v15  ;;  %v2776_v29 = vld [vmem:[%s3502_s23 + $0x1c0] sm:$0xf] }
 0x105   : > { %v1486_v28 = vpop.f32.mrf.mxu0 }
 0x106   : > { %v3822_v30 = vadd.f32 %v1484_v9, %v1396_v27  ;;  %v3115_v27 = vld [vmem:[%s3502_s23 + $0x1bc] sm:$0xf] }
 0x108   : > { %2267 = vrot.lane.b32.xlu1 %v3822_v30, %s3413_s5 }
 0x109   : > { %v1308_v56 = vpop.f32.mrf.mxu2 }
 0x10a   : > { %v1309_v57 = vadd.f32 %v1308_v56, %v1220_v39  ;;  %v1397_v58 = vpop.f32.mrf.mxu3  ;;  %v3119_v39 = vld [vmem:[%s3502_s23 + $0x1d8] sm:$0xf0] }
 0x10b   : > { %v1222_v52 = vpop.f32.mrf.mxu1 }
 0x10c   : > { %v1398_v26 = vadd.f32 %v1397_v58, %v1309_v57  ;;  %v1223_v6 = vadd.f32 %v1222_v52, %v1134_v1  ;;  %v2777_v57 = vor.u32 %v3118_v32, %v2776_v29  ;;  %v2781_v58 = vor.u32 %v3116_v33, %v2778_v37  ;;  %v2798_v32 = vld [vmem:[%s3502_s23 + $0x1fc] sm:$0xf0]  ;;  %v2804_v33 = vld [vmem:[%s3502_s23 + $0x1f0] sm:$0xf] }
 0x10d   : > { %v1489_v0 = vpop.f32.mrf.mxu0 }
 0x10e   : > { %v3836_v5 = vadd.f32 %v1486_v28, %v1398_v26  ;;  %1261 = vmatmul.bf16.gmra.mxu1 %v2753_v59  ;;  %1350 = vmatmul.bf16.gmra.mxu2 %v2757_v60  ;;  %v2770_v28 = vld [vmem:[%s3502_s23 + $0x1cc] sm:$0xf0]  ;;  %v2785_v59 = vor.u32 %v3119_v39, %v2784_v38 }
 0x10f   : > { %1439 = vmatmul.bf16.gmra.mxu3 %v2761_v61  ;;  %v2773_v56 = vor.u32 %v3115_v27, %v2770_v28  ;;  %v1139_v61 = vadd.f32 %v3662_v4, %v3768_v42  ;;  %v3123_v27 = vld [vmem:[%s3502_s23 + $0x1f8] sm:$0xf0]  ;;  %v3121_v28 = vld [vmem:[%s3502_s23 + $0x1ec] sm:$0xf] }
 0x110   : > { %3020 = vmatmul.msk.bf16.gmra.mxu0 %vm1065_vm0, %v2765_v63  ;;  %2269 = vrot.lane.b32.xlu1 %v3836_v5, %s3413_s5 }
 0x111   : > { %v1311_v9 = vpop.f32.mrf.mxu2 }
 0x112   : > { %v1312_v8 = vadd.f32 %v1311_v9, %v1223_v6  ;;  %v1400_v13 = vpop.f32.mrf.mxu3 }
 0x113   : > { %v1224_v17 = vpop.f32.mrf.mxu1 }
 0x114   : > { %v1401_v20 = vadd.f32 %v1400_v13, %v1312_v8  ;;  %v1225_v19 = vadd.f32 %v1224_v17, %v1136_v22  ;;  %v1141_v13 = vadd.f32 %v3662_v4, %v3780_v55  ;;  %v2796_v22 = vld [vmem:[%s3502_s23 + $0x1e8] sm:$0xf]  ;;  %v2801_v55 = vor.u32 %v3121_v28, %v2798_v32 }
 0x115   : > { %v1491_v45 = vpop.f32.mrf.mxu0 }
 0x116   : > { %v3843_v24 = vadd.f32 %v1489_v0, %v1401_v20  ;;  %v3120_v20 = vld [vmem:[%s3502_s23 + $0x1e4] sm:$0xf] }
 0x118   : > { %2271 = vrot.lane.b32.xlu2 %v3843_v24, %s3413_s5 }
 0x119   : > { %v1313_v43 = vpop.f32.mrf.mxu2 }
 0x11a   : > { %v1314_v48 = vadd.f32 %v1313_v43, %v1225_v19  ;;  %v1402_v53 = vpop.f32.mrf.mxu3  ;;  %v3124_v19 = vld [vmem:[%s3502_s23 + $0x200] sm:$0xf0] }
 0x11b   : > { %v1227_v15 = vpop.f32.mrf.mxu1 }
 0x11c   : > { %v1403_v60 = vadd.f32 %v1402_v53, %v1314_v48  ;;  %v1228_v26 = vadd.f32 %v1227_v15, %v1139_v61  ;;  %v2797_v48 = vor.u32 %v3123_v27, %v2796_v22  ;;  %v2805_v53 = vor.u32 %v3124_v19, %v2804_v33  ;;  %v2824_v22 = vld [vmem:[%s3502_s23 + $0x218] sm:$0xf]  ;;  %v3129_v27 = vld [vmem:[%s3502_s23 + $0x228] sm:$0xf0] }
 0x11d   : > { %v1494_v52 = vpop.f32.mrf.mxu0 }
 0x11e   : > { %v3857_v63 = vadd.f32 %v1491_v45, %v1403_v60  ;;  %1266 = vmatmul.bf16.gmra.mxu1 %v2773_v56  ;;  %1355 = vmatmul.bf16.gmra.mxu2 %v2777_v57  ;;  %v2790_v45 = vld [vmem:[%s3502_s23 + $0x1f4] sm:$0xf0] }
 0x11f   : > { %1444 = vmatmul.bf16.gmra.mxu3 %v2781_v58  ;;  %v2793_v43 = vor.u32 %v3120_v20, %v2790_v45  ;;  %v2818_v45 = vld [vmem:[%s3502_s23 + $0x224] sm:$0xf0] }
 0x120   : > { %3021 = vmatmul.msk.bf16.gmra.mxu0 %vm1065_vm0, %v2785_v59  ;;  %2273 = vrot.lane.b32.xlu2 %v3857_v63, %s3413_s5 }
 0x121   : > { %v1316_v0 = vpop.f32.mrf.mxu2 }
 0x122   : > { %v1317_v42 = vadd.f32 %v1316_v0, %v1228_v26  ;;  %v1405_v1 = vpop.f32.mrf.mxu3 }
 0x123   : > { %v1229_v6 = vpop.f32.mrf.mxu1 }
 0x124   : > { %v1406_v9 = vadd.f32 %v1405_v1, %v1317_v42  ;;  %v1230_v29 = vadd.f32 %v1229_v6, %v1141_v13  ;;  %v3026_v42 = vmul.f32 -1.442695, %v3801_v34  ;;  %v3125_v6 = vld [vmem:[%s3502_s23 + $0x20c] sm:$0xf]  ;;  %v3126_v13 = vld [vmem:[%s3502_s23 + $0x214] sm:$0xf] }
 0x125   : > { %v1496_v8 = vpop.f32.mrf.mxu0 }
 0x126   : > { %v3864_v17 = vadd.f32 %v1494_v52, %v1406_v9  ;;  %v2810_v9 = vld [vmem:[%s3502_s23 + $0x21c] sm:$0xf0]  ;;  %3245 = vpow2.f32 %v3026_v42  ;;  %v2836_v42 = vld [vmem:[%s3502_s23 + $0x238] sm:$0xf] }
 0x127   : > { %v2813_v33 = vor.u32 %v3125_v6, %v2810_v9  ;;  %v3131_v6 = vld [vmem:[%s3502_s23 + $0x23c] sm:$0xf] }
 0x128   : > { %2275 = vrot.lane.b32.xlu0 %v3864_v17, %s3413_s5 }
 0x129   : > { %v1318_v37 = vpop.f32.mrf.mxu2 }
 0x12a   : > { %v1319_v38 = vadd.f32 %v1318_v37, %v1230_v29  ;;  %v1407_v39 = vpop.f32.mrf.mxu3  ;;  %v2821_v37 = vor.u32 %v3126_v13, %v2818_v45  ;;  %v3134_v13 = vld [vmem:[%s3502_s23 + $0x250] sm:$0xf0] }
 0x12b   : > { %v1232_v4 = vpop.f32.mrf.mxu1 }
 0x12c   : > { %v1408_v56 = vadd.f32 %v1407_v39, %v1319_v38  ;;  %v1233_v58 = vadd.f32 %v1232_v4, %v3673_v18  ;;  %v3128_v18 = vld [vmem:[%s3502_s23 + $0x220] sm:$0xf0]  ;;  %v2825_v38 = vor.u32 %v3129_v27, %v2824_v22  ;;  %v3246_v4 = vpop.eup %3245 }
 0x12d   : > { %v1499_v57 = vpop.f32.mrf.mxu0 }
 0x12e   : > { %v3876_v15 = vadd.f32 %v1496_v8, %v1408_v56  ;;  %1271 = vmatmul.bf16.gmra.mxu1 %v2793_v43  ;;  %1360 = vmatmul.bf16.gmra.mxu2 %v2797_v48  ;;  %v2816_v8 = vld [vmem:[%s3502_s23 + $0x210] sm:$0xf]  ;;  %v3027_v56 = vmul.f32 -1.442695, %v3815_v16  ;;  %v3133_v16 = vld [vmem:[%s3502_s23 + $0x248] sm:$0xf0] }
 0x12f   : > { %1449 = vmatmul.bf16.gmra.mxu3 %v2801_v55  ;;  %v2817_v34 = vor.u32 %v3128_v18, %v2816_v8  ;;  %v3030_v55 = vmul.f32 -1.442695, %v3843_v24  ;;  %v2838_v8 = vld [vmem:[%s3502_s23 + $0x24c] sm:$0xf0]  ;;  %v2844_v18 = vld [vmem:[%s3502_s23 + $0x240] sm:$0xf] }
 0x130   : > { %3022 = vmatmul.msk.bf16.gmra.mxu0 %vm1065_vm0, %v2805_v53  ;;  %2277 = vrot.lane.b32.xlu1 %v3876_v15, %s3413_s5 }
 0x131   : > { %v1321_v59 = vpop.f32.mrf.mxu2  ;;  %3247 = vpow2.f32 %v3030_v55 }
 0x132   : > { %v1322_v60 = vadd.f32 %v1321_v59, %v1233_v58  ;;  %v1410_v52 = vpop.f32.mrf.mxu3  ;;  %3249 = vpow2.f32 %v3027_v56  ;;  %v3029_v56 = vmul.f32 -1.442695, %v3836_v5 }
 0x133   : > { %v1234_v61 = vpop.f32.mrf.mxu1 }
 0x134   : > { %v1411_v26 = vadd.f32 %v1410_v52, %v1322_v60  ;;  %v1235_v20 = vadd.f32 %v1234_v61, %v3685_v25  ;;  %v3904_v60 = vadd.f32 1.0, %v3246_v4  ;;  %v3028_v61 = vmul.f32 -1.442695, %v3822_v30 }
 0x135   : > { %v1501_v0 = vpop.f32.mrf.mxu0 }
 0x136   : > { %v3883_v1 = vadd.f32 %v1499_v57, %v1411_v26  ;;  %v3130_v26 = vld [vmem:[%s3502_s23 + $0x234] sm:$0xf]  ;;  %3251 = vrcp.f32 %v3904_v60  ;;  %vm1692_vm2 = vweird.f32 %v3904_v60 }
 0x137   : > { %3253 = vpow2.f32 %v3028_v61 }
 0x138   : > { %2279 = vrot.lane.b32.xlu2 %v3883_v1, %s3413_s5 }
 0x139   : > { %v1323_v28 = vpop.f32.mrf.mxu2 }
 0x13a   : > { %v1324_v29 = vadd.f32 %v1323_v28, %v1235_v20  ;;  %v1412_v32 = vpop.f32.mrf.mxu3  ;;  %v3031_v20 = vmul.f32 -1.442695, %v3857_v63  ;;  %v2837_v28 = vor.u32 %v3133_v16, %v2836_v42  ;;  %v3135_v42 = vld [vmem:[%s3502_s23 + $0x25c] sm:$0xf]  ;;  %v2850_v16 = vld [vmem:[%s3502_s23 + $0x26c] sm:$0xf0] }
 0x13b   : > { %v1237_v19 = vpop.f32.mrf.mxu1 }
 0x13c   : > { %v1413_v39 = vadd.f32 %v1412_v32, %v1324_v29  ;;  %v1238_v25 = vadd.f32 %v1237_v19, %v3704_v44  ;;  %v3248_v29 = vpop.eup %3247  ;;  %3255 = vpow2.f32 %v3031_v20  ;;  %v2858_v20 = vld [vmem:[%s3502_s23 + $0x274] sm:$0xf0] }
 0x13d   : > { %v1504_v43 = vpop.f32.mrf.mxu0  ;;  %v3250_v19 = vpop.eup %3249 }
 0x13e   : > { %v3896_v48 = vadd.f32 %v1501_v0, %v1413_v39  ;;  %1276 = vmatmul.bf16.gmra.mxu1 %v2813_v33  ;;  %1365 = vmatmul.bf16.gmra.mxu2 %v2817_v34  ;;  %v2830_v0 = vld [vmem:[%s3502_s23 + $0x244] sm:$0xf0]  ;;  %v2841_v33 = vor.u32 %v3131_v6, %v2838_v8  ;;  %v2845_v34 = vor.u32 %v3134_v13, %v2844_v18  ;;  %v3924_v39 = vadd.f32 1.0, %v3248_v29  ;;  %v2856_v6 = vld [vmem:[%s3502_s23 + $0x260] sm:$0xf] }
 0x13f   : > { %1454 = vmatmul.bf16.gmra.mxu3 %v2821_v37  ;;  %v2833_v27 = vor.u32 %v3130_v26, %v2830_v0  ;;  %v3928_v63 = vadd.f32 1.0, %v3250_v19  ;;  %v3136_v8 = vld [vmem:[%s3502_s23 + $0x264] sm:$0xf] }
 0x140   : > { %3023 = vmatmul.msk.bf16.gmra.mxu0 %vm1065_vm0, %v2825_v38  ;;  %2281 = vrot.lane.b32.xlu0 %v3896_v48, %s3413_s5  ;;  %v3922_v38 = vpop.eup %3251  ;;  %3257 = vrcp.f32 %v3924_v39  ;;  %v2861_v19 = vor.u32 %v3136_v8, %v2858_v20  ;;  %vm1752_vm7 = vweird.f32 %v3924_v39 }
 0x141   : > { %v1326_v53 = vpop.f32.mrf.mxu2  ;;  %v1688_v55 = vmul.f32 %v3922_v38, %v3904_v60  ;;  %3259 = vrcp.f32 %v3928_v63  ;;  %vm1693_vm1 = vweird.f32 %v3922_v38  ;;  %vm1707_vm10 = vweird.f32 %v3928_v63 }
 0x142   : > { %v1327_v57 = vadd.f32 %v1326_v53, %v1238_v25  ;;  %v1415_v58 = vpop.f32.mrf.mxu3  ;;  %v3254_v53 = vpop.eup %3253  ;;  %3261 = vpow2.f32 %v3029_v56  ;;  %vm3991_vm3 = vmor %vm1692_vm2, %vm1693_vm1 }
 0x143   : > { %v1239_v59 = vpop.f32.mrf.mxu1  ;;  %v3939_v61 = vadd.f32 1.0, %v3254_v53  ;;  %v1689_v26 = vsub.f32 1.0, %v1688_v55 }
 0x144   : > { %v1416_v44 = vadd.f32 %v1415_v58, %v1327_v57  ;;  %v1240_v9 = vadd.f32 %v1239_v59, %v3716_v51 }
 0x145   : > { %v1506_v52 = vpop.f32.mrf.mxu0  ;;  %3263 = vrcp.f32 %v3939_v61  ;;  %vm1722_vm14 = vweird.f32 %v3939_v61 }
 0x146   : > { %v3907_v24 = vadd.f32 %v1504_v43, %v1416_v44 }
 0x148   : > { %2283 = vrot.lane.b32.xlu1 %v3907_v24, %s3413_s5 }
 0x149   : > { %v1328_v30 = vpop.f32.mrf.mxu2 }
 0x14a   : > { %v1329_v45 = vadd.f32 %v1328_v30, %v1240_v9  ;;  %v1417_v22 = vpop.f32.mrf.mxu3  ;;  %v3138_v9 = vld [vmem:[%s3502_s23 + $0x270] sm:$0xf0]  ;;  %v2864_v30 = vld [vmem:[%s3502_s23 + $0x268] sm:$0xf] }
 0x14b   : > { %v1242_v32 = vpop.f32.mrf.mxu1 }
 0x14c   : > { %v1418_v51 = vadd.f32 %v1417_v22, %v1329_v45  ;;  %v1243_v25 = vadd.f32 %v1242_v32, %v3735_v7  ;;  %v3256_v7 = vpop.eup %3255  ;;  %v3139_v45 = vld [vmem:[%s3502_s23 + $0x278] sm:$0xf0] }
 0x14d   : > { %v1509_v37 = vpop.f32.mrf.mxu0  ;;  %v3941_v5 = vadd.f32 1.0, %v3256_v7  ;;  %v3950_v18 = vpop.eup %3257 }
 0x14e   : > { %v3926_v43 = vadd.f32 %v1506_v52, %v1418_v51  ;;  %1281 = vmatmul.bf16.gmra.mxu1 %v2833_v27  ;;  %1370 = vmatmul.bf16.gmra.mxu2 %v2837_v28  ;;  %v3958_v22 = vpop.eup %3259  ;;  %v1690_v28 = vmul.f32 %v3922_v38, %v1689_v26  ;;  %v2865_v51 = vor.u32 %v3139_v45, %v2864_v30  ;;  %v1698_v26 = vand.u32 2147483648, %v3904_v60 }
 0x14f   : > { %1459 = vmatmul.bf16.gmra.mxu3 %v2841_v33  ;;  %3265 = vrcp.f32 %v3941_v5  ;;  %v2857_v33 = vor.u32 %v3138_v9, %v2856_v6  ;;  %v1703_v53 = vmul.f32 %v3958_v22, %v3928_v63  ;;  %vm1753_vm5 = vweird.f32 %v3950_v18 }
 0x150   : > { %3024 = vmatmul.msk.bf16.gmra.mxu0 %vm1065_vm0, %v2845_v34  ;;  %2285 = vrot.lane.b32.xlu2 %v3926_v43, %s3413_s5  ;;  %vm1708_vm6 = vweird.f32 %v3958_v22  ;;  %vm4040_vm9 = vmor %vm1752_vm7, %vm1753_vm5  ;;  %vm1767_vm1 = vweird.f32 %v3941_v5 }
 0x151   : > { %v1331_v4 = vpop.f32.mrf.mxu2  ;;  %vm4054_vm12 = vmor %vm1707_vm10, %vm1708_vm6 }
 0x152   : > { %v1332_v57 = vadd.f32 %v1331_v4, %v1243_v25  ;;  %v1420_v58 = vpop.f32.mrf.mxu3  ;;  %v3262_v25 = vpop.eup %3261 }
 0x153   : > { %v1244_v59 = vpop.f32.mrf.mxu1  ;;  %v3977_v7 = vadd.f32 1.0, %v3262_v25 }
 0x154   : > { %v1421_v44 = vadd.f32 %v1420_v58, %v1332_v57  ;;  %v1245_v13 = vadd.f32 %v1244_v59, %v3747_v14  ;;  %v2853_v14 = vor.u32 %v3135_v42, %v2850_v16  ;;  %v1691_v57 = vadd.f32 %v3922_v38, %v1690_v28  ;;  %v3975_v58 = vpop.eup %3263 }
 0x155   : > { %v1511_v52 = vpop.f32.mrf.mxu0  ;;  %v1704_v42 = vsub.f32 1.0, %v1703_v53  ;;  %v3034_v16 = vmul.f32 -1.442695, %v3883_v1  ;;  %3267 = vrcp.f32 %v3977_v7  ;;  %v1718_v45 = vmul.f32 %v3975_v58, %v3939_v61 }
 0x156   : > { %v3943_v0 = vadd.f32 %v1509_v37, %v1421_v44  ;;  %v1748_v37 = vmul.f32 %v3950_v18, %v3924_v39  ;;  %v3980_v44 = vpop.eup %3265  ;;  %v1695_v20 = vsel %vm3991_vm3, %v3922_v38, %v1691_v57  ;;  %v1699_v28 = vor.u32 1.1754944e-38, %v1698_v26 }
 0x157   : > { %3269 = vpow2.f32 %v3034_v16  ;;  %v1719_v25 = vsub.f32 1.0, %v1718_v45  ;;  %vm1723_vm15 = vweird.f32 %v3975_v58  ;;  %vm1737_vm7 = vweird.f32 %v3977_v7 }
 0x158   : > { %2287 = vrot.lane.b32.xlu0 %v3943_v0, %s3413_s5  ;;  %v1749_v59 = vsub.f32 1.0, %v1748_v37  ;;  %vm4092_vm2 = vmor %vm1722_vm14, %vm1723_vm15 }
 0x159   : > { %v1333_v27 = vpop.f32.mrf.mxu2 }
 0x15a   : > { %v1334_v29 = vadd.f32 %v1333_v27, %v1245_v13  ;;  %v1422_v32 = vpop.f32.mrf.mxu3  ;;  %v1750_v1 = vmul.f32 %v3950_v18, %v1749_v59  ;;  %v3032_v59 = vmul.f32 -1.442695, %v3864_v17 }
 0x15b   : > { %v1247_v34 = vpop.f32.mrf.mxu1  ;;  %v4026_v57 = vpop.eup %3267 }
 0x15c   : > { %v1423_v4 = vadd.f32 %v1422_v32, %v1334_v29  ;;  %v1705_v29 = vmul.f32 %v3958_v22, %v1704_v42  ;;  %v1756_v42 = vand.u32 2147483647, %v3924_v39  ;;  %3271 = vpow2.f32 %v3032_v59 }
 0x15d   : > { %v1514_v55 = vpop.f32.mrf.mxu0  ;;  %v3270_v9 = vpop.eup %3269  ;;  %vm1738_vm6 = vweird.f32 %v4026_v57 }
 0x15e   : > { %v3971_v56 = vadd.f32 %v1511_v52, %v1423_v4  ;;  %1286 = vmatmul.bf16.gmra.mxu1 %v2853_v14  ;;  %1375 = vmatmul.bf16.gmra.mxu2 %v2857_v33  ;;  %v1248_v52 = vadd.f32 %v1247_v34, %v3766_v41  ;;  %v1696_v41 = vand.u32 2147483647, %v3904_v60  ;;  %v1763_v60 = vmul.f32 %v3980_v44, %v3941_v5  ;;  %v2167_v14 = vld [vmem:[%s4005_s8] sm:$0xff] }
 0x15f   : > { %1464 = vmatmul.bf16.gmra.mxu3 %v2861_v19  ;;  %v1711_v34 = vand.u32 2147483647, %v3928_v63  ;;  %v1713_v19 = vand.u32 2147483648, %v3928_v63  ;;  %v1706_v53 = vadd.f32 %v3958_v22, %v1705_v29  ;;  %vm1757_vm13 = vcmp.eq.f32.partialorder %v1756_v42, 8.507059e+37 }
 0x160   : > { %3025 = vmatmul.msk.bf16.gmra.mxu0 %vm1065_vm0, %v2865_v51  ;;  %2289 = vrot.lane.b32.xlu1 %v3971_v56, %s3413_s5  ;;  %vm1697_vm4 = vcmp.eq.f32.partialorder %v1696_v41, 8.507059e+37  ;;  %v1751_v51 = vadd.f32 %v3950_v18, %v1750_v1  ;;  %v1764_v37 = vsub.f32 1.0, %v1763_v60  ;;  %v4068_v29 = vadd.f32 1.0, %v3270_v9 }
 0x161   : > { %v1336_v6 = vpop.f32.mrf.mxu2  ;;  %v1700_v33 = vsel %vm1697_vm4, %v1699_v28, %v1695_v20  ;;  %vm4045_vm11 = vcmp.eq.f32.partialorder %v1711_v34, 8.507059e+37  ;;  %v1714_v28 = vor.u32 1.1754944e-38, %v1713_v19  ;;  %vm1768_vm0 = vweird.f32 %v3980_v44 }
 0x162   : > { %v1337_v8 = vadd.f32 %v1336_v6, %v1248_v52  ;;  %v1425_v13 = vpop.f32.mrf.mxu3  ;;  %v2199_v26 = vmul.f32 %v2167_v14, %v1700_v33  ;;  %v1765_v63 = vmul.f32 %v3980_v44, %v1764_v37  ;;  %v2171_v33 = vld [vmem:[%s4005_s8 + $0x20] sm:$0xff]  ;;  %3273 = vrcp.f32 %v4068_v29  ;;  %vm4099_vm3 = vmor %vm1767_vm1, %vm1768_vm0  ;;  %v3272_v17 = vpop.eup %3271 }
 0x163   : > { %v1249_v30 = vpop.f32.mrf.mxu1 }
 0x164   : > { %v1426_v27 = vadd.f32 %v1425_v13, %v1337_v8  ;;  %v1250_v4 = vadd.f32 %v1249_v30, %v3778_v54  ;;  %v1755_v13 = vsel %vm4040_vm9, %v3950_v18, %v1751_v51  ;;  %v1720_v30 = vmul.f32 %v3975_v58, %v1719_v25  ;;  %v2168_v51 = vld [vmem:[%s4005_s8 + $0x8] sm:$0xff]  ;;  %vm1739_vm9 = vmor %vm1737_vm7, %vm1738_vm6 }
 0x165   : > { %v1516_v38 = vpop.f32.mrf.mxu0  ;;  %v1733_v18 = vmul.f32 %v4026_v57, %v3977_v7  ;;  %v1766_v37 = vadd.f32 %v3980_v44, %v1765_v63 }
 0x166   : > { %v4013_v32 = vadd.f32 %v1514_v55, %v1426_v27  ;;  %v1758_v55 = vand.u32 2147483648, %v3924_v39  ;;  %v1710_v27 = vsel %vm4054_vm12, %v3958_v22, %v1706_v53  ;;  %v1721_v19 = vadd.f32 %v3975_v58, %v1720_v30 }
 0x167   : > { %v1715_v22 = vsel %vm4045_vm11, %v1714_v28, %v1710_v27  ;;  %v3033_v53 = vmul.f32 -1.442695, %v3876_v15  ;;  %v4113_v27 = vadd.f32 1.0, %v3272_v17  ;;  %v2169_v28 = vld [vmem:[%s4005_s8 + $0x10] sm:$0xff]  ;;  %vm1812_vm12 = vweird.f32 %v4068_v29 }
 0x168   : > { %2291 = vrot.lane.b32.xlu2 %v4013_v32, %s3413_s5  ;;  %v1759_v45 = vor.u32 1.1754944e-38, %v1758_v55  ;;  %v1734_v55 = vsub.f32 1.0, %v1733_v18  ;;  %v2200_v15 = vmul.f32 %v2168_v51, %v1715_v22 }
 0x169   : > { %v1338_v52 = vpop.f32.mrf.mxu2  ;;  %3275 = vpow2.f32 %v3033_v53  ;;  %v1741_v53 = vand.u32 2147483647, %v3977_v7  ;;  %vm1782_vm0 = vweird.f32 %v4113_v27 }
 0x16a   : > { %v1339_v54 = vadd.f32 %v1338_v52, %v1250_v4  ;;  %v1427_v16 = vpop.f32.mrf.mxu3  ;;  %v2264_v6 = vpop.permute.xlu0 %2263  ;;  %v1760_v34 = vsel %vm1757_vm13, %v1759_v45, %v1755_v13  ;;  %v1728_v4 = vand.u32 2147483648, %v3939_v61  ;;  %v1725_v13 = vsel %vm4092_vm2, %v3975_v58, %v1721_v19  ;;  %v2172_v58 = vld [vmem:[%s4005_s8 + $0x28] sm:$0xff] }
 0x16b   : > { %v2359_v41 = vadd.f32 %v2264_v6, %v2199_v26  ;;  %v1252_v8 = vpop.f32.mrf.mxu1  ;;  %v2203_v52 = vmul.f32 %v2171_v33, %v1760_v34  ;;  %v1771_v26 = vand.u32 2147483647, %v3941_v5  ;;  %v4121_v34 = vpop.eup %3273  ;;  %3277 = vrcp.f32 %v4113_v27 }
 0x16c   : > { %v1428_v1 = vadd.f32 %v1427_v16, %v1339_v54  ;;  %v1253_v25 = vadd.f32 %v1252_v8, %v3679_v21  ;;  %v1770_v8 = vsel %vm4099_vm3, %v3980_v44, %v1766_v37  ;;  %v1729_v45 = vor.u32 1.1754944e-38, %v1728_v4 }
 0x16d   : > { %v1519_v60 = vpop.f32.mrf.mxu0  ;;  %2392 = vst.msk [vmem:[%s4036_s11] sm:$0xff] %vm2391_vm8, %v2359_v41  ;;  %vm1772_vm4 = vcmp.eq.f32.partialorder %v1771_v26, 8.507059e+37  ;;  %v1808_v21 = vmul.f32 %v4121_v34, %v4068_v29  ;;  %vm1742_vm10 = vcmp.eq.f32.partialorder %v1741_v53, 8.507059e+37  ;;  %vm1813_vm11 = vweird.f32 %v4121_v34 }
 0x16e   : > { %v4070_v14 = vadd.f32 %v1516_v38, %v1428_v1  ;;  %v1773_v38 = vand.u32 2147483648, %v3941_v5  ;;  %v1726_v5 = vand.u32 2147483647, %v3939_v61  ;;  %v1735_v61 = vmul.f32 %v4026_v57, %v1734_v55  ;;  %vm1814_vm13 = vmor %vm1812_vm12, %vm1813_vm11 }
 0x170   : > { %2293 = vrot.lane.b32.xlu0 %v4070_v14, %s3413_s5  ;;  %v1774_v1 = vor.u32 1.1754944e-38, %v1773_v38  ;;  %vm1727_vm5 = vcmp.eq.f32.partialorder %v1726_v5, 8.507059e+37  ;;  %v1736_v51 = vadd.f32 %v4026_v57, %v1735_v61 }
 0x171   : > { %v1341_v59 = vpop.f32.mrf.mxu2  ;;  %v1730_v33 = vsel %vm1727_vm5, %v1729_v45, %v1725_v13 }
 0x172   : > { %v1342_v42 = vadd.f32 %v1341_v59, %v1253_v25  ;;  %v1430_v54 = vpop.f32.mrf.mxu3  ;;  %v2272_v16 = vpop.permute.xlu2 %2271  ;;  %v1775_v44 = vsel %vm1772_vm4, %v1774_v1, %v1770_v8  ;;  %v1743_v25 = vand.u32 2147483648, %v3977_v7  ;;  %v2201_v55 = vmul.f32 %v2169_v28, %v1730_v33 }
 0x173   : > { %v2363_v39 = vadd.f32 %v2272_v16, %v2203_v52  ;;  %v2266_v9 = vpop.permute.xlu0 %2265  ;;  %v1254_v41 = vpop.f32.mrf.mxu1  ;;  %v2204_v19 = vmul.f32 %v2172_v58, %v1775_v44 }
 0x174   : > { %v1431_v20 = vadd.f32 %v1430_v54, %v1342_v42  ;;  %v2360_v63 = vadd.f32 %v2266_v9, %v2200_v15  ;;  %v1255_v22 = vadd.f32 %v1254_v41, %v3698_v36  ;;  %v3276_v59 = vpop.eup %3275  ;;  %v1740_v15 = vsel %vm1739_vm9, %v4026_v57, %v1736_v51 }
 0x175   : > { %v1521_v30 = vpop.f32.mrf.mxu0  ;;  %2396 = vst.msk [vmem:[%s4036_s11 + $0x20] sm:$0xff] %vm2391_vm8, %v2363_v39  ;;  %v1744_v7 = vor.u32 1.1754944e-38, %v1743_v25  ;;  %v4140_v6 = vadd.f32 1.0, %v3276_v59  ;;  %v2170_v39 = vld [vmem:[%s4005_s8 + $0x18] sm:$0xff]  ;;  %v1809_v9 = vsub.f32 1.0, %v1808_v21  ;;  %v4147_v41 = vpop.eup %3277  ;;  %v1818_v25 = vand.u32 2147483648, %v4068_v29 }
 0x176   : > { %v4115_v18 = vadd.f32 %v1519_v60, %v1431_v20  ;;  %2393 = vst.msk [vmem:[%s4036_s11 + $0x8] sm:$0xff] %vm2391_vm8, %v2360_v63  ;;  %v3037_v60 = vmul.f32 -1.442695, %v3926_v43  ;;  %v3035_v57 = vmul.f32 -1.442695, %v3896_v48  ;;  %vm1783_vm15 = vweird.f32 %v4147_v41 }
 0x177   : > { %v1745_v17 = vsel %vm1742_vm10, %v1744_v7, %v1740_v15  ;;  %v1810_v44 = vmul.f32 %v4121_v34, %v1809_v9  ;;  %v2175_v15 = vld [vmem:[%s4005_s8 + $0x40] sm:$0xff]  ;;  %v1788_v9 = vand.u32 2147483648, %v4113_v27  ;;  %vm4198_vm1 = vmor %vm1782_vm0, %vm1783_vm15  ;;  %vm1797_vm4 = vweird.f32 %v4140_v6 }
 0x178   : > { %2295 = vrot.lane.b32.xlu1 %v4115_v18, %s3413_s5  ;;  %3279 = vpow2.f32 %v3037_v60 }
 0x179   : > { %v1343_v37 = vpop.f32.mrf.mxu2  ;;  %3281 = vrcp.f32 %v4140_v6  ;;  %v1811_v51 = vadd.f32 %v4121_v34, %v1810_v44 }
 0x17a   : > { %v1344_v38 = vadd.f32 %v1343_v37, %v1255_v22  ;;  %v1432_v36 = vpop.f32.mrf.mxu3  ;;  %v2274_v4 = vpop.permute.xlu2 %2273  ;;  %3283 = vpow2.f32 %v3035_v57 }
 0x17b   : > { %v2364_v52 = vadd.f32 %v2274_v4, %v2204_v19  ;;  %v2268_v26 = vpop.permute.xlu1 %2267  ;;  %v1257_v43 = vpop.f32.mrf.mxu1  ;;  %v1816_v4 = vand.u32 2147483647, %v4068_v29 }
 0x17c   : > { %v1433_v42 = vadd.f32 %v1432_v36, %v1344_v38  ;;  %v2361_v54 = vadd.f32 %v2268_v26, %v2201_v55  ;;  %v1258_v8 = vadd.f32 %v1257_v43, %v3710_v47  ;;  %v1778_v47 = vmul.f32 %v4147_v41, %v4113_v27 }
 0x17d   : > { %v1524_v16 = vpop.f32.mrf.mxu0  ;;  %2397 = vst.msk [vmem:[%s4036_s11 + $0x28] sm:$0xff] %vm2391_vm8, %v2364_v52  ;;  %v3036_v38 = vmul.f32 -1.442695, %v3907_v24  ;;  %v1815_v52 = vsel %vm1814_vm13, %v4121_v34, %v1811_v51  ;;  %vm1817_vm14 = vcmp.eq.f32.partialorder %v1816_v4, 8.507059e+37 }
 0x17e   : > { %v4142_v5 = vadd.f32 %v1521_v30, %v1433_v42  ;;  %2394 = vst.msk [vmem:[%s4036_s11 + $0x10] sm:$0xff] %vm2391_vm8, %v2361_v54  ;;  %v2202_v30 = vmul.f32 %v2170_v39, %v1745_v17  ;;  %v3280_v1 = vpop.eup %3279  ;;  %v1779_v60 = vsub.f32 1.0, %v1778_v47  ;;  %v1819_v42 = vor.u32 1.1754944e-38, %v1818_v25  ;;  %v2173_v25 = vld [vmem:[%s4005_s8 + $0x30] sm:$0xff] }
 0x17f   : > { %v4157_v48 = vadd.f32 1.0, %v3280_v1  ;;  %v4165_v37 = vpop.eup %3281 }
 0x180   : > { %2297 = vrot.lane.b32.xlu2 %v4142_v5, %s3413_s5  ;;  %v3284_v59 = vpop.eup %3283  ;;  %v1780_v26 = vmul.f32 %v4147_v41, %v1779_v60  ;;  %v1793_v24 = vmul.f32 %v4165_v37, %v4140_v6  ;;  %vm1798_vm3 = vweird.f32 %v4165_v37 }
 0x181   : > { %v1346_v13 = vpop.f32.mrf.mxu2  ;;  %3285 = vrcp.f32 %v4157_v48  ;;  %v4179_v29 = vadd.f32 1.0, %v3284_v59  ;;  %vm4229_vm5 = vmor %vm1797_vm4, %vm1798_vm3  ;;  %vm1857_vm9 = vweird.f32 %v4157_v48 }
 0x182   : > { %v1347_v20 = vadd.f32 %v1346_v13, %v1258_v8  ;;  %v1435_v63 = vpop.f32.mrf.mxu3  ;;  %3287 = vpow2.f32 %v3036_v38  ;;  %v1781_v7 = vadd.f32 %v4147_v41, %v1780_v26  ;;  %v1794_v34 = vsub.f32 1.0, %v1793_v24 }
 0x183   : > { %v2270_v61 = vpop.permute.xlu1 %2269  ;;  %v1259_v45 = vpop.f32.mrf.mxu1  ;;  %v3040_v8 = vmul.f32 -1.442695, %v4013_v32  ;;  %3289 = vrcp.f32 %v4179_v29  ;;  %vm1827_vm13 = vweird.f32 %v4179_v29 }
 0x184   : > { %v1436_v58 = vadd.f32 %v1435_v63, %v1347_v20  ;;  %v2362_v28 = vadd.f32 %v2270_v61, %v2202_v30  ;;  %v1260_v19 = vadd.f32 %v1259_v45, %v3729_v62  ;;  %v1786_v20 = vand.u32 2147483647, %v4113_v27 }
 0x185   : > { %v1526_v33 = vpop.f32.mrf.mxu0  ;;  %v1785_v27 = vsel %vm4198_vm1, %v4147_v41, %v1781_v7  ;;  %v1795_v44 = vmul.f32 %v4165_v37, %v1794_v34  ;;  %3291 = vpow2.f32 %v3040_v8 }
 0x186   : > { %v4159_v22 = vadd.f32 %v1524_v16, %v1436_v58  ;;  %2395 = vst.msk [vmem:[%s4036_s11 + $0x18] sm:$0xff] %vm2391_vm8, %v2362_v28  ;;  %v1820_v16 = vsel %vm1817_vm14, %v1819_v42, %v1815_v52  ;;  %vm1787_vm2 = vcmp.eq.f32.partialorder %v1786_v20, 8.507059e+37  ;;  %v1801_v52 = vand.u32 2147483647, %v4140_v6 }
 0x187   : > { %v4186_v17 = vpop.eup %3285  ;;  %v2207_v13 = vmul.f32 %v2175_v15, %v1820_v16  ;;  %v1796_v41 = vadd.f32 %v4165_v37, %v1795_v44 }
 0x188   : > { %2299 = vrot.lane.b32.xlu0 %v4159_v22, %s3413_s5  ;;  %v3288_v32 = vpop.eup %3287  ;;  %v1853_v47 = vmul.f32 %v4186_v17, %v4157_v48  ;;  %vm1802_vm6 = vcmp.eq.f32.partialorder %v1801_v52, 8.507059e+37  ;;  %vm1858_vm7 = vweird.f32 %v4186_v17 }
 0x189   : > { %v1348_v36 = vpop.f32.mrf.mxu2  ;;  %v4210_v51 = vadd.f32 1.0, %v3288_v32  ;;  %vm4260_vm10 = vmor %vm1857_vm9, %vm1858_vm7 }
 0x18a   : > { %v1349_v55 = vadd.f32 %v1348_v36, %v1260_v19  ;;  %v1437_v53 = vpop.f32.mrf.mxu3  ;;  %v1854_v38 = vsub.f32 1.0, %v1853_v47  ;;  %v4217_v36 = vpop.eup %3289 }
 0x18b   : > { %v1262_v62 = vpop.f32.mrf.mxu1  ;;  %3293 = vrcp.f32 %v4210_v51  ;;  %v1823_v15 = vmul.f32 %v4217_v36, %v4179_v29  ;;  %vm1828_vm12 = vweird.f32 %v4217_v36  ;;  %vm1842_vm1 = vweird.f32 %v4210_v51 }
 0x18c   : > { %v1438_v43 = vadd.f32 %v1437_v53, %v1349_v55  ;;  %v1263_v39 = vadd.f32 %v1262_v62, %v3741_v10  ;;  %v1803_v55 = vand.u32 2147483648, %v4140_v6  ;;  %v3038_v53 = vmul.f32 -1.442695, %v3943_v0  ;;  %v3292_v0 = vpop.eup %3291  ;;  %vm4291_vm14 = vmor %vm1827_vm13, %vm1828_vm12 }
 0x18d   : > { %v1529_v21 = vpop.f32.mrf.mxu0  ;;  %v1800_v6 = vsel %vm4229_vm5, %v4165_v37, %v1796_v41  ;;  %v1855_v16 = vmul.f32 %v4186_v17, %v1854_v38  ;;  %v1824_v20 = vsub.f32 1.0, %v1823_v15  ;;  %v3039_v10 = vmul.f32 -1.442695, %v3971_v56 }
 0x18e   : > { %v4181_v54 = vadd.f32 %v1526_v33, %v1438_v43  ;;  %v1789_v33 = vor.u32 1.1754944e-38, %v1788_v9  ;;  %3295 = vpow2.f32 %v3038_v53  ;;  %v4241_v9 = vadd.f32 1.0, %v3292_v0 }
 0x18f   : > { %v1856_v37 = vadd.f32 %v4186_v17, %v1855_v16 }
 0x190   : > { %2301 = vrot.lane.b32.xlu1 %v4181_v54, %s3413_s5  ;;  %v1790_v19 = vsel %vm1787_vm2, %v1789_v33, %v1785_v27  ;;  %3297 = vrcp.f32 %v4241_v9  ;;  %v1825_v33 = vmul.f32 %v4217_v36, %v1824_v20  ;;  %vm1902_vm5 = vweird.f32 %v4241_v9 }
 0x191   : > { %v1351_v57 = vpop.f32.mrf.mxu2  ;;  %v2205_v62 = vmul.f32 %v2173_v25, %v1790_v19  ;;  %3299 = vpow2.f32 %v3039_v10  ;;  %v2176_v10 = vld [vmem:[%s4005_s8 + $0x48] sm:$0xff] }
 0x192   : > { %v1352_v63 = vadd.f32 %v1351_v57, %v1263_v39  ;;  %v1440_v30 = vpop.f32.mrf.mxu3  ;;  %v2280_v1 = vpop.permute.xlu2 %2279  ;;  %v1804_v39 = vor.u32 1.1754944e-38, %v1803_v55 }
 0x193   : > { %v2367_v61 = vadd.f32 %v2280_v1, %v2207_v13  ;;  %v1264_v45 = vpop.f32.mrf.mxu1  ;;  %v2174_v13 = vld [vmem:[%s4005_s8 + $0x38] sm:$0xff]  ;;  %v1863_v1 = vand.u32 2147483648, %v4157_v48 }
 0x194   : > { %v1441_v58 = vadd.f32 %v1440_v30, %v1352_v63  ;;  %v1265_v4 = vadd.f32 %v1264_v45, %v3760_v31  ;;  %v1805_v57 = vsel %vm1802_vm6, %v1804_v39, %v1800_v6  ;;  %v4248_v63 = vpop.eup %3293  ;;  %v1861_v45 = vand.u32 2147483647, %v4157_v48 }
 0x195   : > { %v1531_v28 = vpop.f32.mrf.mxu0  ;;  %2400 = vst.msk [vmem:[%s4036_s11 + $0x40] sm:$0xff] %vm2391_vm8, %v2367_v61  ;;  %v2206_v61 = vmul.f32 %v2174_v13, %v1805_v57  ;;  %v3296_v56 = vpop.eup %3295  ;;  %v1860_v48 = vsel %vm4260_vm10, %v4186_v17, %v1856_v37  ;;  %v1838_v19 = vmul.f32 %v4248_v63, %v4210_v51  ;;  %v1864_v38 = vor.u32 1.1754944e-38, %v1863_v1 }
 0x196   : > { %v4212_v60 = vadd.f32 %v1529_v21, %v1441_v58  ;;  %vm1862_vm11 = vcmp.eq.f32.partialorder %v1861_v45, 8.507059e+37  ;;  %v1826_v17 = vadd.f32 %v4217_v36, %v1825_v33  ;;  %v4279_v52 = vpop.eup %3297  ;;  %vm1843_vm0 = vweird.f32 %v4248_v63 }
 0x197   : > { %v1865_v53 = vsel %vm1862_vm11, %v1864_v38, %v1860_v48  ;;  %v1898_v39 = vmul.f32 %v4279_v52, %v4241_v9  ;;  %vm4322_vm2 = vmor %vm1842_vm1, %vm1843_vm0  ;;  %vm1903_vm4 = vweird.f32 %v4279_v52 }
 0x198   : > { %2303 = vrot.lane.b32.xlu2 %v4212_v60, %s3413_s5  ;;  %vm4353_vm6 = vmor %vm1902_vm5, %vm1903_vm4 }
 0x199   : > { %v1353_v59 = vpop.f32.mrf.mxu2 }
 0x19a   : > { %v1354_v26 = vadd.f32 %v1353_v59, %v1265_v4  ;;  %v1442_v24 = vpop.f32.mrf.mxu3  ;;  %v2276_v43 = vpop.permute.xlu0 %2275  ;;  %v4272_v4 = vadd.f32 1.0, %v3296_v56  ;;  %v2178_v59 = vld [vmem:[%s4005_s8 + $0x58] sm:$0xff]  ;;  %v1846_v56 = vand.u32 2147483647, %v4210_v51 }
 0x19b   : > { %v2365_v21 = vadd.f32 %v2276_v43, %v2205_v62  ;;  %v1267_v42 = vpop.f32.mrf.mxu1  ;;  %v1839_v62 = vsub.f32 1.0, %v1838_v19  ;;  %v3043_v43 = vmul.f32 -1.442695, %v4142_v5  ;;  %v2210_v0 = vmul.f32 %v2178_v59, %v1865_v53  ;;  %v3300_v5 = vpop.eup %3299 }
 0x19c   : > { %v1443_v7 = vadd.f32 %v1442_v24, %v1354_v26  ;;  %v1268_v30 = vadd.f32 %v1267_v42, %v3772_v46  ;;  %v1833_v24 = vand.u32 2147483648, %v4179_v29  ;;  %3301 = vrcp.f32 %v4272_v4 }
 0x19d   : > { %v1534_v34 = vpop.f32.mrf.mxu0  ;;  %2398 = vst.msk [vmem:[%s4036_s11 + $0x30] sm:$0xff] %vm2391_vm8, %v2365_v21  ;;  %v1831_v21 = vand.u32 2147483647, %v4179_v29  ;;  %v1830_v29 = vsel %vm4291_vm14, %v4217_v36, %v1826_v17  ;;  %3303 = vpow2.f32 %v3043_v43  ;;  %v4303_v20 = vadd.f32 1.0, %v3300_v5 }
 0x19e   : > { %v4243_v8 = vadd.f32 %v1531_v28, %v1443_v7  ;;  %v1834_v37 = vor.u32 1.1754944e-38, %v1833_v24  ;;  %vm1847_vm3 = vcmp.eq.f32.partialorder %v1846_v56, 8.507059e+37  ;;  %v2177_v24 = vld [vmem:[%s4005_s8 + $0x50] sm:$0xff]  ;;  %v3046_v56 = vmul.f32 -1.442695, %v4212_v60 }
 0x19f   : > { %vm1832_vm15 = vcmp.eq.f32.partialorder %v1831_v21, 8.507059e+37  ;;  %3305 = vrcp.f32 %v4303_v20  ;;  %v1908_v21 = vand.u32 2147483648, %v4241_v9  ;;  %vm1872_vm10 = vweird.f32 %v4272_v4 }
 0x1a0   : > { %2305 = vrot.lane.b32.xlu0 %v4243_v8, %s3413_s5  ;;  %v1835_v1 = vsel %vm1832_vm15, %v1834_v37, %v1830_v29  ;;  %vm1887_vm14 = vweird.f32 %v4303_v20 }
 0x1a1   : > { %v1356_v32 = vpop.f32.mrf.mxu2  ;;  %v2208_v46 = vmul.f32 %v2176_v10, %v1835_v1  ;;  %v1909_v1 = vor.u32 1.1754944e-38, %v1908_v21 }
 0x1a2   : > { %v1357_v27 = vadd.f32 %v1356_v32, %v1268_v30  ;;  %v1445_v44 = vpop.f32.mrf.mxu3  ;;  %v2278_v47 = vpop.permute.xlu1 %2277  ;;  %v1899_v32 = vsub.f32 1.0, %v1898_v39 }
 0x1a3   : > { %v2366_v58 = vadd.f32 %v2278_v47, %v2206_v61  ;;  %v1269_v28 = vpop.f32.mrf.mxu1  ;;  %v4310_v61 = vpop.eup %3301 }
 0x1a4   : > { %v1446_v25 = vadd.f32 %v1445_v44, %v1357_v27  ;;  %v1270_v26 = vadd.f32 %v1269_v28, %v3791_v3  ;;  %v1848_v27 = vand.u32 2147483648, %v4210_v51  ;;  %v3041_v44 = vmul.f32 -1.442695, %v4070_v14  ;;  %v3304_v14 = vpop.eup %3303 }
 0x1a5   : > { %v1536_v41 = vpop.f32.mrf.mxu0  ;;  %2399 = vst.msk [vmem:[%s4036_s11 + $0x38] sm:$0xff] %vm2391_vm8, %v2366_v58  ;;  %v4334_v17 = vadd.f32 1.0, %v3304_v14  ;;  %v1906_v3 = vand.u32 2147483647, %v4241_v9  ;;  %vm1873_vm9 = vweird.f32 %v4310_v61 }
 0x1a6   : > { %v4274_v55 = vadd.f32 %v1534_v34, %v1446_v25  ;;  %v1840_v34 = vmul.f32 %v4248_v63, %v1839_v62  ;;  %v1900_v25 = vmul.f32 %v4279_v52, %v1899_v32  ;;  %v1849_v59 = vor.u32 1.1754944e-38, %v1848_v27  ;;  %vm4384_vm11 = vmor %vm1872_vm10, %vm1873_vm9 }
 0x1a7   : > { %3307 = vpow2.f32 %v3041_v44  ;;  %vm1907_vm7 = vcmp.eq.f32.partialorder %v1906_v3, 8.507059e+37 }
 0x1a8   : > { %2307 = vrot.lane.b32.xlu1 %v4274_v55, %s3413_s5  ;;  %v1841_v36 = vadd.f32 %v4248_v63, %v1840_v34  ;;  %3309 = vrcp.f32 %v4334_v17 }
 0x1a9   : > { %v1358_v31 = vpop.f32.mrf.mxu2 }
 0x1aa   : > { %v1359_v42 = vadd.f32 %v1358_v31, %v1270_v26  ;;  %v1447_v6 = vpop.f32.mrf.mxu3  ;;  %v2286_v16 = vpop.permute.xlu2 %2285  ;;  %v1845_v51 = vsel %vm4322_vm2, %v4248_v63, %v1841_v36  ;;  %v1901_v63 = vadd.f32 %v4279_v52, %v1900_v25  ;;  %vm1947_vm2 = vweird.f32 %v4334_v17 }
 0x1ab   : > { %v2370_v15 = vadd.f32 %v2286_v16, %v2210_v0  ;;  %v1272_v7 = vpop.f32.mrf.mxu1  ;;  %v1850_v26 = vsel %vm1847_vm3, %v1849_v59, %v1845_v51  ;;  %v4341_v31 = vpop.eup %3305 }
 0x1ac   : > { %v1448_v57 = vadd.f32 %v1447_v6, %v1359_v42  ;;  %v1273_v45 = vadd.f32 %v1272_v7, %v3682_v23  ;;  %v3042_v42 = vmul.f32 -1.442695, %v4115_v18  ;;  %v2209_v16 = vmul.f32 %v2177_v24, %v1850_v26 }
 0x1ad   : > { %v1539_v13 = vpop.f32.mrf.mxu0  ;;  %2403 = vst.msk [vmem:[%s4036_s11 + $0x58] sm:$0xff] %vm2391_vm8, %v2370_v15  ;;  %v3308_v18 = vpop.eup %3307  ;;  %v1905_v9 = vsel %vm4353_vm6, %v4279_v52, %v1901_v63  ;;  %vm1888_vm13 = vweird.f32 %v4341_v31 }
 0x1ae   : > { %v4305_v30 = vadd.f32 %v1536_v41, %v1448_v57  ;;  %v1868_v41 = vmul.f32 %v4310_v61, %v4272_v4  ;;  %v1883_v57 = vmul.f32 %v4341_v31, %v4303_v20  ;;  %3311 = vpow2.f32 %v3042_v42  ;;  %v4372_v44 = vpop.eup %3309  ;;  %vm1889_vm15 = vmor %vm1887_vm14, %vm1888_vm13 }
 0x1af   : > { %v4365_v10 = vadd.f32 1.0, %v3308_v18  ;;  %v1910_v32 = vsel %vm1907_vm7, %v1909_v1, %v1905_v9  ;;  %vm1948_vm1 = vweird.f32 %v4372_v44 }
 0x1b0   : > { %2309 = vrot.lane.b32.xlu2 %v4305_v30, %s3413_s5  ;;  %v1869_v43 = vsub.f32 1.0, %v1868_v41  ;;  %v1884_v27 = vsub.f32 1.0, %v1883_v57  ;;  %v1943_v41 = vmul.f32 %v4372_v44, %v4334_v17  ;;  %vm1949_vm3 = vmor %vm1947_vm2, %vm1948_vm1 }
 0x1b1   : > { %v1361_v47 = vpop.f32.mrf.mxu2  ;;  %3313 = vrcp.f32 %v4365_v10  ;;  %vm1917_vm6 = vweird.f32 %v4365_v10 }
 0x1b2   : > { %v1362_v58 = vadd.f32 %v1361_v47, %v1273_v45  ;;  %v1450_v28 = vpop.f32.mrf.mxu3  ;;  %v2282_v48 = vpop.permute.xlu0 %2281  ;;  %v1870_v39 = vmul.f32 %v4310_v61, %v1869_v43  ;;  %v2181_v45 = vld [vmem:[%s4005_s8 + $0x70] sm:$0xff]  ;;  %3315 = vpow2.f32 %v3046_v56  ;;  %v2179_v43 = vld [vmem:[%s4005_s8 + $0x60] sm:$0xff]  ;;  %v3045_v56 = vmul.f32 -1.442695, %v4181_v54 }
 0x1b3   : > { %v2368_v33 = vadd.f32 %v2282_v48, %v2208_v46  ;;  %v1274_v19 = vpop.f32.mrf.mxu1  ;;  %v1878_v46 = vand.u32 2147483648, %v4272_v4  ;;  %v1876_v48 = vand.u32 2147483647, %v4272_v4  ;;  %v1885_v4 = vmul.f32 %v4341_v31, %v1884_v27 }
 0x1b4   : > { %v1451_v38 = vadd.f32 %v1450_v28, %v1362_v58  ;;  %v1275_v0 = vadd.f32 %v1274_v19, %v3701_v40  ;;  %v1871_v52 = vadd.f32 %v4310_v61, %v1870_v39  ;;  %v2213_v28 = vmul.f32 %v2181_v45, %v1910_v32  ;;  %v3312_v60 = vpop.eup %3311  ;;  %v2180_v32 = vld [vmem:[%s4005_s8 + $0x68] sm:$0xff] }
 0x1b5   : > { %v1541_v53 = vpop.f32.mrf.mxu0  ;;  %2401 = vst.msk [vmem:[%s4036_s11 + $0x48] sm:$0xff] %vm2391_vm8, %v2368_v33  ;;  %vm1877_vm12 = vcmp.eq.f32.partialorder %v1876_v48, 8.507059e+37  ;;  %v4396_v26 = vadd.f32 1.0, %v3312_v60  ;;  %v1951_v48 = vand.u32 2147483647, %v4334_v17 }
 0x1b6   : > { %v4336_v62 = vadd.f32 %v1539_v13, %v1451_v38  ;;  %v1875_v25 = vsel %vm4384_vm11, %v4310_v61, %v1871_v52  ;;  %v1886_v61 = vadd.f32 %v4341_v31, %v1885_v4 }
 0x1b7   : > { %v4403_v21 = vpop.eup %3313  ;;  %3317 = vrcp.f32 %v4396_v26  ;;  %vm1952_vm4 = vcmp.eq.f32.partialorder %v1951_v48, 8.507059e+37  ;;  %vm1932_vm11 = vweird.f32 %v4396_v26 }
 0x1b8   : > { %2311 = vrot.lane.b32.xlu0 %v4336_v62, %s3413_s5  ;;  %v1913_v39 = vmul.f32 %v4403_v21, %v4365_v10  ;;  %vm1918_vm5 = vweird.f32 %v4403_v21 }
 0x1b9   : > { %v1363_v6 = vpop.f32.mrf.mxu2  ;;  %vm1919_vm7 = vmor %vm1917_vm6, %vm1918_vm5 }
 0x1ba   : > { %v1364_v5 = vadd.f32 %v1363_v6, %v1275_v0  ;;  %v1452_v15 = vpop.f32.mrf.mxu3  ;;  %v2284_v7 = vpop.permute.xlu1 %2283  ;;  %v1944_v0 = vsub.f32 1.0, %v1943_v41  ;;  %v1893_v6 = vand.u32 2147483648, %v4303_v20  ;;  %v1914_v52 = vsub.f32 1.0, %v1913_v39 }
 0x1bb   : > { %v2369_v29 = vadd.f32 %v2284_v7, %v2209_v16  ;;  %v1277_v34 = vpop.f32.mrf.mxu1  ;;  %v3044_v16 = vmul.f32 -1.442695, %v4159_v22  ;;  %v1890_v22 = vsel %vm1889_vm15, %v4341_v31, %v1886_v61  ;;  %v1923_v61 = vand.u32 2147483648, %v4365_v10 }
 0x1bc   : > { %v1453_v13 = vadd.f32 %v1452_v15, %v1364_v5  ;;  %v1278_v47 = vadd.f32 %v1277_v34, %v3713_v49  ;;  %v1891_v15 = vand.u32 2147483647, %v4303_v20  ;;  %v1945_v9 = vmul.f32 %v4372_v44, %v1944_v0 }
 0x1bd   : > { %v1544_v37 = vpop.f32.mrf.mxu0  ;;  %2402 = vst.msk [vmem:[%s4036_s11 + $0x50] sm:$0xff] %vm2391_vm8, %v2369_v29  ;;  %v1894_v57 = vor.u32 1.1754944e-38, %v1893_v6  ;;  %3319 = vpow2.f32 %v3044_v16  ;;  %v3049_v0 = vmul.f32 -1.442695, %v4305_v30 }
 0x1be   : > { %v4367_v36 = vadd.f32 %v1541_v53, %v1453_v13  ;;  %v1879_v53 = vor.u32 1.1754944e-38, %v1878_v46  ;;  %vm1892_vm0 = vcmp.eq.f32.partialorder %v1891_v15, 8.507059e+37  ;;  %v1946_v31 = vadd.f32 %v4372_v44, %v1945_v9 }
 0x1bf   : > { %v1895_v1 = vsel %vm1892_vm0, %v1894_v57, %v1890_v22  ;;  %v1953_v46 = vand.u32 2147483648, %v4334_v17 }
 0x1c0   : > { %2313 = vrot.lane.b32.xlu1 %v4367_v36, %s3413_s5  ;;  %v1880_v63 = vsel %vm1877_vm12, %v1879_v53, %v1875_v25  ;;  %v1950_v54 = vsel %vm1949_vm3, %v4372_v44, %v1946_v31  ;;  %v2184_v53 = vld [vmem:[%s4005_s8 + $0x88] sm:$0xff]  ;;  %v3047_v31 = vmul.f32 -1.442695, %v4243_v8 }
 0x1c1   : > { %v1366_v58 = vpop.f32.mrf.mxu2  ;;  %v2211_v5 = vmul.f32 %v2179_v43, %v1880_v63  ;;  %v1954_v25 = vor.u32 1.1754944e-38, %v1953_v46  ;;  %v1936_v46 = vand.u32 2147483647, %v4396_v26 }
 0x1c2   : > { %v1367_v23 = vadd.f32 %v1366_v58, %v1278_v47  ;;  %v1455_v14 = vpop.f32.mrf.mxu3  ;;  %v2292_v33 = vpop.permute.xlu2 %2291 }
 0x1c3   : > { %v2373_v19 = vadd.f32 %v2292_v33, %v2213_v28  ;;  %v1279_v51 = vpop.f32.mrf.mxu1  ;;  %v2212_v28 = vmul.f32 %v2180_v32, %v1895_v1  ;;  %vm1937_vm13 = vcmp.eq.f32.partialorder %v1936_v46, 8.507059e+37 }
 0x1c4   : > { %v1456_v38 = vadd.f32 %v1455_v14, %v1367_v23  ;;  %v1280_v42 = vadd.f32 %v1279_v51, %v3732_v2  ;;  %v3316_v2 = vpop.eup %3315 }
 0x1c5   : > { %2406 = vst.msk [vmem:[%s4036_s11 + $0x70] sm:$0xff] %vm2391_vm8, %v2373_v19  ;;  %v1546_v59 = vpop.f32.mrf.mxu0  ;;  %v4421_v13 = vadd.f32 1.0, %v3316_v2  ;;  %v4428_v27 = vpop.eup %3317  ;;  %v1915_v19 = vmul.f32 %v4403_v21, %v1914_v52 }
 0x1c6   : > { %v4398_v24 = vadd.f32 %v1544_v37, %v1456_v38  ;;  %v1928_v51 = vmul.f32 %v4428_v27, %v4396_v26  ;;  %v1955_v38 = vsel %vm1952_vm4, %v1954_v25, %v1950_v54  ;;  %vm1933_vm10 = vweird.f32 %v4428_v27 }
 0x1c7   : > { %3321 = vrcp.f32 %v4421_v13  ;;  %v2216_v16 = vmul.f32 %v2184_v53, %v1955_v38  ;;  %vm4490_vm12 = vmor %vm1932_vm11, %vm1933_vm10  ;;  %vm1992_vm15 = vweird.f32 %v4421_v13 }
 0x1c8   : > { %2315 = vrot.lane.b32.xlu2 %v4398_v24, %s3413_s5  ;;  %3323 = vpow2.f32 %v3045_v56  ;;  %v1929_v44 = vsub.f32 1.0, %v1928_v51 }
 0x1c9   : > { %v1368_v3 = vpop.f32.mrf.mxu2 }
 0x1ca   : > { %v1369_v7 = vadd.f32 %v1368_v3, %v1280_v42  ;;  %v1457_v40 = vpop.f32.mrf.mxu3  ;;  %v2288_v18 = vpop.permute.xlu0 %2287  ;;  %v1921_v3 = vand.u32 2147483647, %v4365_v10  ;;  %v1930_v2 = vmul.f32 %v4428_v27, %v1929_v44  ;;  %v3048_v44 = vmul.f32 -1.442695, %v4274_v55 }
 0x1cb   : > { %v2371_v29 = vadd.f32 %v2288_v18, %v2211_v5  ;;  %v1282_v34 = vpop.f32.mrf.mxu1 }
 0x1cc   : > { %v1458_v20 = vadd.f32 %v1457_v40, %v1369_v7  ;;  %v1283_v47 = vadd.f32 %v1282_v34, %v3744_v12  ;;  %v3320_v12 = vpop.eup %3319  ;;  %v1924_v34 = vor.u32 1.1754944e-38, %v1923_v61  ;;  %vm1922_vm9 = vcmp.eq.f32.partialorder %v1921_v3, 8.507059e+37 }
 0x1cd   : > { %2404 = vst.msk [vmem:[%s4036_s11 + $0x60] sm:$0xff] %vm2391_vm8, %v2371_v29  ;;  %v1549_v45 = vpop.f32.mrf.mxu0  ;;  %v4446_v4 = vadd.f32 1.0, %v3320_v12  ;;  %v4453_v63 = vpop.eup %3321  ;;  %v1931_v57 = vadd.f32 %v4428_v27, %v1930_v2 }
 0x1ce   : > { %v4423_v37 = vadd.f32 %v1546_v59, %v1458_v20  ;;  %v1916_v59 = vadd.f32 %v4403_v21, %v1915_v19  ;;  %v3324_v7 = vpop.eup %3323  ;;  %v1988_v29 = vmul.f32 %v4453_v63, %v4421_v13  ;;  %v2182_v20 = vld [vmem:[%s4005_s8 + $0x78] sm:$0xff]  ;;  %vm1993_vm14 = vweird.f32 %v4453_v63 }
 0x1cf   : > { %3325 = vrcp.f32 %v4446_v4  ;;  %v4471_v22 = vadd.f32 1.0, %v3324_v7  ;;  %vm4519_vm0 = vmor %vm1992_vm15, %vm1993_vm14  ;;  %vm1962_vm3 = vweird.f32 %v4446_v4 }
 0x1d0   : > { %2317 = vrot.lane.b32.xlu0 %v4423_v37, %s3413_s5  ;;  %v1920_v18 = vsel %vm1919_vm7, %v4403_v21, %v1916_v59  ;;  %3327 = vpow2.f32 %v3049_v0  ;;  %v1989_v21 = vsub.f32 1.0, %v1988_v29  ;;  %v1998_v59 = vand.u32 2147483648, %v4421_v13  ;;  %v2187_v29 = vld [vmem:[%s4005_s8 + $0xa0] sm:$0xff] }
 0x1d1   : > { %v1371_v58 = vpop.f32.mrf.mxu2  ;;  %v1925_v39 = vsel %vm1922_vm9, %v1924_v34, %v1920_v18  ;;  %3329 = vrcp.f32 %v4471_v22  ;;  %v1996_v0 = vand.u32 2147483647, %v4421_v13  ;;  %vm1977_vm7 = vweird.f32 %v4471_v22 }
 0x1d2   : > { %v1372_v23 = vadd.f32 %v1371_v58, %v1283_v47  ;;  %v1460_v14 = vpop.f32.mrf.mxu3  ;;  %v2290_v33 = vpop.permute.xlu1 %2289  ;;  %v2214_v47 = vmul.f32 %v2182_v20, %v1925_v39  ;;  %3331 = vpow2.f32 %v3047_v31  ;;  %v1999_v7 = vor.u32 1.1754944e-38, %v1998_v59 }
 0x1d3   : > { %v2372_v49 = vadd.f32 %v2290_v33, %v2212_v28  ;;  %v1284_v60 = vpop.f32.mrf.mxu1  ;;  %vm1997_vm1 = vcmp.eq.f32.partialorder %v1996_v0, 8.507059e+37  ;;  %v1968_v39 = vand.u32 2147483648, %v4446_v4  ;;  %v3052_v20 = vmul.f32 -1.442695, %v4398_v24 }
 0x1d4   : > { %v1461_v17 = vadd.f32 %v1460_v14, %v1372_v23  ;;  %v1285_v43 = vadd.f32 %v1284_v60, %v3763_v35  ;;  %v1935_v14 = vsel %vm4490_vm12, %v4428_v27, %v1931_v57 }
 0x1d5   : > { %2405 = vst.msk [vmem:[%s4036_s11 + $0x68] sm:$0xff] %vm2391_vm8, %v2372_v49  ;;  %v1551_v42 = vpop.f32.mrf.mxu0  ;;  %v4478_v1 = vpop.eup %3325  ;;  %v1969_v24 = vor.u32 1.1754944e-38, %v1968_v39 }
 0x1d6   : > { %v4448_v41 = vadd.f32 %v1549_v45, %v1461_v17  ;;  %v1938_v45 = vand.u32 2147483648, %v4396_v26  ;;  %v3328_v8 = vpop.eup %3327  ;;  %v1990_v26 = vmul.f32 %v4453_v63, %v1989_v21  ;;  %v1958_v33 = vmul.f32 %v4478_v1, %v4446_v4  ;;  %v2183_v17 = vld [vmem:[%s4005_s8 + $0x80] sm:$0xff] }
 0x1d7   : > { %v4502_v54 = vadd.f32 1.0, %v3328_v8  ;;  %v4509_v38 = vpop.eup %3329  ;;  %vm1963_vm2 = vweird.f32 %v4478_v1  ;;  %v1966_v21 = vand.u32 2147483647, %v4446_v4  ;;  %v1983_v8 = vand.u32 2147483648, %v4471_v22 }
 0x1d8   : > { %2319 = vrot.lane.b32.xlu1 %v4448_v41, %s3413_s5  ;;  %v1939_v49 = vor.u32 1.1754944e-38, %v1938_v45  ;;  %v1991_v27 = vadd.f32 %v4453_v63, %v1990_v26  ;;  %v1959_v25 = vsub.f32 1.0, %v1958_v33  ;;  %v1973_v13 = vmul.f32 %v4509_v38, %v4471_v22  ;;  %vm1964_vm4 = vmor %vm1962_vm3, %vm1963_vm2 }
 0x1d9   : > { %v1373_v6 = vpop.f32.mrf.mxu2  ;;  %3333 = vrcp.f32 %v4502_v54  ;;  %vm1967_vm5 = vcmp.eq.f32.partialorder %v1966_v21, 8.507059e+37  ;;  %vm1978_vm6 = vweird.f32 %v4509_v38  ;;  %v2043_v59 = vand.u32 2147483648, %v4502_v54 }
 0x1da   : > { %v1374_v5 = vadd.f32 %v1373_v6, %v1285_v43  ;;  %v1462_v15 = vpop.f32.mrf.mxu3  ;;  %v2298_v35 = vpop.permute.xlu2 %2297  ;;  %v1940_v51 = vsel %vm1937_vm13, %v1939_v49, %v1935_v14  ;;  %v1995_v55 = vsel %vm4519_vm0, %v4453_v63, %v1991_v27  ;;  %3335 = vpow2.f32 %v3048_v44  ;;  %vm1979_vm9 = vmor %vm1977_vm7, %vm1978_vm6  ;;  %v2186_v27 = vld [vmem:[%s4005_s8 + $0x98] sm:$0xff] }
 0x1db   : > { %v2376_v40 = vadd.f32 %v2298_v35, %v2216_v16  ;;  %v1287_v30 = vpop.f32.mrf.mxu1  ;;  %v2215_v61 = vmul.f32 %v2183_v17, %v1940_v51  ;;  %v3332_v16 = vpop.eup %3331  ;;  %v2000_v2 = vsel %vm1997_vm1, %v1999_v7, %v1995_v55  ;;  %v1981_v14 = vand.u32 2147483647, %v4471_v22  ;;  %v2190_v55 = vld [vmem:[%s4005_s8 + $0xb8] sm:$0xff] }
 0x1dc   : > { %v1463_v10 = vadd.f32 %v1462_v15, %v1374_v5  ;;  %v1288_v32 = vadd.f32 %v1287_v30, %v3775_v50  ;;  %v1960_v15 = vmul.f32 %v4478_v1, %v1959_v25  ;;  %v4531_v30 = vadd.f32 1.0, %v3332_v16 }
 0x1dd   : > { %2409 = vst.msk [vmem:[%s4036_s11 + $0x88] sm:$0xff] %vm2391_vm8, %v2376_v40  ;;  %v1554_v48 = vpop.f32.mrf.mxu0  ;;  %v2219_v57 = vmul.f32 %v2187_v29, %v2000_v2  ;;  %vm1982_vm10 = vcmp.eq.f32.partialorder %v1981_v14, 8.507059e+37  ;;  %v3051_v44 = vmul.f32 -1.442695, %v4367_v36  ;;  %vm2037_vm12 = vweird.f32 %v4502_v54  ;;  %v2189_v14 = vld [vmem:[%s4005_s8 + $0xb0] sm:$0xff] }
 0x1de   : > { %v4473_v9 = vadd.f32 %v1551_v42, %v1463_v10  ;;  %v1961_v63 = vadd.f32 %v4478_v1, %v1960_v15  ;;  %v1974_v10 = vsub.f32 1.0, %v1973_v13  ;;  %3337 = vrcp.f32 %v4531_v30 }
 0x1df   : > { %v4538_v34 = vpop.eup %3333  ;;  %3339 = vpow2.f32 %v3052_v20  ;;  %v2044_v36 = vor.u32 1.1754944e-38, %v2043_v59  ;;  %v2013_v7 = vand.u32 2147483648, %v4531_v30  ;;  %vm2007_vm0 = vweird.f32 %v4531_v30 }
 0x1e0   : > { %2321 = vrot.lane.b32.xlu2 %v4473_v9, %s3413_s5  ;;  %v3336_v45 = vpop.eup %3335  ;;  %v2033_v46 = vmul.f32 %v4538_v34, %v4502_v54  ;;  %vm2038_vm11 = vweird.f32 %v4538_v34  ;;  %v2011_v29 = vand.u32 2147483647, %v4531_v30 }
 0x1e1   : > { %v1376_v52 = vpop.f32.mrf.mxu2  ;;  %vm2039_vm13 = vmor %vm2037_vm12, %vm2038_vm11 }
 0x1e2   : > { %v1377_v56 = vadd.f32 %v1376_v52, %v1288_v32  ;;  %v1465_v58 = vpop.f32.mrf.mxu3  ;;  %v2294_v28 = vpop.permute.xlu0 %2293  ;;  %v1965_v52 = vsel %vm1964_vm4, %v4478_v1, %v1961_v63  ;;  %v2034_v50 = vsub.f32 1.0, %v2033_v46  ;;  %vm2012_vm2 = vcmp.eq.f32.partialorder %v2011_v29, 8.507059e+37 }
 0x1e3   : > { %v2374_v23 = vadd.f32 %v2294_v28, %v2214_v47  ;;  %v1289_v60 = vpop.f32.mrf.mxu1  ;;  %v1975_v47 = vmul.f32 %v4509_v38, %v1974_v10  ;;  %v1970_v4 = vsel %vm1967_vm5, %v1969_v24, %v1965_v52  ;;  %v3053_v46 = vmul.f32 -1.442695, %v4423_v37 }
 0x1e4   : > { %v1466_v12 = vadd.f32 %v1465_v58, %v1377_v56  ;;  %v1290_v53 = vadd.f32 %v1289_v60, %v3794_v11  ;;  %v4553_v56 = vadd.f32 1.0, %v3336_v45  ;;  %v2185_v58 = vld [vmem:[%s4005_s8 + $0x90] sm:$0xff]  ;;  %v4558_v1 = vpop.eup %3337  ;;  %v2035_v60 = vmul.f32 %v4538_v34, %v2034_v50 }
 0x1e5   : > { %2407 = vst.msk [vmem:[%s4036_s11 + $0x78] sm:$0xff] %vm2391_vm8, %v2374_v23  ;;  %v1556_v40 = vpop.f32.mrf.mxu0  ;;  %v1976_v28 = vadd.f32 %v4509_v38, %v1975_v47  ;;  %v2217_v23 = vmul.f32 %v2185_v58, %v1970_v4  ;;  %v3340_v33 = vpop.eup %3339  ;;  %v2003_v51 = vmul.f32 %v4558_v1, %v4531_v30  ;;  %vm2008_vm15 = vweird.f32 %v4558_v1 }
 0x1e6   : > { %v4504_v19 = vadd.f32 %v1554_v48, %v1466_v12  ;;  %v3050_v48 = vmul.f32 -1.442695, %v4336_v62  ;;  %3341 = vrcp.f32 %v4553_v56  ;;  %v1984_v62 = vor.u32 1.1754944e-38, %v1983_v8  ;;  %vm2009_vm1 = vmor %vm2007_vm0, %vm2008_vm15 }
 0x1e7   : > { %v1980_v49 = vsel %vm1979_vm9, %v4509_v38, %v1976_v28  ;;  %v4571_v17 = vadd.f32 1.0, %v3340_v33  ;;  %v2036_v25 = vadd.f32 %v4538_v34, %v2035_v60  ;;  %v2028_v47 = vand.u32 2147483648, %v4553_v56 }
 0x1e8   : > { %2323 = vrot.lane.b32.xlu0 %v4504_v19, %s3413_s5  ;;  %3343 = vpow2.f32 %v3050_v48  ;;  %v1985_v22 = vsel %vm1982_vm10, %v1984_v62, %v1980_v49  ;;  %vm2022_vm4 = vweird.f32 %v4553_v56  ;;  %v2026_v4 = vand.u32 2147483647, %v4553_v56 }
 0x1e9   : > { %v1378_v43 = vpop.f32.mrf.mxu2  ;;  %3345 = vrcp.f32 %v4571_v17  ;;  %v2040_v11 = vsel %vm2039_vm13, %v4538_v34, %v2036_v25  ;;  %v2029_v37 = vor.u32 1.1754944e-38, %v2028_v47  ;;  %v2088_v49 = vand.u32 2147483648, %v4571_v17 }
 0x1ea   : > { %v1379_v42 = vadd.f32 %v1378_v43, %v1290_v53  ;;  %v2296_v6 = vpop.permute.xlu1 %2295  ;;  %v1467_v3 = vpop.f32.mrf.mxu3  ;;  %v2004_v53 = vsub.f32 1.0, %v2003_v51  ;;  %v2218_v43 = vmul.f32 %v2186_v27, %v1985_v22  ;;  %3347 = vpow2.f32 %v3051_v44 }
 0x1eb   : > { %v2375_v5 = vadd.f32 %v2296_v6, %v2215_v61  ;;  %v2041_v61 = vand.u32 2147483647, %v4502_v54  ;;  %vm2027_vm6 = vcmp.eq.f32.partialorder %v2026_v4, 8.507059e+37  ;;  %v3054_v60 = vmul.f32 -1.442695, %v4448_v41 }
 0x1ec   : > { %v1468_v35 = vadd.f32 %v1467_v3, %v1379_v42  ;;  %v4576_v38 = vpop.eup %3341  ;;  %v2005_v16 = vmul.f32 %v4558_v1, %v2004_v53  ;;  %vm2082_vm9 = vweird.f32 %v4571_v17  ;;  %v2086_v62 = vand.u32 2147483647, %v4571_v17 }
 0x1ed   : > { %2408 = vst.msk [vmem:[%s4036_s11 + $0x80] sm:$0xff] %vm2391_vm8, %v2375_v5  ;;  %v2018_v3 = vmul.f32 %v4576_v38, %v4553_v56  ;;  %vm2042_vm14 = vcmp.eq.f32.partialorder %v2041_v61, 8.507059e+37  ;;  %vm2023_vm3 = vweird.f32 %v4576_v38  ;;  %v2089_v41 = vor.u32 1.1754944e-38, %v2088_v49 }
 0x1ee   : > { %v4533_v18 = vadd.f32 %v1556_v40, %v1468_v35  ;;  %v3344_v42 = vpop.eup %3343  ;;  %v2045_v54 = vsel %vm2042_vm14, %v2044_v36, %v2040_v11  ;;  %v2006_v15 = vadd.f32 %v4558_v1, %v2005_v16  ;;  %v3055_v40 = vmul.f32 -1.442695, %v4473_v9  ;;  %vm2024_vm5 = vmor %vm2022_vm4, %vm2023_vm3 }
 0x1ef   : > { %v4589_v5 = vadd.f32 1.0, %v3344_v42  ;;  %v2019_v13 = vsub.f32 1.0, %v2018_v3  ;;  %v4594_v35 = vpop.eup %3345  ;;  %v2222_v2 = vmul.f32 %v2190_v55, %v2045_v54  ;;  %v2014_v9 = vor.u32 1.1754944e-38, %v2013_v7 }
 0x1f0   : > { %2325 = vrot.lane.b32.xlu1 %v4533_v18, %s3413_s5  ;;  %v3348_v10 = vpop.eup %3347  ;;  %v2010_v39 = vsel %vm2009_vm1, %v4558_v1, %v2006_v15  ;;  %vm2083_vm7 = vweird.f32 %v4594_v35  ;;  %vm2087_vm11 = vcmp.eq.f32.partialorder %v2086_v62, 8.507059e+37  ;;  %v3057_v4 = vmul.f32 -1.442695, %v4533_v18 }
 0x1f1   : > { %3349 = vrcp.f32 %v4589_v5  ;;  %v2020_v20 = vmul.f32 %v4576_v38, %v2019_v13  ;;  %v4607_v21 = vadd.f32 1.0, %v3348_v10  ;;  %v2015_v30 = vsel %vm2012_vm2, %v2014_v9, %v2010_v39  ;;  %vm2084_vm10 = vmor %vm2082_vm9, %vm2083_vm7 }
 0x1f2   : > { %v2304_v32 = vpop.permute.xlu2 %2303  ;;  %3351 = vpow2.f32 %v3055_v40  ;;  %vm2052_vm13 = vweird.f32 %v4589_v5  ;;  %v2056_v16 = vand.u32 2147483647, %v4589_v5  ;;  %v2191_v40 = vld [vmem:[%s4005_s8 + $0xc0] sm:$0xff] }
 0x1f3   : > { %v2379_v31 = vadd.f32 %v2304_v32, %v2219_v57  ;;  %v2078_v57 = vmul.f32 %v4594_v35, %v4571_v17  ;;  %v2188_v32 = vld [vmem:[%s4005_s8 + $0xa8] sm:$0xff]  ;;  %v2021_v45 = vadd.f32 %v4576_v38, %v2020_v20  ;;  %3353 = vrcp.f32 %v4607_v21 }
 0x1f4   : > { %v2220_v24 = vmul.f32 %v2188_v32, %v2015_v30  ;;  %3355 = vpow2.f32 %v3053_v46  ;;  %vm2057_vm15 = vcmp.eq.f32.partialorder %v2056_v16, 8.507059e+37  ;;  %v2073_v10 = vand.u32 2147483648, %v4607_v21 }
 0x1f5   : > { %2412 = vst.msk [vmem:[%s4036_s11 + $0xa0] sm:$0xff] %vm2391_vm8, %v2379_v31  ;;  %v2079_v31 = vsub.f32 1.0, %v2078_v57  ;;  %v2025_v1 = vsel %vm2024_vm5, %v4576_v38, %v2021_v45  ;;  %vm2067_vm1 = vweird.f32 %v4607_v21  ;;  %v2071_v20 = vand.u32 2147483647, %v4607_v21 }
 0x1f6   : > { %v2030_v56 = vsel %vm2027_vm6, %v2029_v37, %v2025_v1 }
 0x1f7   : > { %v4612_v52 = vpop.eup %3349  ;;  %v2080_v8 = vmul.f32 %v4594_v35, %v2079_v31  ;;  %v2221_v51 = vmul.f32 %v2189_v14, %v2030_v56  ;;  %v2074_v31 = vor.u32 1.1754944e-38, %v2073_v10  ;;  %vm2072_vm3 = vcmp.eq.f32.partialorder %v2071_v20, 8.507059e+37 }
 0x1f8   : > { %v3352_v28 = vpop.eup %3351  ;;  %v2048_v48 = vmul.f32 %v4612_v52, %v4589_v5  ;;  %vm2053_vm12 = vweird.f32 %v4612_v52 }
 0x1f9   : > { %vm2054_vm14 = vmor %vm2052_vm13, %vm2053_vm12 }
 0x1fa   : > { %v2300_v26 = vpop.permute.xlu0 %2299  ;;  %v2049_v33 = vsub.f32 1.0, %v2048_v48 }
 0x1fb   : > { %v2377_v12 = vadd.f32 %v2300_v26, %v2217_v23  ;;  %v4625_v23 = vadd.f32 1.0, %v3352_v28  ;;  %v2081_v26 = vadd.f32 %v4594_v35, %v2080_v8 }
 0x1fc   : > { %v2050_v38 = vmul.f32 %v4612_v52, %v2049_v33  ;;  %v2196_v33 = vld [vmem:[%s4005_s8 + $0xe8] sm:$0xff] }
 0x1fd   : > { %2410 = vst.msk [vmem:[%s4036_s11 + $0x90] sm:$0xff] %vm2391_vm8, %v2377_v12  ;;  %v4630_v12 = vpop.eup %3353  ;;  %3357 = vrcp.f32 %v4625_v23  ;;  %v2085_v53 = vsel %vm2084_vm10, %v4594_v35, %v2081_v26  ;;  %vm2127_vm5 = vweird.f32 %v4625_v23  ;;  %v2131_v28 = vand.u32 2147483647, %v4625_v23 }
 0x1fe   : > { %v3356_v27 = vpop.eup %3355  ;;  %v2063_v59 = vmul.f32 %v4630_v12, %v4607_v21  ;;  %3359 = vpow2.f32 %v3054_v60  ;;  %v2090_v17 = vsel %vm2087_vm11, %v2089_v41, %v2085_v53  ;;  %v2051_v61 = vadd.f32 %v4612_v52, %v2050_v38 }
 0x1ff   : > { %v4643_v44 = vadd.f32 1.0, %v3356_v27  ;;  %vm2068_vm0 = vweird.f32 %v4630_v12  ;;  %vm2132_vm7 = vcmp.eq.f32.partialorder %v2131_v28, 8.507059e+37 }
 0x200   : > { %v2055_v55 = vsel %vm2054_vm14, %v4612_v52, %v2051_v61  ;;  %vm2069_vm2 = vmor %vm2067_vm1, %vm2068_vm0  ;;  %v2192_v52 = vld [vmem:[%s4005_s8 + $0xc8] sm:$0xff] }
 0x201   : > { %3361 = vrcp.f32 %v4643_v44  ;;  %v2103_v49 = vand.u32 2147483648, %v4643_v44  ;;  %vm2097_vm10 = vweird.f32 %v4643_v44 }
 0x202   : > { %v2302_v0 = vpop.permute.xlu1 %2301 }
 0x203   : > { %v2378_v6 = vadd.f32 %v2302_v0, %v2218_v43  ;;  %v2193_v43 = vld [vmem:[%s4005_s8 + $0xd0] sm:$0xff]  ;;  %v2064_v0 = vsub.f32 1.0, %v2063_v59  ;;  %v4648_v42 = vpop.eup %3357  ;;  %v2104_v38 = vor.u32 1.1754944e-38, %v2103_v49 }
 0x204   : > { %v2225_v11 = vmul.f32 %v2193_v43, %v2090_v17  ;;  %v3360_v36 = vpop.eup %3359  ;;  %v2123_v13 = vmul.f32 %v4648_v42, %v4625_v23  ;;  %vm2128_vm4 = vweird.f32 %v4648_v42  ;;  %v2194_v17 = vld [vmem:[%s4005_s8 + $0xd8] sm:$0xff] }
 0x205   : > { %2411 = vst.msk [vmem:[%s4036_s11 + $0x98] sm:$0xff] %vm2391_vm8, %v2378_v6  ;;  %v2058_v6 = vand.u32 2147483648, %v4589_v5  ;;  %v2065_v15 = vmul.f32 %v4630_v12, %v2064_v0  ;;  %v4660_v7 = vadd.f32 1.0, %v3360_v36  ;;  %vm2129_vm6 = vmor %vm2127_vm5, %vm2128_vm4 }
 0x206   : > { %v2124_v29 = vsub.f32 1.0, %v2123_v13 }
 0x207   : > { %v2059_v35 = vor.u32 1.1754944e-38, %v2058_v6  ;;  %3363 = vrcp.f32 %v4660_v7  ;;  %vm2112_vm14 = vweird.f32 %v4660_v7 }
 0x208   : > { %v2125_v32 = vmul.f32 %v4648_v42, %v2124_v29 }
 0x209   : > { %v2060_v5 = vsel %vm2057_vm15, %v2059_v35, %v2055_v55  ;;  %v2195_v55 = vld [vmem:[%s4005_s8 + $0xe0] sm:$0xff] }
 0x20a   : > { %v2310_v63 = vpop.permute.xlu2 %2309  ;;  %v2223_v39 = vmul.f32 %v2191_v40, %v2060_v5  ;;  %v2126_v21 = vadd.f32 %v4648_v42, %v2125_v32 }
 0x20b   : > { %v2382_v34 = vadd.f32 %v2310_v63, %v2222_v2  ;;  %v2066_v2 = vadd.f32 %v4630_v12, %v2065_v15  ;;  %v3362_v63 = vpop.eup %3361 }
 0x20c   : > { %v2093_v45 = vmul.f32 %v3362_v63, %v4643_v44  ;;  %v2130_v48 = vsel %vm2129_vm6, %v4648_v42, %v2126_v21  ;;  %vm2098_vm9 = vweird.f32 %v3362_v63  ;;  %v2116_v42 = vand.u32 2147483647, %v4660_v7 }
 0x20d   : > { %2415 = vst.msk [vmem:[%s4036_s11 + $0xb8] sm:$0xff] %vm2391_vm8, %v2382_v34  ;;  %v3056_v34 = vmul.f32 -1.442695, %v4504_v19  ;;  %v2070_v30 = vsel %vm2069_vm2, %v4630_v12, %v2066_v2  ;;  %v3364_v46 = vpop.eup %3363  ;;  %vm2099_vm11 = vmor %vm2097_vm10, %vm2098_vm9 }
 0x20e   : > { %v2075_v19 = vsel %vm2072_vm3, %v2074_v31, %v2070_v30  ;;  %v2094_v47 = vsub.f32 1.0, %v2093_v45  ;;  %v2108_v56 = vmul.f32 %v3364_v46, %v4660_v7  ;;  %vm2113_vm13 = vweird.f32 %v3364_v46  ;;  %v2197_v30 = vld [vmem:[%s4005_s8 + $0xf0] sm:$0xff] }
 0x20f   : > { %3365 = vpow2.f32 %v3056_v34  ;;  %vm2114_vm15 = vmor %vm2112_vm14, %vm2113_vm13  ;;  %vm2117_vm0 = vcmp.eq.f32.partialorder %v2116_v42, 8.507059e+37 }
 0x210   : > { %v2095_v37 = vmul.f32 %v3362_v63, %v2094_v47  ;;  %3367 = vpow2.f32 %v3057_v4  ;;  %v2198_v4 = vld [vmem:[%s4005_s8 + $0xf8] sm:$0xff] }
 0x212   : > { %v2306_v58 = vpop.permute.xlu0 %2305  ;;  %v2096_v12 = vadd.f32 %v3362_v63, %v2095_v37 }
 0x213   : > { %v2380_v50 = vadd.f32 %v2306_v58, %v2220_v24  ;;  %v2133_v24 = vand.u32 2147483648, %v4625_v23  ;;  %v2224_v58 = vmul.f32 %v2192_v52, %v2075_v19  ;;  %v2109_v23 = vsub.f32 1.0, %v2108_v56 }
 0x215   : > { %2413 = vst.msk [vmem:[%s4036_s11 + $0xa8] sm:$0xff] %vm2391_vm8, %v2380_v50  ;;  %v3366_v1 = vpop.eup %3365  ;;  %v2134_v14 = vor.u32 1.1754944e-38, %v2133_v24  ;;  %v2110_v53 = vmul.f32 %v3364_v46, %v2109_v23 }
 0x216   : > { %v1685_v18 = vadd.f32 1.0, %v3366_v1 }
 0x217   : > { %v2135_v26 = vsel %vm2132_vm7, %v2134_v14, %v2130_v48  ;;  %v2111_v43 = vadd.f32 %v3364_v46, %v2110_v53 }
 0x218   : > { %v2228_v60 = vmul.f32 %v2196_v33, %v2135_v26  ;;  %3369 = vrcp.f32 %v1685_v18  ;;  %v2148_v10 = vand.u32 2147483648, %v1685_v18  ;;  %vm2142_vm2 = vweird.f32 %v1685_v18 }
 0x219   : > { %v2115_v16 = vsel %vm2114_vm15, %v3364_v46, %v2111_v43  ;;  %v2146_v34 = vand.u32 2147483647, %v1685_v18 }
 0x21a   : > { %v2308_v22 = vpop.permute.xlu1 %2307 }
 0x21b   : > { %v2381_v25 = vadd.f32 %v2308_v22, %v2221_v51  ;;  %v2101_v51 = vand.u32 2147483647, %v4643_v44  ;;  %v3368_v22 = vpop.eup %3367  ;;  %v2118_v44 = vand.u32 2147483648, %v4660_v7  ;;  %vm2147_vm4 = vcmp.eq.f32.partialorder %v2146_v34, 8.507059e+37 }
 0x21c   : > { %v1686_v59 = vadd.f32 1.0, %v3368_v22 }
 0x21d   : > { %2414 = vst.msk [vmem:[%s4036_s11 + $0xb0] sm:$0xff] %vm2391_vm8, %v2381_v25  ;;  %v2100_v25 = vsel %vm2099_vm11, %v3362_v63, %v2096_v12  ;;  %vm2102_vm12 = vcmp.eq.f32.partialorder %v2101_v51, 8.507059e+37  ;;  %v2119_v36 = vor.u32 1.1754944e-38, %v2118_v44 }
 0x21e   : > { %v2105_v41 = vsel %vm2102_vm12, %v2104_v38, %v2100_v25  ;;  %v3370_v61 = vpop.eup %3369  ;;  %3371 = vrcp.f32 %v1686_v59  ;;  %v2163_v45 = vand.u32 2147483648, %v1686_v59  ;;  %vm2157_vm6 = vweird.f32 %v1686_v59 }
 0x21f   : > { %v2226_v0 = vmul.f32 %v2194_v17, %v2105_v41  ;;  %vm2143_vm1 = vweird.f32 %v3370_v61  ;;  %v2161_v19 = vand.u32 2147483647, %v1686_v59 }
 0x220   : > { %vm2144_vm3 = vmor %vm2142_vm2, %vm2143_vm1  ;;  %v2164_v46 = vor.u32 1.1754944e-38, %v2163_v45 }
 0x221   : > { %vm2162_vm9 = vcmp.eq.f32.partialorder %v2161_v19, 8.507059e+37 }
 0x222   : > { %v2316_v3 = vpop.permute.xlu2 %2315 }
 0x223   : > { %v2385_v54 = vadd.f32 %v2316_v3, %v2225_v11  ;;  %v2138_v3 = vmul.f32 %v3370_v61, %v1685_v18 }
 0x224   : > { %v3372_v13 = vpop.eup %3371 }
 0x225   : > { %2418 = vst.msk [vmem:[%s4036_s11 + $0xd0] sm:$0xff] %vm2391_vm8, %v2385_v54  ;;  %v2120_v54 = vsel %vm2117_vm0, %v2119_v36, %v2115_v16  ;;  %v2139_v15 = vsub.f32 1.0, %v2138_v3  ;;  %v2153_v2 = vmul.f32 %v3372_v13, %v1686_v59  ;;  %vm2158_vm5 = vweird.f32 %v3372_v13 }
 0x226   : > { %v2227_v35 = vmul.f32 %v2195_v55, %v2120_v54  ;;  %vm2159_vm7 = vmor %vm2157_vm6, %vm2158_vm5 }
 0x227   : > { %v2140_v7 = vmul.f32 %v3370_v61, %v2139_v15  ;;  %v2154_v63 = vsub.f32 1.0, %v2153_v2 }
 0x229   : > { %v2141_v29 = vadd.f32 %v3370_v61, %v2140_v7  ;;  %v2155_v20 = vmul.f32 %v3372_v13, %v2154_v63 }
 0x22a   : > { %v2312_v57 = vpop.permute.xlu0 %2311 }
 0x22b   : > { %v2383_v9 = vadd.f32 %v2312_v57, %v2223_v39  ;;  %v2145_v39 = vsel %vm2144_vm3, %v3370_v61, %v2141_v29  ;;  %v2149_v57 = vor.u32 1.1754944e-38, %v2148_v10  ;;  %v2156_v32 = vadd.f32 %v3372_v13, %v2155_v20 }
 0x22d   : > { %2416 = vst.msk [vmem:[%s4036_s11 + $0xc0] sm:$0xff] %vm2391_vm8, %v2383_v9  ;;  %v2150_v9 = vsel %vm2147_vm4, %v2149_v57, %v2145_v39  ;;  %v2160_v47 = vsel %vm2159_vm7, %v3372_v13, %v2156_v32 }
 0x22e   : > { %v2229_v31 = vmul.f32 %v2197_v30, %v2150_v9  ;;  %v2165_v24 = vsel %vm2162_vm9, %v2164_v46, %v2160_v47 }
 0x232   : > { %v2314_v50 = vpop.permute.xlu1 %2313 }
 0x233   : > { %v2384_v8 = vadd.f32 %v2314_v50, %v2224_v58  ;;  %v2230_v58 = vmul.f32 %v2198_v4, %v2165_v24 }
 0x235   : > { %2417 = vst.msk [vmem:[%s4036_s11 + $0xc8] sm:$0xff] %vm2391_vm8, %v2384_v8 }
 0x23a   : > { %v2322_v62 = vpop.permute.xlu2 %2321 }
 0x23b   : > { %v2388_v27 = vadd.f32 %v2322_v62, %v2228_v60 }
 0x23d   : > { %2421 = vst.msk [vmem:[%s4036_s11 + $0xe8] sm:$0xff] %vm2391_vm8, %v2388_v27 }
 0x242   : > { %v2318_v6 = vpop.permute.xlu0 %2317 }
 0x243   : > { %v2386_v11 = vadd.f32 %v2318_v6, %v2226_v0 }
 0x245   : > { %2419 = vst.msk [vmem:[%s4036_s11 + $0xd8] sm:$0xff] %vm2391_vm8, %v2386_v11 }
 0x24a   : > { %v2320_v5 = vpop.permute.xlu1 %2319 }
 0x24b   : > { %v2387_v40 = vadd.f32 %v2320_v5, %v2227_v35 }
 0x24d   : > { %2420 = vst.msk [vmem:[%s4036_s11 + $0xe0] sm:$0xff] %vm2391_vm8, %v2387_v40 }
 0x25a   : > { %v2324_v52 = vpop.permute.xlu0 %2323 }
 0x25b   : > { %v2389_v21 = vadd.f32 %v2324_v52, %v2229_v31 }
 0x25d   : > { %2422 = vst.msk [vmem:[%s4036_s11 + $0xf0] sm:$0xff] %vm2391_vm8, %v2389_v21 }
 0x262   : > { %v2326_v28 = vpop.permute.xlu1 %2325 }
 0x263   : > { %v2390_v50 = vadd.f32 %v2326_v28, %v2230_v58 }
 0x265   : > { %2423 = vst.msk [vmem:[%s4036_s11 + $0xf8] sm:$0xff] %vm2391_vm8, %v2390_v50 }
 0x266 PF: > { %s14_s19 = sadd.s32 1, %s3411_s19   ;;  %s4757_s15 = smov %s3403_s17 }
 0x267   : > { %p11_p7 = scmp.ge.s32.totalorder %s14_s19, 20   ;;  %s4758_s16 = smov %s3407_s18 }
 0x268   : > { %s4759_s17 = smov %s4762_s20  ;;  %s4760_s18 = smov %s4766_s21 }
 0x269   :  { %13 = sbr.rel (!%p11_p7) target bundleno = 3 (0x3), region = 69 }

// kernel: residual_group_forward.12
= control target key start
LH: loop header
LB: loop body
LE: loop exit
PB: predicated region body
PF: predicated region fallthrough
CT: control target
= control target key end

     0   :  { %s756_s9 = smov 0   ;;  %s758_s10 = smov 0   ;;  %s866_s0 = inlined_call_operand.vmem [shape: f32[2,48,1536], index: 0, kind: input, shape index: {}]   ;;  %s867_s1 = inlined_call_operand.vmem [shape: f32[2,48,1536], index: 1, kind: input, shape index: {}]   ;;  %s868_s2 = inlined_call_operand.vmem [shape: f32[2,48,1536], index: 2, kind: output, shape index: {}]  }
   0x1   :  { %s760_s11 = smov 0   ;;  %s762_s12 = smov 0  }
   0x2   :  { %s764_s13 = smov 0  }
   0x3 LB: > { %s21_s14 = sadd.s32 1, %s731_s11  ;;  %s24_s15 = sadd.s32 1, %s735_s12  ;;  %s739_s13 = sphi %s764_s13, %s12_s13   ;;  %s735_s12 = sphi %s762_s12, %s872_s12   ;;  %s731_s11 = sphi %s760_s11, %s871_s11   ;;  %s727_s10 = sphi %s758_s10, %s870_s10   ;;  %s723_s9 = sphi %s756_s9, %s869_s9  }
   0x4   : > { %p22_p0 = scmp.ge.s32.totalorder %s21_s14, 6  ;;  %p597_p1 = scmp.ge.s32.totalorder %s739_s13, 1 }
   0x5   : > { %p176_p2 = scmp.lt.s32.totalorder %s739_s13, 13 }
   0x6   : > { %s874_s14 = smov (%p22_p0, %s21_s14), 0  ;;  %s876_s15 = smov (!%p22_p0, %s24_s15), %s735_s12 }
   0x7   : > { %p177_p3 = pnand %p597_p1, %p176_p2  ;;  %p26_p4 = scmp.ge.s32.totalorder %s876_s15, 2 }
   0x8   : > { %p229_p5 = scmp.lt.s32.totalorder (!%p177_p3), %s727_s10, 1  ;;  %p231_p6 = scmp.lt.s32.totalorder (!%p177_p3), %s723_s9, 5 }
   0x9   : > { %s878_s15 = smov (%p26_p4, %s876_s15), 0  ;;  %180 = sbr.rel (%p177_p3) target bundleno = 73 (0x49), region = 28 }
   0xa   : > { %s786_s16 = sadd.s32 (!%p177_p3), 3, %s723_s9 }
   0xb   : > { %s249_s19 = ssub.s32 (!%p177_p3), 0, %s786_s16  ;;  %p248_p7 = scmp.lt.s32.totalorder (!%p177_p3), %s786_s16, 0 }
   0xc   : > { %s600_s20 = smin.u32 (!%p177_p3), %s249_s19, %s786_s16 }
   0xd   : > { %650 = sdivrem.u32 (!%p177_p3), %s600_s20, 6 }
   0xe   : > { %s880_s10 = smov (!%p229_p5, %s727_s10), 1  ;;  %s882_s9 = smov (!%p231_p6, %s723_s9), 5 }
   0xf   : > { %s607_s17 = smul.u32 72, %s880_s10 }
  0x10   : > { %s606_s18 = smul.u32 12, %s882_s9 }
  0x12   : > { %s235_s21 = sadd.s32 %s607_s17, %s606_s18 }
  0x13   : > { %s598_s22 = sshll.u32 %s235_s21, 3 }
  0x14   : > { %s798_s25 = scalar_lea.vmem %s866_s0, %s598_s22  ;;  %s803_s28 = scalar_lea.vmem %s867_s1, %s598_s22 }
  0x15   : > { %v290_v0 = vld [vmem:[%s798_s25 + $0x30] sm:$0xff]  ;;  %v291_v2 = vld [vmem:[%s798_s25 + $0x38] sm:$0xff]  ;;  %v292_v7 = vld [vmem:[%s798_s25 + $0x40] sm:$0xff] }
  0x16   : > { %v314_v1 = vld [vmem:[%s803_s28 + $0x30] sm:$0xff]  ;;  %v302_v3 = vmul.f32 %v290_v0, %v290_v0  ;;  %v303_v5 = vmul.f32 %v291_v2, %v291_v2  ;;  %v315_v6 = vld [vmem:[%s803_s28 + $0x38] sm:$0xff]  ;;  %v316_v8 = vld [vmem:[%s803_s28 + $0x40] sm:$0xff]  ;;  %v304_v10 = vmul.f32 %v292_v7, %v292_v7  ;;  %s651_s29 = spop.drf %650 }
  0x17   : > { %v326_v4 = vmul.f32 %v314_v1, %v314_v1  ;;  %v327_v9 = vmul.f32 %v315_v6, %v315_v6  ;;  %v328_v11 = vmul.f32 %v316_v8, %v316_v8  ;;  %v293_v12 = vld [vmem:[%s798_s25 + $0x48] sm:$0xff]  ;;  %v294_v14 = vld [vmem:[%s798_s25 + $0x50] sm:$0xff]  ;;  %v295_v20 = vld [vmem:[%s798_s25 + $0x58] sm:$0xff]  ;;  %s652_s30 = spop.drf %650 }
  0x18   : > { %v317_v13 = vld [vmem:[%s803_s28 + $0x48] sm:$0xff]  ;;  %v305_v16 = vmul.f32 %v293_v12, %v293_v12  ;;  %v306_v18 = vmul.f32 %v294_v14, %v294_v14  ;;  %v318_v19 = vld [vmem:[%s803_s28 + $0x50] sm:$0xff]  ;;  %v319_v21 = vld [vmem:[%s803_s28 + $0x58] sm:$0xff]  ;;  %v307_v25 = vmul.f32 %v295_v20, %v295_v20  ;;  %s253_s3 = ssub.s32 0, %s652_s30 }
  0x19   : > { %v338_v15 = vadd.f32 %v326_v4, %v302_v3  ;;  %v329_v17 = vmul.f32 %v317_v13, %v317_v13  ;;  %v339_v22 = vadd.f32 %v327_v9, %v303_v5  ;;  %v340_v23 = vadd.f32 %v328_v11, %v304_v10  ;;  %v284_v26 = vld [vmem:[%s798_s25] sm:$0xff]  ;;  %v285_v28 = vld [vmem:[%s798_s25 + $0x8] sm:$0xff]  ;;  %v286_v38 = vld [vmem:[%s798_s25 + $0x10] sm:$0xff]  ;;  %s884_s3 = smov (!%p248_p7, %s253_s3), %s652_s30 }
  0x1a   : > { %v330_v24 = vmul.f32 %v318_v19, %v318_v19  ;;  %v308_v27 = vld [vmem:[%s803_s28] sm:$0xff]  ;;  %v331_v31 = vmul.f32 %v319_v21, %v319_v21  ;;  %v296_v32 = vmul.f32 %v284_v26, %v284_v26  ;;  %v309_v33 = vld [vmem:[%s803_s28 + $0x8] sm:$0xff]  ;;  %v310_v39 = vld [vmem:[%s803_s28 + $0x10] sm:$0xff]  ;;  %v297_v42 = vmul.f32 %v285_v28, %v285_v28  ;;  %p602_p8 = scmp.lt.s32.totalorder %s884_s3, 0  ;;  %s259_s4 = sadd.s32 6, %s884_s3 }
  0x1b   : > { %v350_v29 = vadd.f32 1e-16, %v338_v15  ;;  %v341_v30 = vadd.f32 %v329_v17, %v305_v16  ;;  %v351_v34 = vadd.f32 1e-16, %v339_v22  ;;  %v352_v35 = vadd.f32 1e-16, %v340_v23 }
  0x1c   : > { %v342_v36 = vadd.f32 %v330_v24, %v306_v18  ;;  %v320_v37 = vmul.f32 %v308_v27, %v308_v27  ;;  %v343_v41 = vadd.f32 %v331_v31, %v307_v25  ;;  %v287_v43 = vld [vmem:[%s798_s25 + $0x18] sm:$0xff]  ;;  %v321_v46 = vmul.f32 %v309_v33, %v309_v33  ;;  %v288_v48 = vld [vmem:[%s798_s25 + $0x20] sm:$0xff]  ;;  %s886_s4 = smov (!%p602_p8, %s259_s4), %s884_s3  ;;  %v289_v0 = vld [vmem:[%s798_s25 + $0x28] sm:$0xff] }
  0x1d   : > { %653 = vlog2.f32 %v350_v29  ;;  %v353_v40 = vadd.f32 1e-16, %v341_v30  ;;  %v311_v47 = vld [vmem:[%s803_s28 + $0x18] sm:$0xff]  ;;  %v298_v50 = vmul.f32 %v286_v38, %v286_v38  ;;  %v322_v51 = vmul.f32 %v310_v39, %v310_v39  ;;  %v312_v52 = vld [vmem:[%s803_s28 + $0x20] sm:$0xff]  ;;  %v313_v4 = vld [vmem:[%s803_s28 + $0x28] sm:$0xff]  ;;  %p263_p9 = scmp.lt.s32.totalorder %s886_s4, 5 }
  0x1e   : > { %655 = vlog2.f32 %v351_v34  ;;  %v354_v44 = vadd.f32 1e-16, %v342_v36  ;;  %v332_v45 = vadd.f32 %v320_v37, %v296_v32  ;;  %v355_v49 = vadd.f32 1e-16, %v343_v41 }
  0x1f   : > { %657 = vlog2.f32 %v352_v35  ;;  %v333_v54 = vadd.f32 %v321_v46, %v297_v42  ;;  %v299_v55 = vmul.f32 %v287_v43, %v287_v43  ;;  %v334_v56 = vadd.f32 %v322_v51, %v298_v50  ;;  %s888_s4 = smov (!%p263_p9, %s886_s4), 5 }
  0x20   : > { %659 = vlog2.f32 %v353_v40  ;;  %v344_v53 = vadd.f32 1e-16, %v332_v45  ;;  %v323_v57 = vmul.f32 %v311_v47, %v311_v47  ;;  %v300_v58 = vmul.f32 %v288_v48, %v288_v48  ;;  %s608_s5 = smul.u32 12, %s888_s4 }
  0x21   : > { %661 = vlog2.f32 %v354_v44  ;;  %v345_v59 = vadd.f32 1e-16, %v333_v54  ;;  %v324_v60 = vmul.f32 %v312_v52, %v312_v52  ;;  %v346_v62 = vadd.f32 1e-16, %v334_v56 }
  0x22   : > { %663 = vlog2.f32 %v355_v49  ;;  %v335_v63 = vadd.f32 %v323_v57, %v299_v55  ;;  %v301_v12 = vmul.f32 %v289_v0, %v289_v0  ;;  %v325_v16 = vmul.f32 %v313_v4, %v313_v4  ;;  %s267_s6 = sadd.s32 %s608_s5, %s607_s17 }
  0x23   : > { %v654_v61 = vpop.eup %653  ;;  %665 = vlog2.f32 %v344_v53  ;;  %v336_v3 = vadd.f32 %v324_v60, %v300_v58  ;;  %s603_s7 = sshll.u32 %s267_s6, 3 }
  0x24   : > { %v656_v1 = vpop.eup %655  ;;  %v369_v2 = vmul.f32 0.6931472, %v654_v61  ;;  %667 = vlog2.f32 %v345_v59  ;;  %v347_v7 = vadd.f32 1e-16, %v335_v63  ;;  %v337_v34 = vadd.f32 %v325_v16, %v301_v12  ;;  %s837_s10 = scalar_lea.vmem %s868_s2, %s603_s7 }
  0x25   : > { %v658_v5 = vpop.eup %657  ;;  %v371_v6 = vmul.f32 0.6931472, %v656_v1  ;;  %669 = vlog2.f32 %v346_v62  ;;  %v348_v11 = vadd.f32 1e-16, %v336_v3 }
  0x26   : > { %v660_v8 = vpop.eup %659  ;;  %v386_v9 = vmul.f32 0.4, %v369_v2  ;;  %v373_v10 = vmul.f32 0.6931472, %v658_v5  ;;  %671 = vlog2.f32 %v347_v7  ;;  %v349_v50 = vadd.f32 1e-16, %v337_v34 }
  0x27   : > { %v662_v13 = vpop.eup %661  ;;  %v387_v14 = vmul.f32 0.4, %v371_v6  ;;  %v375_v15 = vmul.f32 0.6931472, %v660_v8  ;;  %673 = vlog2.f32 %v348_v11 }
  0x28   : > { %v664_v17 = vpop.eup %663  ;;  %v404_v18 = vmul.f32 1.442695, %v386_v9  ;;  %v388_v19 = vmul.f32 0.4, %v373_v10  ;;  %v377_v20 = vmul.f32 0.6931472, %v662_v13 }
  0x29   : > { %v666_v21 = vpop.eup %665  ;;  %v406_v22 = vmul.f32 1.442695, %v387_v14  ;;  %v389_v23 = vmul.f32 0.4, %v375_v15  ;;  %v379_v27 = vmul.f32 0.6931472, %v664_v17 }
  0x2a   : > { %v668_v24 = vpop.eup %667  ;;  %675 = vpow2.f32 %v404_v18  ;;  %v408_v25 = vmul.f32 1.442695, %v388_v19  ;;  %v390_v26 = vmul.f32 0.4, %v377_v20  ;;  %v357_v30 = vmul.f32 0.6931472, %v666_v21 }
  0x2b   : > { %v670_v28 = vpop.eup %669  ;;  %677 = vpow2.f32 %v406_v22  ;;  %v410_v29 = vmul.f32 1.442695, %v389_v23  ;;  %v359_v31 = vmul.f32 0.6931472, %v668_v24  ;;  %v391_v33 = vmul.f32 0.4, %v379_v27 }
  0x2c   : > { %679 = vpow2.f32 %v408_v25  ;;  %v412_v32 = vmul.f32 1.442695, %v390_v26  ;;  %v672_v35 = vpop.eup %671  ;;  %v380_v36 = vmul.f32 0.4, %v357_v30  ;;  %v361_v38 = vmul.f32 0.6931472, %v670_v28 }
  0x2d   : > { %681 = vpow2.f32 %v410_v29  ;;  %v381_v37 = vmul.f32 0.4, %v359_v31  ;;  %v674_v39 = vpop.eup %673  ;;  %v414_v40 = vmul.f32 1.442695, %v391_v33  ;;  %v363_v41 = vmul.f32 0.6931472, %v672_v35 }
  0x2e   : > { %683 = vpow2.f32 %v412_v32  ;;  %v392_v42 = vmul.f32 1.442695, %v380_v36  ;;  %v382_v44 = vmul.f32 0.4, %v361_v38  ;;  %v365_v47 = vmul.f32 0.6931472, %v674_v39 }
  0x2f   : > { %v394_v43 = vmul.f32 1.442695, %v381_v37  ;;  %685 = vpow2.f32 %v414_v40  ;;  %v383_v46 = vmul.f32 0.4, %v363_v41 }
  0x30   : > { %v676_v45 = vpop.eup %675  ;;  %687 = vpow2.f32 %v392_v42  ;;  %v396_v49 = vmul.f32 1.442695, %v382_v44  ;;  %v384_v53 = vmul.f32 0.4, %v365_v47 }
  0x31   : > { %v678_v48 = vpop.eup %677  ;;  %416 = vst [vmem:[%s837_s10] sm:$0xff] %v676_v45  ;;  %689 = vpow2.f32 %v394_v43  ;;  %v398_v52 = vmul.f32 1.442695, %v383_v46 }
  0x32   : > { %v680_v51 = vpop.eup %679  ;;  %417 = vst [vmem:[%s837_s10 + $0x8] sm:$0xff] %v678_v48  ;;  %691 = vpow2.f32 %v396_v49  ;;  %v400_v56 = vmul.f32 1.442695, %v384_v53 }
  0x33   : > { %v682_v54 = vpop.eup %681  ;;  %418 = vst [vmem:[%s837_s10 + $0x10] sm:$0xff] %v680_v51  ;;  %693 = vpow2.f32 %v398_v52 }
  0x34   : > { %v684_v55 = vpop.eup %683  ;;  %419 = vst [vmem:[%s837_s10 + $0x18] sm:$0xff] %v682_v54  ;;  %695 = vlog2.f32 %v349_v50 }
  0x35   : > { %420 = vst [vmem:[%s837_s10 + $0x20] sm:$0xff] %v684_v55  ;;  %v686_v57 = vpop.eup %685  ;;  %697 = vpow2.f32 %v400_v56 }
  0x36   : > { %v688_v58 = vpop.eup %687  ;;  %421 = vst [vmem:[%s837_s10 + $0x28] sm:$0xff] %v686_v57 }
  0x37   : > { %v690_v59 = vpop.eup %689  ;;  %422 = vst [vmem:[%s837_s10 + $0x30] sm:$0xff] %v688_v58 }
  0x38   : > { %v692_v60 = vpop.eup %691  ;;  %423 = vst [vmem:[%s837_s10 + $0x38] sm:$0xff] %v690_v59 }
  0x39   : > { %v694_v61 = vpop.eup %693  ;;  %424 = vst [vmem:[%s837_s10 + $0x40] sm:$0xff] %v692_v60 }
  0x3a   : > { %v696_v62 = vpop.eup %695  ;;  %425 = vst [vmem:[%s837_s10 + $0x48] sm:$0xff] %v694_v61 }
  0x3b   : > { %v698_v63 = vpop.eup %697  ;;  %v367_v0 = vmul.f32 0.6931472, %v696_v62 }
  0x3c   : > { %426 = vst [vmem:[%s837_s10 + $0x50] sm:$0xff] %v698_v63 }
  0x3d   : > { %v385_v1 = vmul.f32 0.4, %v367_v0 }
  0x3f   : > { %v402_v2 = vmul.f32 1.442695, %v385_v1 }
  0x41   : > { %699 = vpow2.f32 %v402_v2 }
  0x47   : > { %v700_v3 = vpop.eup %699 }
  0x48   : > { %427 = vst [vmem:[%s837_s10 + $0x58] sm:$0xff] %v700_v3 }
  0x49 PF: > { %s12_s13 = sadd.s32 1, %s739_s13   ;;  %s869_s9 = smov %s731_s11 }
  0x4a   : > { %p9_p10 = scmp.ge.s32.totalorder %s12_s13, 14   ;;  %s870_s10 = smov %s735_s12 }
  0x4b   : > { %s871_s11 = smov %s874_s14  ;;  %s872_s12 = smov %s878_s15 }
  0x4c   :  { %11 = sbr.rel (!%p9_p10) target bundleno = 3 (0x3), region = 61 }

// kernel: residual_group_forward.14
= control target key start
LH: loop header
LB: loop body
LE: loop exit
PB: predicated region body
PF: predicated region fallthrough
CT: control target
= control target key end

     0   :  { %s667_s12 = smov 0   ;;  %s669_s13 = smov 0   ;;  %s866_s0 = inlined_call_operand.vmem [shape: f32[2,48,1536], index: 0, kind: input, shape index: {}]   ;;  %s867_s1 = inlined_call_operand.vmem [shape: f32[2,1,1536], index: 1, kind: input, shape index: {}]   ;;  %s868_s2 = inlined_call_operand.vmem [shape: f32[2,48,1536], index: 2, kind: input, shape index: {}]   ;;  %s869_s3 = inlined_call_operand.vmem [shape: f32[2,48,1536], index: 3, kind: output, shape index: {}]  }
   0x1   :  { %s671_s14 = smov 0   ;;  %s673_s15 = smov 0  }
   0x2   :  { %s675_s16 = smov 0  }
   0x3 LB: > { %s22_s17 = sadd.s32 1, %s637_s14  ;;  %s25_s18 = sadd.s32 1, %s641_s15  ;;  %s645_s16 = sphi %s675_s16, %s13_s16   ;;  %s641_s15 = sphi %s673_s15, %s873_s15   ;;  %s637_s14 = sphi %s671_s14, %s872_s14   ;;  %s633_s13 = sphi %s669_s13, %s871_s13   ;;  %s629_s12 = sphi %s667_s12, %s870_s12  }
   0x4   : > { %p23_p0 = scmp.ge.s32.totalorder %s22_s17, 3  ;;  %p555_p1 = scmp.ge.s32.totalorder %s645_s16, 1 }
   0x5   : > { %p186_p2 = scmp.lt.s32.totalorder %s645_s16, 7 }
   0x6   : > { %s875_s17 = smov (%p23_p0, %s22_s17), 0  ;;  %s877_s18 = smov (!%p23_p0, %s25_s18), %s641_s15 }
   0x7   : > { %p187_p3 = pnand %p555_p1, %p186_p2  ;;  %p27_p4 = scmp.ge.s32.totalorder %s877_s18, 2 }
   0x8   : > { %s556_s19 = sshll.u32 (!%p187_p3), %s629_s12, 1  ;;  %p235_p5 = scmp.lt.s32.totalorder (!%p187_p3), %s633_s13, 1 }
   0x9   : > { %s879_s18 = smov (%p27_p4, %s877_s18), 0  ;;  %190 = sbr.rel (%p187_p3) target bundleno = 51 (0x33), region = 32 }
   0xa   : > { %p237_p6 = scmp.lt.s32.totalorder (!%p187_p3), %s556_s19, 5 }
   0xe   : > { %s881_s13 = smov (!%p235_p5, %s633_s13), 1  ;;  %s883_s19 = smov (!%p237_p6, %s556_s19), 5 }
   0xf   : > { %s565_s20 = smul.u32 72, %s881_s13 }
  0x10   : > { %s564_s21 = smul.u32 12, %s883_s19 }
  0x11   : > { %s566_s22 = smul.u32 12, %s881_s13 }
  0x12   : > { %s241_s23 = sadd.s32 %s565_s20, %s564_s21 }
  0x13   : > { %s557_s24 = sshll.u32 %s241_s23, 3  ;;  %s248_s27 = scalar_lea.vmem %s867_s1, %s566_s22 }
  0x14   : > { %s703_s30 = scalar_lea.vmem %s866_s0, %s557_s24  ;;  %s708_s6 = scalar_lea.vmem %s868_s2, %s557_s24  ;;  %v710_v0 = vld [vmem:[%s248_s27] sm:$0xff]  ;;  %v712_v1 = vld [vmem:[%s248_s27 + $0x8] sm:$0xf] }
  0x15   : > { %v271_v2 = vld [vmem:[%s703_s30] sm:$0xff]  ;;  %v299_v3 = vperm.slane %v710_v0, 0  ;;  %v272_v5 = vld [vmem:[%s703_s30 + $0x8] sm:$0xff]  ;;  %v300_v6 = vperm.slane %v710_v0, 1  ;;  %v301_v7 = vperm.slane %v710_v0, 2  ;;  %v273_v9 = vld [vmem:[%s703_s30 + $0x10] sm:$0xff]  ;;  %s739_s9 = scalar_lea.vmem %s869_s3, %s557_s24 }
  0x16   : > { %v347_v4 = vld [vmem:[%s708_s6] sm:$0xff]  ;;  %v348_v8 = vld [vmem:[%s708_s6 + $0x8] sm:$0xff]  ;;  %v349_v10 = vld [vmem:[%s708_s6 + $0x10] sm:$0xff]  ;;  %v302_v11 = vperm.slane %v710_v0, 3  ;;  %v303_v12 = vperm.slane %v710_v0, 4  ;;  %v304_v13 = vperm.slane %v710_v0, 5 }
  0x17   : > { %v323_v14 = vmul.f32 %v299_v3, %v271_v2  ;;  %v324_v15 = vmul.f32 %v300_v6, %v272_v5  ;;  %v325_v16 = vmul.f32 %v301_v7, %v273_v9  ;;  %v274_v17 = vld [vmem:[%s703_s30 + $0x18] sm:$0xff]  ;;  %v275_v19 = vld [vmem:[%s703_s30 + $0x20] sm:$0xff]  ;;  %v305_v20 = vperm.slane %v710_v0, 6  ;;  %v276_v24 = vld [vmem:[%s703_s30 + $0x28] sm:$0xff] }
  0x18   : > { %v350_v18 = vld [vmem:[%s708_s6 + $0x18] sm:$0xff]  ;;  %v326_v21 = vmul.f32 %v302_v11, %v274_v17  ;;  %v327_v22 = vmul.f32 %v303_v12, %v275_v19  ;;  %v351_v23 = vld [vmem:[%s708_s6 + $0x20] sm:$0xff]  ;;  %v306_v25 = vperm.slane %v710_v0, 7  ;;  %v307_v26 = vperm.slane %v712_v1, 0  ;;  %v352_v31 = vld [vmem:[%s708_s6 + $0x28] sm:$0xff] }
  0x19   : > { %v371_v27 = vadd.f32 %v347_v4, %v323_v14  ;;  %v372_v28 = vadd.f32 %v348_v8, %v324_v15  ;;  %v373_v29 = vadd.f32 %v349_v10, %v325_v16  ;;  %v328_v30 = vmul.f32 %v304_v13, %v276_v24  ;;  %v277_v32 = vld [vmem:[%s703_s30 + $0x30] sm:$0xff]  ;;  %v278_v33 = vld [vmem:[%s703_s30 + $0x38] sm:$0xff]  ;;  %v279_v38 = vld [vmem:[%s703_s30 + $0x40] sm:$0xff] }
  0x1a   : > { %v374_v34 = vadd.f32 %v350_v18, %v326_v21  ;;  %v329_v35 = vmul.f32 %v305_v20, %v277_v32  ;;  %v353_v36 = vld [vmem:[%s708_s6 + $0x30] sm:$0xff]  ;;  %v330_v37 = vmul.f32 %v306_v25, %v278_v33  ;;  %v375_v39 = vadd.f32 %v351_v23, %v327_v22  ;;  %v354_v40 = vld [vmem:[%s708_s6 + $0x38] sm:$0xff]  ;;  %v280_v42 = vld [vmem:[%s703_s30 + $0x48] sm:$0xff] }
  0x1b   : > { %395 = vst [vmem:[%s739_s9] sm:$0xff] %v371_v27  ;;  %v331_v41 = vmul.f32 %v307_v26, %v279_v38  ;;  %v308_v43 = vperm.slane %v712_v1, 1  ;;  %v281_v44 = vld [vmem:[%s703_s30 + $0x50] sm:$0xff]  ;;  %v309_v45 = vperm.slane %v712_v1, 2  ;;  %v376_v46 = vadd.f32 %v352_v31, %v328_v30  ;;  %v355_v47 = vld [vmem:[%s708_s6 + $0x40] sm:$0xff]  ;;  %v282_v48 = vld [vmem:[%s703_s30 + $0x58] sm:$0xff] }
  0x1c   : > { %396 = vst [vmem:[%s739_s9 + $0x8] sm:$0xff] %v372_v28  ;;  %v310_v49 = vperm.slane %v712_v1, 3  ;;  %v377_v50 = vadd.f32 %v353_v36, %v329_v35  ;;  %v356_v52 = vld [vmem:[%s708_s6 + $0x48] sm:$0xff]  ;;  %v283_v54 = vld [vmem:[%s703_s30 + $0x60] sm:$0xff]  ;;  %v378_v56 = vadd.f32 %v354_v40, %v330_v37  ;;  %v357_v57 = vld [vmem:[%s708_s6 + $0x50] sm:$0xff] }
  0x1d   : > { %397 = vst [vmem:[%s739_s9 + $0x10] sm:$0xff] %v373_v29  ;;  %v332_v51 = vmul.f32 %v308_v43, %v280_v42  ;;  %v333_v53 = vmul.f32 %v309_v45, %v281_v44  ;;  %v284_v55 = vld [vmem:[%s703_s30 + $0x68] sm:$0xff]  ;;  %v285_v59 = vld [vmem:[%s703_s30 + $0x70] sm:$0xff]  ;;  %v379_v60 = vadd.f32 %v355_v47, %v331_v41  ;;  %v358_v61 = vld [vmem:[%s708_s6 + $0x58] sm:$0xff]  ;;  %v335_v62 = vmul.f32 %v299_v3, %v283_v54 }
  0x1e   : > { %398 = vst [vmem:[%s739_s9 + $0x18] sm:$0xff] %v374_v34  ;;  %v334_v58 = vmul.f32 %v310_v49, %v282_v48  ;;  %v286_v63 = vld [vmem:[%s703_s30 + $0x78] sm:$0xff]  ;;  %v359_v4 = vld [vmem:[%s708_s6 + $0x60] sm:$0xff]  ;;  %v336_v5 = vmul.f32 %v300_v6, %v284_v55  ;;  %v360_v10 = vld [vmem:[%s708_s6 + $0x68] sm:$0xff]  ;;  %v337_v3 = vmul.f32 %v301_v7, %v285_v59 }
  0x1f   : > { %399 = vst [vmem:[%s739_s9 + $0x20] sm:$0xff] %v375_v39  ;;  %v380_v2 = vadd.f32 %v356_v52, %v332_v51  ;;  %v287_v8 = vld [vmem:[%s703_s30 + $0x80] sm:$0xff]  ;;  %v381_v9 = vadd.f32 %v357_v57, %v333_v53  ;;  %v288_v14 = vld [vmem:[%s703_s30 + $0x88] sm:$0xff]  ;;  %v361_v16 = vld [vmem:[%s708_s6 + $0x70] sm:$0xff]  ;;  %v338_v6 = vmul.f32 %v302_v11, %v286_v63  ;;  %v383_v18 = vadd.f32 %v359_v4, %v335_v62 }
  0x20   : > { %400 = vst [vmem:[%s739_s9 + $0x28] sm:$0xff] %v376_v46  ;;  %v382_v15 = vadd.f32 %v358_v61, %v334_v58  ;;  %v289_v17 = vld [vmem:[%s703_s30 + $0x90] sm:$0xff]  ;;  %v362_v19 = vld [vmem:[%s708_s6 + $0x78] sm:$0xff]  ;;  %v339_v7 = vmul.f32 %v303_v12, %v287_v8  ;;  %v384_v22 = vadd.f32 %v360_v10, %v336_v5  ;;  %v363_v23 = vld [vmem:[%s708_s6 + $0x80] sm:$0xff]  ;;  %v340_v11 = vmul.f32 %v304_v13, %v288_v14 }
  0x21   : > { %401 = vst [vmem:[%s739_s9 + $0x30] sm:$0xff] %v377_v50  ;;  %v290_v21 = vld [vmem:[%s703_s30 + $0x98] sm:$0xff]  ;;  %v291_v24 = vld [vmem:[%s703_s30 + $0xa0] sm:$0xff]  ;;  %v385_v27 = vadd.f32 %v361_v16, %v337_v3  ;;  %v364_v28 = vld [vmem:[%s708_s6 + $0x88] sm:$0xff]  ;;  %v341_v12 = vmul.f32 %v305_v20, %v289_v17  ;;  %v386_v30 = vadd.f32 %v362_v19, %v338_v6 }
  0x22   : > { %402 = vst [vmem:[%s739_s9 + $0x38] sm:$0xff] %v378_v56  ;;  %v292_v29 = vld [vmem:[%s703_s30 + $0xa8] sm:$0xff]  ;;  %v365_v31 = vld [vmem:[%s708_s6 + $0x90] sm:$0xff]  ;;  %v342_v13 = vmul.f32 %v306_v25, %v290_v21  ;;  %v387_v33 = vadd.f32 %v363_v23, %v339_v7  ;;  %v366_v34 = vld [vmem:[%s708_s6 + $0x98] sm:$0xff]  ;;  %v343_v35 = vmul.f32 %v307_v26, %v291_v24  ;;  %v388_v36 = vadd.f32 %v364_v28, %v340_v11 }
  0x23   : > { %403 = vst [vmem:[%s739_s9 + $0x40] sm:$0xff] %v379_v60  ;;  %v293_v32 = vld [vmem:[%s703_s30 + $0xb0] sm:$0xff]  ;;  %v294_v20 = vld [vmem:[%s703_s30 + $0xb8] sm:$0xff]  ;;  %v367_v37 = vld [vmem:[%s708_s6 + $0xa0] sm:$0xff]  ;;  %v344_v0 = vmul.f32 %v308_v43, %v292_v29  ;;  %v389_v25 = vadd.f32 %v365_v31, %v341_v12 }
  0x24   : > { %404 = vst [vmem:[%s739_s9 + $0x48] sm:$0xff] %v380_v2  ;;  %v368_v38 = vld [vmem:[%s708_s6 + $0xa8] sm:$0xff]  ;;  %v345_v39 = vmul.f32 %v309_v45, %v293_v32  ;;  %v390_v26 = vadd.f32 %v366_v34, %v342_v13  ;;  %v369_v40 = vld [vmem:[%s708_s6 + $0xb0] sm:$0xff]  ;;  %v346_v41 = vmul.f32 %v310_v49, %v294_v20  ;;  %v391_v42 = vadd.f32 %v367_v37, %v343_v35  ;;  %v370_v43 = vld [vmem:[%s708_s6 + $0xb8] sm:$0xff] }
  0x25   : > { %405 = vst [vmem:[%s739_s9 + $0x50] sm:$0xff] %v381_v9  ;;  %v392_v44 = vadd.f32 %v368_v38, %v344_v0 }
  0x26   : > { %406 = vst [vmem:[%s739_s9 + $0x58] sm:$0xff] %v382_v15  ;;  %v393_v46 = vadd.f32 %v369_v40, %v345_v39  ;;  %v394_v47 = vadd.f32 %v370_v43, %v346_v41 }
  0x27   : > { %407 = vst [vmem:[%s739_s9 + $0x60] sm:$0xff] %v383_v18 }
  0x28   : > { %408 = vst [vmem:[%s739_s9 + $0x68] sm:$0xff] %v384_v22 }
  0x29   : > { %409 = vst [vmem:[%s739_s9 + $0x70] sm:$0xff] %v385_v27 }
  0x2a   : > { %410 = vst [vmem:[%s739_s9 + $0x78] sm:$0xff] %v386_v30 }
  0x2b   : > { %411 = vst [vmem:[%s739_s9 + $0x80] sm:$0xff] %v387_v33 }
  0x2c   : > { %412 = vst [vmem:[%s739_s9 + $0x88] sm:$0xff] %v388_v36 }
  0x2d   : > { %413 = vst [vmem:[%s739_s9 + $0x90] sm:$0xff] %v389_v25 }
  0x2e   : > { %414 = vst [vmem:[%s739_s9 + $0x98] sm:$0xff] %v390_v26 }
  0x2f   : > { %415 = vst [vmem:[%s739_s9 + $0xa0] sm:$0xff] %v391_v42 }
  0x30   : > { %416 = vst [vmem:[%s739_s9 + $0xa8] sm:$0xff] %v392_v44 }
  0x31   : > { %417 = vst [vmem:[%s739_s9 + $0xb0] sm:$0xff] %v393_v46 }
  0x32   : > { %418 = vst [vmem:[%s739_s9 + $0xb8] sm:$0xff] %v394_v47 }
  0x33 PF: > { %s13_s16 = sadd.s32 1, %s645_s16   ;;  %s870_s12 = smov %s637_s14 }
  0x34   : > { %p10_p7 = scmp.ge.s32.totalorder %s13_s16, 8   ;;  %s871_s13 = smov %s641_s15 }
  0x35   : > { %s872_s14 = smov %s875_s17  ;;  %s873_s15 = smov %s879_s18 }
  0x36   :  { %12 = sbr.rel (!%p10_p7) target bundleno = 3 (0x3), region = 68 }

// kernel: residual_group_forward.13
= control target key start
LH: loop header
LB: loop body
LE: loop exit
PB: predicated region body
PF: predicated region fallthrough
CT: control target
= control target key end

     0   :  { %s1819_s24 = smov 0   ;;  %s1821_s25 = smov 0   ;;  %s2198_s0 = inlined_call_operand.vmem [shape: bf16[2,2304,288], index: 0, kind: input, shape index: {}]   ;;  %s2199_s1 = inlined_call_operand.vmem [shape: bf16[288,32], index: 1, kind: input, shape index: {}]   ;;  %s2200_s2 = inlined_call_operand.vmem [shape: f32[1,32], index: 2, kind: input, shape index: {}]   ;;  %s2201_s3 = inlined_call_operand.vmem [shape: f32[2,32], index: 3, kind: input, shape index: {}]   ;;  %s2202_s4 = inlined_call_operand.vmem [shape: f32[2,1], index: 4, kind: input, shape index: {}]   ;;  %s2203_s5 = inlined_call_operand.vmem [shape: f32[2,32], index: 5, kind: input, shape index: {}]   ;;  %s2204_s6 = inlined_call_operand.vmem [shape: f32[1,32], index: 6, kind: input, shape index: {}]   ;;  %s2205_s7 = inlined_call_operand.vmem [shape: f32[2,1,32], index: 7, kind: output, shape index: {}]  }
   0x1   :  { %s1823_s26 = smov 0   ;;  %s1825_s27 = smov 0  }
   0x2   :  { %s1827_s28 = smov 0  }
   0x3 LB: > { %s26_s29 = sadd.s32 1, %s1768_s26  ;;  %s29_s30 = sadd.s32 1, %s1772_s27  ;;  %s1776_s28 = sphi %s1827_s28, %s17_s28   ;;  %s1772_s27 = sphi %s1825_s27, %s2209_s27   ;;  %s1768_s26 = sphi %s1823_s26, %s2208_s26   ;;  %s1764_s25 = sphi %s1821_s25, %s2207_s25   ;;  %s1760_s24 = sphi %s1819_s24, %s2206_s24  }
   0x4   : > { %p27_p0 = scmp.ge.s32.totalorder %s26_s29, 9  ;;  %p1316_p1 = scmp.ge.s32.totalorder %s1776_s28, 1 }
   0x5   : > { %p257_p2 = scmp.lt.s32.totalorder %s1776_s28, 19 }
   0x6   : > { %s2211_s29 = smov (%p27_p0, %s26_s29), 0  ;;  %s2213_s30 = smov (!%p27_p0, %s29_s30), %s1772_s27 }
   0x7   : > { %p258_p3 = pnand %p1316_p1, %p257_p2  ;;  %p31_p4 = scmp.ge.s32.totalorder %s2213_s30, 2 }
   0x8   : > { %s1317_s14 = sshll.u32 (!%p258_p3), %s1760_s24, 5  ;;  %p293_p5 = scmp.lt.s32.totalorder (!%p258_p3), %s1764_s25, 1 }
   0x9   : > { %s2215_s30 = smov (%p31_p4, %s2213_s30), 0  ;;  %261 = sbr.rel (%p258_p3) target bundleno = 707 (0x2c3), region = 48 }
   0xa   : > { %p295_p6 = scmp.lt.s32.totalorder (!%p258_p3), %s1317_s14, 287  ;;  %p1599_p7 = scmp.ne.s32.totalorder (!%p258_p3), %s1760_s24, 0 }
   0xe   : > { %v1660_v0 = vld [vmem:[%s2199_s1 + $0x38] sm:$0xff]  ;;  %v1862_v2 = vld [vmem:[%s2199_s1 + $0x88] sm:$0xff]  ;;  %v1659_v3 = vld [vmem:[%s2199_s1 + $0x30] sm:$0xff]  ;;  %s2217_s25 = smov (!%p293_p5, %s1764_s25), 1  ;;  %s2219_s14 = smov (!%p295_p6, %s1317_s14), 287  ;;  %vm759_vm0 = vcmask 261120  }
   0xf   : > { %v1857_v1 = vld [vmem:[%s2199_s1 + $0x78] sm:$0xff]  ;;  %808 = vmatpush.bf16.msra.mxu0 %v1660_v0  ;;  %1671 = vmatpush.bf16.msra.mxu3 %v1660_v0  ;;  %v1875_v4 = vld [vmem:[%s2199_s1 + $0x70] sm:$0xff]  ;;  %v1880_v5 = vld [vmem:[%s2199_s1 + $0x80] sm:$0xff]  ;;  %s1690_s21 = smul.u32 864, %s2217_s25  ;;  %s305_s8 = scalar_lea.vmem %s2205_s7, %s2217_s25 }
  0x10   : > { %897 = vmatpush.bf16.msra.mxu1 %v1857_v1  ;;  %992 = vmatpush.bf16.msra.mxu2 %v1862_v2  ;;  %s1689_s9 = smul.u32 3, %s2219_s14  ;;  %v1658_v6 = vld [vmem:[%s2199_s1 + $0x28] sm:$0xff]  ;;  %v1657_v10 = vld [vmem:[%s2199_s1 + $0x20] sm:$0xff]  ;;  %v1656_v13 = vld [vmem:[%s2199_s1 + $0x18] sm:$0xff] }
  0x11   : > { %v1666_v7 = vld [vmem:[%s2199_s1 + $0x68] sm:$0xff]  ;;  %v1665_v12 = vld [vmem:[%s2199_s1 + $0x60] sm:$0xff]  ;;  %v1664_v14 = vld [vmem:[%s2199_s1 + $0x58] sm:$0xff] }
  0x12   : > { %s299_s15 = sadd.s32 %s1690_s21, %s1689_s9  ;;  %v1655_v15 = vld [vmem:[%s2199_s1 + $0x10] sm:$0xff]  ;;  %v1654_v17 = vld [vmem:[%s2199_s1 + $0x8] sm:$0xff]  ;;  %v1653_v22 = vld [vmem:[%s2199_s1] sm:$0xff] }
  0x13   : > { %809 = vmatpush.bf16.msra.mxu0 %v1659_v3  ;;  %1672 = vmatpush.bf16.msra.mxu3 %v1659_v3  ;;  %s1318_s16 = sshll.u32 %s299_s15, 2  ;;  %v1663_v16 = vld [vmem:[%s2199_s1 + $0x50] sm:$0xff]  ;;  %v1662_v20 = vld [vmem:[%s2199_s1 + $0x48] sm:$0xff]  ;;  %v1661_v27 = vld [vmem:[%s2199_s1 + $0x40] sm:$0xff] }
  0x14   : > { %898 = vmatpush.bf16.msra.mxu1 %v1875_v4  ;;  %993 = vmatpush.bf16.msra.mxu2 %v1880_v5  ;;  %s1898_s14 = scalar_lea.vmem %s2198_s0, %s1318_s16 }
  0x15   : > { %v1329_v8 = vld [vmem:[%s1898_s14 + $0x8] sm:$0xf]  ;;  %v1607_v9 = vld [vmem:[%s1898_s14 + $0x10] sm:$0xf0]  ;;  %v1341_v18 = vld [vmem:[%s1898_s14 + $0x20] sm:$0xf] }
  0x16   : > { %v1330_v11 = vor.u32 %v1607_v9, %v1329_v8  ;;  %v1610_v19 = vld [vmem:[%s1898_s14 + $0x28] sm:$0xf0]  ;;  %v1321_v23 = vld [vmem:[%s1898_s14] sm:$0xf]  ;;  %v1605_v28 = vld [vmem:[%s1898_s14 + $0x4] sm:$0xf] }
  0x17   : > { %810 = vmatpush.bf16.msra.mxu0 %v1658_v6  ;;  %1673 = vmatpush.bf16.msra.mxu3 %v1658_v6  ;;  %v1342_v21 = vor.u32 %v1610_v19, %v1341_v18  ;;  %v1606_v24 = vld [vmem:[%s1898_s14 + $0x8] sm:$0xf0]  ;;  %v1465_v25 = vld [vmem:[%s1898_s14 + $0x120] sm:$0xf]  ;;  %v1323_v29 = vld [vmem:[%s1898_s14 + $0xc] sm:$0xf0] }
  0x18   : > { %899 = vmatpush.bf16.msra.mxu1 %v1666_v7  ;;  %1583 = vmatmul.msk.bf16.vlgmr.msra.gmra.mxu2 %vm759_vm0, %v1330_v11  ;;  %v1642_v26 = vld [vmem:[%s1898_s14 + $0x128] sm:$0xf0]  ;;  %v1322_v30 = vor.u32 %v1606_v24, %v1321_v23  ;;  %v1326_v32 = vor.u32 %v1605_v28, %v1323_v29  ;;  %v1353_v33 = vld [vmem:[%s1898_s14 + $0x38] sm:$0xf]  ;;  %v1613_v34 = vld [vmem:[%s1898_s14 + $0x40] sm:$0xf0] }
  0x19   : > { %v1466_v31 = vor.u32 %v1642_v26, %v1465_v25  ;;  %v1354_v35 = vor.u32 %v1613_v34, %v1353_v33  ;;  %v1333_v36 = vld [vmem:[%s1898_s14 + $0x18] sm:$0xf]  ;;  %v1609_v37 = vld [vmem:[%s1898_s14 + $0x20] sm:$0xf0]  ;;  %v1608_v40 = vld [vmem:[%s1898_s14 + $0x1c] sm:$0xf] }
  0x1a   : > { %v1477_v38 = vld [vmem:[%s1898_s14 + $0x138] sm:$0xf]  ;;  %v1645_v39 = vld [vmem:[%s1898_s14 + $0x140] sm:$0xf0]  ;;  %v1335_v41 = vld [vmem:[%s1898_s14 + $0x24] sm:$0xf0]  ;;  %v1334_v42 = vor.u32 %v1609_v37, %v1333_v36 }
  0x1b   : > { %811 = vmatpush.bf16.msra.mxu0 %v1657_v10  ;;  %1674 = vmatpush.bf16.msra.mxu3 %v1657_v10  ;;  %v1478_v43 = vor.u32 %v1645_v39, %v1477_v38  ;;  %v1338_v44 = vor.u32 %v1608_v40, %v1335_v41  ;;  %v1365_v45 = vld [vmem:[%s1898_s14 + $0x50] sm:$0xf]  ;;  %v1616_v46 = vld [vmem:[%s1898_s14 + $0x58] sm:$0xf0]  ;;  %v1611_v52 = vld [vmem:[%s1898_s14 + $0x34] sm:$0xf] }
  0x1c   : > { %900 = vmatpush.bf16.msra.mxu1 %v1665_v12  ;;  %v1366_v47 = vor.u32 %v1616_v46, %v1365_v45  ;;  %v1345_v48 = vld [vmem:[%s1898_s14 + $0x30] sm:$0xf]  ;;  %v1612_v49 = vld [vmem:[%s1898_s14 + $0x38] sm:$0xf0]  ;;  %v1347_v53 = vld [vmem:[%s1898_s14 + $0x3c] sm:$0xf0] }
  0x1d   : > { %v1489_v50 = vld [vmem:[%s1898_s14 + $0x150] sm:$0xf]  ;;  %v1648_v51 = vld [vmem:[%s1898_s14 + $0x158] sm:$0xf0]  ;;  %v1346_v54 = vor.u32 %v1612_v49, %v1345_v48  ;;  %v1350_v56 = vor.u32 %v1611_v52, %v1347_v53  ;;  %v1377_v57 = vld [vmem:[%s1898_s14 + $0x68] sm:$0xf] }
  0x1e   : > { %v1490_v55 = vor.u32 %v1648_v51, %v1489_v50  ;;  %v1619_v58 = vld [vmem:[%s1898_s14 + $0x70] sm:$0xf0]  ;;  %v1357_v60 = vld [vmem:[%s1898_s14 + $0x48] sm:$0xf]  ;;  %v1614_v0 = vld [vmem:[%s1898_s14 + $0x4c] sm:$0xf] }
  0x1f   : > { %812 = vmatpush.bf16.msra.mxu0 %v1656_v13  ;;  %1675 = vmatpush.bf16.msra.mxu3 %v1656_v13  ;;  %v1378_v59 = vor.u32 %v1619_v58, %v1377_v57  ;;  %v1615_v61 = vld [vmem:[%s1898_s14 + $0x50] sm:$0xf0]  ;;  %v1501_v62 = vld [vmem:[%s1898_s14 + $0x168] sm:$0xf]  ;;  %v1622_v6 = vld [vmem:[%s1898_s14 + $0x88] sm:$0xf0] }
  0x20   : > { %901 = vmatpush.bf16.msra.mxu1 %v1664_v14  ;;  %v1651_v63 = vld [vmem:[%s1898_s14 + $0x170] sm:$0xf0]  ;;  %v1369_v8 = vld [vmem:[%s1898_s14 + $0x60] sm:$0xf]  ;;  %v1618_v9 = vld [vmem:[%s1898_s14 + $0x68] sm:$0xf0] }
  0x21   : > { %v1502_v3 = vor.u32 %v1651_v63, %v1501_v62  ;;  %v1641_v10 = vld [vmem:[%s1898_s14 + $0x124] sm:$0xf]  ;;  %v1467_v11 = vld [vmem:[%s1898_s14 + $0x12c] sm:$0xf0]  ;;  %v1479_v23 = vld [vmem:[%s1898_s14 + $0x144] sm:$0xf0] }
  0x22   : > { %v1371_v13 = vld [vmem:[%s1898_s14 + $0x6c] sm:$0xf0]  ;;  %v1625_v18 = vld [vmem:[%s1898_s14 + $0xa0] sm:$0xf0]  ;;  %v1620_v24 = vld [vmem:[%s1898_s14 + $0x7c] sm:$0xf] }
  0x23   : > { %813 = vmatpush.bf16.msra.mxu0 %v1655_v15  ;;  %1676 = vmatpush.bf16.msra.mxu3 %v1655_v15  ;;  %v1470_v15 = vor.u32 %v1641_v10, %v1467_v11  ;;  %v1383_v25 = vld [vmem:[%s1898_s14 + $0x84] sm:$0xf0]  ;;  %v1413_v29 = vld [vmem:[%s1898_s14 + $0xb0] sm:$0xf]  ;;  %v1624_v33 = vld [vmem:[%s1898_s14 + $0x98] sm:$0xf0] }
  0x24   : > { %902 = vmatpush.bf16.msra.mxu1 %v1663_v16  ;;  %v1386_v28 = vor.u32 %v1620_v24, %v1383_v25  ;;  %v1647_v34 = vld [vmem:[%s1898_s14 + $0x154] sm:$0xf]  ;;  %v1395_v37 = vld [vmem:[%s1898_s14 + $0x9c] sm:$0xf0]  ;;  %v1425_v41 = vld [vmem:[%s1898_s14 + $0xc8] sm:$0xf] }
  0x25   : > { %v1623_v36 = vld [vmem:[%s1898_s14 + $0x94] sm:$0xf]  ;;  %v1650_v46 = vld [vmem:[%s1898_s14 + $0x16c] sm:$0xf]  ;;  %v1407_v49 = vld [vmem:[%s1898_s14 + $0xb4] sm:$0xf0] }
  0x26   : > { %v1398_v40 = vor.u32 %v1623_v36, %v1395_v37  ;;  %v1627_v45 = vld [vmem:[%s1898_s14 + $0xb0] sm:$0xf0]  ;;  %v1626_v48 = vld [vmem:[%s1898_s14 + $0xac] sm:$0xf]  ;;  %v1417_v58 = vld [vmem:[%s1898_s14 + $0xc0] sm:$0xf] }
  0x27   : > { %814 = vmatpush.bf16.msra.mxu0 %v1654_v17  ;;  %1677 = vmatpush.bf16.msra.mxu3 %v1654_v17  ;;  %v1401_v17 = vld [vmem:[%s1898_s14 + $0x98] sm:$0xf]  ;;  %v1410_v52 = vor.u32 %v1626_v48, %v1407_v49  ;;  %v2018_v62 = vld [vmem:[%s2200_s2] ss:$0 sm:$0xff]  ;;  %v1629_v63 = vld [vmem:[%s1898_s14 + $0xc4] sm:$0xf] }
  0x28   : > { %903 = vmatpush.bf16.msra.mxu1 %v1662_v20  ;;  %1584 = vmatmul.msk.bf16.gmra.mxu2 %vm759_vm0, %v1342_v21  ;;  %v1402_v19 = vor.u32 %v1625_v18, %v1401_v17  ;;  %v1621_v21 = vld [vmem:[%s1898_s14 + $0x80] sm:$0xf0]  ;;  %v1632_v25 = vld [vmem:[%s1898_s14 + $0xdc] sm:$0xf] }
  0x2b   : > { %815 = vmatpush.bf16.msra.mxu0 %v1653_v22  ;;  %1678 = vmatpush.bf16.msra.mxu3 %v1653_v22  ;;  %v1644_v22 = vld [vmem:[%s1898_s14 + $0x13c] sm:$0xf] }
  0x2c   : > { %904 = vmatpush.bf16.msra.mxu1 %v1661_v27 }
  0x2e   : > { %816 = vmatmul.bf16.vlgmr.msra.gmra.mxu0 %v1322_v30  ;;  %876 = vmatmul.bf16.vlgmr.msra.gmra.mxu3 %v1466_v31  ;;  %v1628_v30 = vld [vmem:[%s1898_s14 + $0xb8] sm:$0xf0] }
  0x2f   : > { %1679 = vmatpush.bf16.msrb.mxu3 %v1857_v1  ;;  %905 = vmatmul.bf16.vlgmr.msra.gmra.mxu1 %v1326_v32  ;;  %v1359_v1 = vld [vmem:[%s1898_s14 + $0x54] sm:$0xf0]  ;;  %v1414_v31 = vor.u32 %v1628_v30, %v1413_v29  ;;  %v1393_v32 = vld [vmem:[%s1898_s14 + $0x90] sm:$0xf] }
  0x30   : > { %v1394_v38 = vor.u32 %v1624_v33, %v1393_v32 }
  0x33   : > { %1680 = vmatpush.bf16.msrb.mxu3 %v1875_v4  ;;  %v1362_v4 = vor.u32 %v1614_v0, %v1359_v1  ;;  %v1419_v0 = vld [vmem:[%s1898_s14 + $0xcc] sm:$0xf0] }
  0x37   : > { %1681 = vmatpush.bf16.msrb.mxu3 %v1666_v7 }
  0x38   : > { %1585 = vmatmul.msk.bf16.gmra.mxu2 %vm759_vm0, %v1354_v35  ;;  %v1491_v35 = vld [vmem:[%s1898_s14 + $0x15c] sm:$0xf0] }
  0x39   : > { %v1494_v39 = vor.u32 %v1647_v34, %v1491_v35 }
  0x3b   : > { %1682 = vmatpush.bf16.msrb.mxu3 %v1665_v12  ;;  %v1617_v12 = vld [vmem:[%s1898_s14 + $0x64] sm:$0xf] }
  0x3e   : > { %821 = vmatmul.bf16.gmra.mxu0 %v1334_v42  ;;  %881 = vmatmul.bf16.gmra.mxu3 %v1478_v43  ;;  %v1631_v42 = vld [vmem:[%s1898_s14 + $0xd0] sm:$0xf0] }
  0x3f   : > { %1683 = vmatpush.bf16.msrb.mxu3 %v1664_v14  ;;  %910 = vmatmul.bf16.gmra.mxu1 %v1338_v44  ;;  %v1370_v14 = vor.u32 %v1618_v9, %v1369_v8  ;;  %v1426_v43 = vor.u32 %v1631_v42, %v1425_v41  ;;  %v1405_v44 = vld [vmem:[%s1898_s14 + $0xa8] sm:$0xf] }
  0x40   : > { %v1406_v50 = vor.u32 %v1627_v45, %v1405_v44  ;;  %v1461_v44 = vld [vmem:[%s1898_s14 + $0x110] sm:$0xf]  ;;  %v1640_v45 = vld [vmem:[%s1898_s14 + $0x118] sm:$0xf0] }
  0x43   : > { %1684 = vmatpush.bf16.msrb.mxu3 %v1663_v16  ;;  %v1374_v16 = vor.u32 %v1617_v12, %v1371_v13  ;;  %v1449_v12 = vld [vmem:[%s1898_s14 + $0xf8] sm:$0xf]  ;;  %v1637_v13 = vld [vmem:[%s1898_s14 + $0x100] sm:$0xf0] }
  0x44   : > { %v1450_v18 = vor.u32 %v1637_v13, %v1449_v12  ;;  %v1643_v12 = vld [vmem:[%s1898_s14 + $0x130] sm:$0xf0] }
  0x47   : > { %1685 = vmatpush.bf16.msrb.mxu3 %v1662_v20  ;;  %v1381_v20 = vld [vmem:[%s1898_s14 + $0x78] sm:$0xf] }
  0x48   : > { %1586 = vmatmul.msk.bf16.gmra.mxu2 %vm759_vm0, %v1366_v47  ;;  %v1382_v26 = vor.u32 %v1621_v21, %v1381_v20  ;;  %v1503_v47 = vld [vmem:[%s1898_s14 + $0x174] sm:$0xf0]  ;;  %v1633_v20 = vld [vmem:[%s1898_s14 + $0xe0] sm:$0xf0]  ;;  %v1509_v21 = vld [vmem:[%s1898_s14 + $0x170] sm:$0xf] }
  0x49   : > { %v1506_v51 = vor.u32 %v1650_v46, %v1503_v47 }
  0x4b   : > { %1686 = vmatpush.bf16.msrb.mxu3 %v1661_v27  ;;  %v1482_v27 = vor.u32 %v1644_v22, %v1479_v23  ;;  %v1652_v22 = vld [vmem:[%s1898_s14 + $0x178] sm:$0xf0] }
  0x4c   : > { %v1510_v30 = vor.u32 %v1652_v22, %v1509_v21  ;;  %v1639_v21 = vld [vmem:[%s1898_s14 + $0x110] sm:$0xf0] }
  0x4e   : > { %826 = vmatmul.bf16.gmra.mxu0 %v1346_v54  ;;  %886 = vmatmul.bf16.gmra.mxu3 %v1490_v55  ;;  %v1437_v54 = vld [vmem:[%s1898_s14 + $0xe0] sm:$0xf]  ;;  %v1634_v55 = vld [vmem:[%s1898_s14 + $0xe8] sm:$0xf0] }
  0x4f   : > { %1687 = vmatpush.bf16.msra.mxu3 %v1862_v2  ;;  %915 = vmatmul.bf16.gmra.mxu1 %v1350_v56  ;;  %v1358_v2 = vor.u32 %v1615_v61, %v1357_v60  ;;  %v1438_v57 = vor.u32 %v1634_v55, %v1437_v54  ;;  %v1497_v60 = vld [vmem:[%s1898_s14 + $0x158] sm:$0xf]  ;;  %v1649_v61 = vld [vmem:[%s1898_s14 + $0x160] sm:$0xf0]  ;;  %v1636_v54 = vld [vmem:[%s1898_s14 + $0xf8] sm:$0xf0] }
  0x53   : > { %1688 = vmatpush.bf16.msra.mxu3 %v1880_v5  ;;  %v1389_v5 = vld [vmem:[%s1898_s14 + $0x80] sm:$0xf] }
  0x54   : > { %v1390_v7 = vor.u32 %v1622_v6, %v1389_v5 }
  0x58   : > { %1587 = vmatmul.msk.bf16.gmra.mxu2 %vm759_vm0, %v1378_v59  ;;  %v1630_v59 = vld [vmem:[%s1898_s14 + $0xc8] sm:$0xf0] }
  0x59   : > { %v1418_v1 = vor.u32 %v1630_v59, %v1417_v58 }
  0x5e   : > { %831 = vmatmul.bf16.gmra.mxu0 %v1358_v2  ;;  %891 = vmatmul.bf16.gmra.mxu3 %v1502_v3  ;;  %v1498_v2 = vor.u32 %v1649_v61, %v1497_v60 }
  0x5f   : > { %920 = vmatmul.bf16.gmra.mxu1 %v1362_v4  ;;  %v1422_v4 = vor.u32 %v1629_v63, %v1419_v0 }
  0x68   : > { %1588 = vmatmul.msk.bf16.gmra.mxu2 %vm759_vm0, %v1390_v7 }
  0x6e   : > { %836 = vmatmul.bf16.gmra.mxu0 %v1370_v14  ;;  %965 = vmatmul.bf16.vlgmr.msrb.gmra.mxu3 %v1470_v15 }
  0x6f   : > { %925 = vmatmul.bf16.gmra.mxu1 %v1374_v16 }
  0x78   : > { %1589 = vmatmul.msk.bf16.gmra.mxu2 %vm759_vm0, %v1402_v19  ;;  %v1429_v19 = vld [vmem:[%s1898_s14 + $0xd8] sm:$0xf] }
  0x79   : > { %v1430_v29 = vor.u32 %v1633_v20, %v1429_v19  ;;  %v1453_v20 = vld [vmem:[%s1898_s14 + $0x108] sm:$0xf] }
  0x7e   : > { %841 = vmatmul.bf16.gmra.mxu0 %v1382_v26  ;;  %970 = vmatmul.bf16.gmra.mxu3 %v1482_v27  ;;  %v1431_v26 = vld [vmem:[%s1898_s14 + $0xe4] sm:$0xf0] }
  0x7f   : > { %930 = vmatmul.bf16.gmra.mxu1 %v1386_v28  ;;  %v1434_v32 = vor.u32 %v1632_v25, %v1431_v26 }
  0x88   : > { %1590 = vmatmul.msk.bf16.gmra.mxu2 %vm759_vm0, %v1414_v31 }
  0x8e   : > { %846 = vmatmul.bf16.gmra.mxu0 %v1394_v38  ;;  %975 = vmatmul.bf16.gmra.mxu3 %v1494_v39 }
  0x8f   : > { %935 = vmatmul.bf16.gmra.mxu1 %v1398_v40 }
  0x98   : > { %1591 = vmatmul.msk.bf16.gmra.mxu2 %vm759_vm0, %v1426_v43 }
  0x9b   : > { %v995_v53 = vpop.f32.mrf.mxu2 }
  0x9e   : > { %851 = vmatmul.bf16.gmra.mxu0 %v1406_v50  ;;  %980 = vmatmul.bf16.gmra.mxu3 %v1506_v51 }
  0x9f   : > { %940 = vmatmul.bf16.gmra.mxu1 %v1410_v52  ;;  %v1462_v52 = vor.u32 %v1640_v45, %v1461_v44 }
  0xa3   : > { %v997_v56 = vpop.f32.mrf.mxu2 }
  0xa8   : > { %1592 = vmatmul.msk.bf16.gmra.mxu2 %vm759_vm0, %v1438_v57  ;;  %v1443_v57 = vld [vmem:[%s1898_s14 + $0xfc] sm:$0xf0] }
  0xab   : > { %v817_v3 = vpop.f32.mrf.mxu0  ;;  %v1000_v7 = vpop.f32.mrf.mxu2 }
  0xac   : > { %v818_v5 = vadd.f32 %v2018_v62, %v817_v3  ;;  %v906_v6 = vpop.f32.mrf.mxu1 }
  0xae   : > { %v907_v8 = vadd.f32 %v906_v6, %v818_v5  ;;  %856 = vmatmul.bf16.gmra.mxu0 %v1418_v1  ;;  %1597 = vmatmul.msk.bf16.vlgmr.msra.gmra.mxu3 %vm759_vm0, %v1498_v2 }
  0xaf   : > { %945 = vmatmul.bf16.gmra.mxu1 %v1422_v4 }
  0xb0   : > { %v996_v9 = vadd.f32 %v995_v53, %v907_v8  ;;  %v1441_v53 = vld [vmem:[%s1898_s14 + $0xf0] sm:$0xf] }
  0xb1   : > { %v2025_v10 = vpop.f32.mrf.mxu3  ;;  %v1442_v60 = vor.u32 %v1636_v54, %v1441_v53 }
  0xb2   : > { %v1075_v23 = vmax.f32 %v996_v9, 0.0 }
  0xb3   : > { %v819_v11 = vpop.f32.mrf.mxu0  ;;  %v1002_v16 = vpop.f32.mrf.mxu2 }
  0xb4   : > { %v820_v14 = vadd.f32 %v2018_v62, %v819_v11  ;;  %v908_v15 = vpop.f32.mrf.mxu1  ;;  %v1107_v33 = vsel %vm759_vm0, %v1075_v23, 0.0  ;;  %v1473_v11 = vld [vmem:[%s1898_s14 + $0x128] sm:$0xf]  ;;  %v1638_v23 = vld [vmem:[%s1898_s14 + $0x10c] sm:$0xf] }
  0xb5   : > { %v1474_v19 = vor.u32 %v1643_v12, %v1473_v11 }
  0xb6   : > { %v909_v17 = vadd.f32 %v908_v15, %v820_v14 }
  0xb8   : > { %v998_v24 = vadd.f32 %v997_v56, %v909_v17  ;;  %1593 = vmatmul.msk.bf16.gmra.mxu2 %vm759_vm0, %v1450_v18  ;;  %v1635_v56 = vld [vmem:[%s1898_s14 + $0xf4] sm:$0xf] }
  0xb9   : > { %v2036_v27 = vpop.f32.mrf.mxu3  ;;  %v1446_v63 = vor.u32 %v1635_v56, %v1443_v57 }
  0xba   : > { %v1076_v28 = vmax.f32 %v998_v24, 0.0  ;;  %v1455_v24 = vld [vmem:[%s1898_s14 + $0x114] sm:$0xf0] }
  0xbb   : > { %v822_v31 = vpop.f32.mrf.mxu0  ;;  %v1005_v38 = vpop.f32.mrf.mxu2 }
  0xbc   : > { %v1108_v34 = vsel %vm759_vm0, %v1076_v28, 0.0  ;;  %v823_v35 = vadd.f32 %v2018_v62, %v822_v31  ;;  %v911_v36 = vpop.f32.mrf.mxu1  ;;  %v1454_v28 = vor.u32 %v1639_v21, %v1453_v20 }
  0xbd   : > { %v1109_v37 = vadd.f32 %v1108_v34, %v1107_v33 }
  0xbe   : > { %v912_v39 = vadd.f32 %v911_v36, %v823_v35  ;;  %861 = vmatmul.bf16.gmra.mxu0 %v1430_v29  ;;  %1598 = vmatmul.msk.bf16.gmra.mxu3 %vm759_vm0, %v1510_v30  ;;  %v1458_v30 = vor.u32 %v1638_v23, %v1455_v24 }
  0xbf   : > { %950 = vmatmul.bf16.gmra.mxu1 %v1434_v32 }
  0xc0   : > { %v1001_v40 = vadd.f32 %v1000_v7, %v912_v39 }
  0xc1   : > { %v2043_v41 = vpop.f32.mrf.mxu3 }
  0xc2   : > { %v1077_v42 = vmax.f32 %v1001_v40, 0.0 }
  0xc3   : > { %v824_v43 = vpop.f32.mrf.mxu0  ;;  %v1007_v50 = vpop.f32.mrf.mxu2 }
  0xc4   : > { %v1110_v46 = vsel %vm759_vm0, %v1077_v42, 0.0  ;;  %v825_v47 = vadd.f32 %v2018_v62, %v824_v43  ;;  %v913_v48 = vpop.f32.mrf.mxu1  ;;  %v1485_v42 = vld [vmem:[%s1898_s14 + $0x140] sm:$0xf]  ;;  %v1646_v43 = vld [vmem:[%s1898_s14 + $0x148] sm:$0xf0] }
  0xc5   : > { %v1111_v49 = vadd.f32 %v1110_v46, %v1109_v37 }
  0xc6   : > { %v914_v51 = vadd.f32 %v913_v48, %v825_v47 }
  0xc8   : > { %v1003_v55 = vadd.f32 %v1002_v16, %v914_v51  ;;  %1594 = vmatmul.msk.bf16.gmra.mxu2 %vm759_vm0, %v1462_v52 }
  0xc9   : > { %v2053_v58 = vpop.f32.mrf.mxu3 }
  0xca   : > { %v1078_v59 = vmax.f32 %v1003_v55, 0.0 }
  0xcb   : > { %v827_v61 = vpop.f32.mrf.mxu0  ;;  %v1010_v4 = vpop.f32.mrf.mxu2 }
  0xcc   : > { %v1112_v0 = vsel %vm759_vm0, %v1078_v59, 0.0  ;;  %v828_v1 = vadd.f32 %v2018_v62, %v827_v61  ;;  %v916_v2 = vpop.f32.mrf.mxu1 }
  0xcd   : > { %v1113_v3 = vadd.f32 %v1112_v0, %v1111_v49 }
  0xce   : > { %v917_v5 = vadd.f32 %v916_v2, %v828_v1  ;;  %866 = vmatmul.bf16.gmra.mxu0 %v1442_v60 }
  0xcf   : > { %955 = vmatmul.bf16.gmra.mxu1 %v1446_v63  ;;  %v878_v63 = vadd.f32 %v2018_v62, %v2025_v10 }
  0xd0   : > { %v1006_v6 = vadd.f32 %v1005_v38, %v917_v5 }
  0xd1   : > { %v2058_v7 = vpop.f32.mrf.mxu3 }
  0xd2   : > { %v1079_v8 = vmax.f32 %v1006_v6, 0.0 }
  0xd3   : > { %v829_v9 = vpop.f32.mrf.mxu0  ;;  %v1012_v17 = vpop.f32.mrf.mxu2 }
  0xd4   : > { %v1114_v13 = vsel %vm759_vm0, %v1079_v8, 0.0  ;;  %v830_v14 = vadd.f32 %v2018_v62, %v829_v9  ;;  %v918_v15 = vpop.f32.mrf.mxu1 }
  0xd5   : > { %v1115_v16 = vadd.f32 %v1114_v13, %v1113_v3  ;;  %v880_v13 = vadd.f32 %v2018_v62, %v2036_v27 }
  0xd6   : > { %v919_v18 = vadd.f32 %v918_v15, %v830_v14 }
  0xd8   : > { %v1008_v22 = vadd.f32 %v1007_v50, %v919_v18  ;;  %1595 = vmatmul.msk.bf16.gmra.mxu2 %vm759_vm0, %v1474_v19  ;;  %v1486_v50 = vor.u32 %v1646_v43, %v1485_v42 }
  0xd9   : > { %v2068_v25 = vpop.f32.mrf.mxu3 }
  0xda   : > { %v1080_v26 = vmax.f32 %v1008_v22, 0.0 }
  0xdb   : > { %v832_v29 = vpop.f32.mrf.mxu0  ;;  %v1015_v35 = vpop.f32.mrf.mxu2 }
  0xdc   : > { %v1116_v31 = vsel %vm759_vm0, %v1080_v26, 0.0  ;;  %v833_v32 = vadd.f32 %v2018_v62, %v832_v29  ;;  %v921_v33 = vpop.f32.mrf.mxu1 }
  0xdd   : > { %v1117_v34 = vadd.f32 %v1116_v31, %v1115_v16 }
  0xde   : > { %v922_v36 = vadd.f32 %v921_v33, %v833_v32  ;;  %871 = vmatmul.bf16.gmra.mxu0 %v1454_v28 }
  0xdf   : > { %960 = vmatmul.bf16.gmra.mxu1 %v1458_v30 }
  0xe0   : > { %v1011_v37 = vadd.f32 %v1010_v4, %v922_v36 }
  0xe1   : > { %v2073_v38 = vpop.f32.mrf.mxu3 }
  0xe2   : > { %v1081_v39 = vmax.f32 %v1011_v37, 0.0 }
  0xe3   : > { %v834_v40 = vpop.f32.mrf.mxu0  ;;  %v1017_v48 = vpop.f32.mrf.mxu2 }
  0xe4   : > { %v1118_v44 = vsel %vm759_vm0, %v1081_v39, 0.0  ;;  %v835_v45 = vadd.f32 %v2018_v62, %v834_v40  ;;  %v923_v46 = vpop.f32.mrf.mxu1 }
  0xe5   : > { %v1119_v47 = vadd.f32 %v1118_v44, %v1117_v34 }
  0xe6   : > { %v924_v49 = vadd.f32 %v923_v46, %v835_v45 }
  0xe8   : > { %v1013_v51 = vadd.f32 %v1012_v17, %v924_v49  ;;  %1596 = vmatmul.msk.bf16.gmra.mxu2 %vm759_vm0, %v1486_v50 }
  0xe9   : > { %v2079_v52 = vpop.f32.mrf.mxu3 }
  0xea   : > { %v1082_v53 = vmax.f32 %v1013_v51, 0.0 }
  0xeb   : > { %v837_v54 = vpop.f32.mrf.mxu0  ;;  %v1020_v60 = vpop.f32.mrf.mxu2 }
  0xec   : > { %v1120_v55 = vsel %vm759_vm0, %v1082_v53, 0.0  ;;  %v838_v56 = vadd.f32 %v2018_v62, %v837_v54  ;;  %v926_v57 = vpop.f32.mrf.mxu1 }
  0xed   : > { %v1121_v59 = vadd.f32 %v1120_v55, %v1119_v47 }
  0xee   : > { %v927_v61 = vadd.f32 %v926_v57, %v838_v56 }
  0xf0   : > { %v1016_v0 = vadd.f32 %v1015_v35, %v927_v61 }
  0xf1   : > { %v966_v1 = vpop.f32.mrf.mxu3 }
  0xf2   : > { %v1083_v2 = vmax.f32 %v1016_v0, 0.0  ;;  %v2086_v3 = vadd.f32 %v966_v1, %v878_v63 }
  0xf3   : > { %v839_v4 = vpop.f32.mrf.mxu0  ;;  %v1022_v11 = vpop.f32.mrf.mxu2 }
  0xf4   : > { %v1122_v5 = vsel %vm759_vm0, %v1083_v2, 0.0  ;;  %v840_v6 = vadd.f32 %v2018_v62, %v839_v4  ;;  %v928_v8 = vpop.f32.mrf.mxu1 }
  0xf5   : > { %v1123_v9 = vadd.f32 %v1122_v5, %v1121_v59 }
  0xf6   : > { %v929_v12 = vadd.f32 %v928_v8, %v840_v6 }
  0xf8   : > { %v1018_v14 = vadd.f32 %v1017_v48, %v929_v12 }
  0xf9   : > { %v968_v15 = vpop.f32.mrf.mxu3 }
  0xfa   : > { %v1084_v10 = vmax.f32 %v1018_v14, 0.0  ;;  %v2092_v16 = vadd.f32 %v968_v15, %v880_v13 }
  0xfb   : > { %v842_v17 = vpop.f32.mrf.mxu0  ;;  %v1025_v22 = vpop.f32.mrf.mxu2 }
  0xfc   : > { %v1124_v18 = vsel %vm759_vm0, %v1084_v10, 0.0  ;;  %v843_v19 = vadd.f32 %v2018_v62, %v842_v17  ;;  %v931_v20 = vpop.f32.mrf.mxu1 }
  0xfd   : > { %v1125_v21 = vadd.f32 %v1124_v18, %v1123_v9 }
  0xfe   : > { %v932_v23 = vadd.f32 %v931_v20, %v843_v19 }
 0x100   : > { %v1021_v24 = vadd.f32 %v1020_v60, %v932_v23 }
 0x101   : > { %v2104_v63 = vpop.f32.mrf.mxu3 }
 0x102   : > { %v1085_v26 = vmax.f32 %v1021_v24, 0.0 }
 0x103   : > { %v844_v28 = vpop.f32.mrf.mxu0  ;;  %v1027_v32 = vpop.f32.mrf.mxu2 }
 0x104   : > { %v1126_v29 = vsel %vm759_vm0, %v1085_v26, 0.0  ;;  %v845_v27 = vadd.f32 %v2018_v62, %v844_v28  ;;  %v933_v30 = vpop.f32.mrf.mxu1 }
 0x105   : > { %v1127_v31 = vadd.f32 %v1126_v29, %v1125_v21 }
 0x106   : > { %v934_v33 = vadd.f32 %v933_v30, %v845_v27 }
 0x108   : > { %v1023_v34 = vadd.f32 %v1022_v11, %v934_v33 }
 0x109   : > { %v2108_v15 = vpop.f32.mrf.mxu3 }
 0x10a   : > { %v1086_v35 = vmax.f32 %v1023_v34, 0.0 }
 0x10b   : > { %v847_v36 = vpop.f32.mrf.mxu0  ;;  %v1030_v43 = vpop.f32.mrf.mxu2 }
 0x10c   : > { %v1128_v37 = vsel %vm759_vm0, %v1086_v35, 0.0  ;;  %v848_v39 = vadd.f32 %v2018_v62, %v847_v36  ;;  %v936_v40 = vpop.f32.mrf.mxu1 }
 0x10d   : > { %v1129_v42 = vadd.f32 %v1128_v37, %v1127_v31 }
 0x10e   : > { %v937_v44 = vadd.f32 %v936_v40, %v848_v39 }
 0x110   : > { %v1026_v45 = vadd.f32 %v1025_v22, %v937_v44 }
 0x111   : > { %v2112_v28 = vpop.f32.mrf.mxu3 }
 0x112   : > { %v1087_v46 = vmax.f32 %v1026_v45, 0.0 }
 0x113   : > { %v849_v47 = vpop.f32.mrf.mxu0  ;;  %v1032_v53 = vpop.f32.mrf.mxu2 }
 0x114   : > { %v1130_v48 = vsel %vm759_vm0, %v1087_v46, 0.0  ;;  %v850_v49 = vadd.f32 %v2018_v62, %v849_v47  ;;  %v938_v50 = vpop.f32.mrf.mxu1 }
 0x115   : > { %v1131_v51 = vadd.f32 %v1130_v48, %v1129_v42 }
 0x116   : > { %v939_v54 = vadd.f32 %v938_v50, %v850_v49 }
 0x118   : > { %v1028_v55 = vadd.f32 %v1027_v32, %v939_v54 }
 0x119   : > { %v2115_v34 = vpop.f32.mrf.mxu3 }
 0x11a   : > { %v1088_v56 = vmax.f32 %v1028_v55, 0.0 }
 0x11b   : > { %v852_v57 = vpop.f32.mrf.mxu0  ;;  %v1035_v1 = vpop.f32.mrf.mxu2 }
 0x11c   : > { %v1132_v59 = vsel %vm759_vm0, %v1088_v56, 0.0  ;;  %v853_v60 = vadd.f32 %v2018_v62, %v852_v57  ;;  %v941_v61 = vpop.f32.mrf.mxu1 }
 0x11d   : > { %v1133_v0 = vadd.f32 %v1132_v59, %v1131_v51 }
 0x11e   : > { %v942_v2 = vadd.f32 %v941_v61, %v853_v60 }
 0x120   : > { %v1031_v4 = vadd.f32 %v1030_v43, %v942_v2 }
 0x121   : > { %v2117_v42 = vpop.f32.mrf.mxu3 }
 0x122   : > { %v1089_v5 = vmax.f32 %v1031_v4, 0.0 }
 0x123   : > { %v854_v6 = vpop.f32.mrf.mxu0  ;;  %v1037_v13 = vpop.f32.mrf.mxu2 }
 0x124   : > { %v1134_v8 = vsel %vm759_vm0, %v1089_v5, 0.0  ;;  %v855_v9 = vadd.f32 %v2018_v62, %v854_v6  ;;  %v943_v11 = vpop.f32.mrf.mxu1 }
 0x125   : > { %v1135_v12 = vadd.f32 %v1134_v8, %v1133_v0 }
 0x126   : > { %v944_v14 = vadd.f32 %v943_v11, %v855_v9 }
 0x128   : > { %v1033_v10 = vadd.f32 %v1032_v53, %v944_v14 }
 0x129   : > { %v2120_v48 = vpop.f32.mrf.mxu3 }
 0x12a   : > { %v1090_v17 = vmax.f32 %v1033_v10, 0.0 }
 0x12b   : > { %v857_v18 = vpop.f32.mrf.mxu0  ;;  %v1040_v23 = vpop.f32.mrf.mxu2 }
 0x12c   : > { %v1136_v19 = vsel %vm759_vm0, %v1090_v17, 0.0  ;;  %v858_v20 = vadd.f32 %v2018_v62, %v857_v18  ;;  %v946_v21 = vpop.f32.mrf.mxu1 }
 0x12d   : > { %v1137_v22 = vadd.f32 %v1136_v19, %v1135_v12 }
 0x12e   : > { %v947_v24 = vadd.f32 %v946_v21, %v858_v20 }
 0x130   : > { %v1036_v26 = vadd.f32 %v1035_v1, %v947_v24 }
 0x131   : > { %v1065_v2 = vpop.f32.mrf.mxu3 }
 0x132   : > { %v1091_v29 = vmax.f32 %v1036_v26, 0.0 }
 0x133   : > { %v859_v27 = vpop.f32.mrf.mxu0  ;;  %v1042_v33 = vpop.f32.mrf.mxu2 }
 0x134   : > { %v1138_v30 = vsel %vm759_vm0, %v1091_v29, 0.0  ;;  %v948_v31 = vpop.f32.mrf.mxu1  ;;  %v860_v47 = vadd.f32 %v2018_v62, %v859_v27 }
 0x135   : > { %v1139_v32 = vadd.f32 %v1138_v30, %v1137_v22 }
 0x136   : > { %v949_v50 = vadd.f32 %v948_v31, %v860_v47 }
 0x138   : > { %v1038_v59 = vadd.f32 %v1037_v13, %v949_v50  ;;  %v883_v50 = vadd.f32 %v2018_v62, %v2043_v41 }
 0x139   : > { %v1067_v29 = vpop.f32.mrf.mxu3 }
 0x13a   : > { %v1092_v4 = vmax.f32 %v1038_v59, 0.0 }
 0x13b   : > { %v862_v35 = vpop.f32.mrf.mxu0  ;;  %v1045_v37 = vpop.f32.mrf.mxu2 }
 0x13c   : > { %v951_v36 = vpop.f32.mrf.mxu1  ;;  %v863_v49 = vadd.f32 %v2018_v62, %v862_v35  ;;  %v1140_v17 = vsel %vm759_vm0, %v1092_v4, 0.0 }
 0x13e   : > { %v952_v54 = vadd.f32 %v951_v36, %v863_v49 }
 0x140   : > { %v1041_v0 = vadd.f32 %v1040_v23, %v952_v54  ;;  %v1141_v23 = vadd.f32 %v1140_v17, %v1139_v32 }
 0x142   : > { %v1093_v9 = vmax.f32 %v1041_v0, 0.0 }
 0x143   : > { %v864_v39 = vpop.f32.mrf.mxu0  ;;  %v1047_v43 = vpop.f32.mrf.mxu2 }
 0x144   : > { %v953_v40 = vpop.f32.mrf.mxu1  ;;  %v865_v51 = vadd.f32 %v2018_v62, %v864_v39  ;;  %v1142_v20 = vsel %vm759_vm0, %v1093_v9, 0.0 }
 0x145   : > { %v1143_v27 = vadd.f32 %v1142_v20, %v1141_v23 }
 0x146   : > { %v954_v60 = vadd.f32 %v953_v40, %v865_v51 }
 0x148   : > { %v1043_v5 = vadd.f32 %v1042_v33, %v954_v60 }
 0x14a   : > { %v1094_v18 = vmax.f32 %v1043_v5, 0.0 }
 0x14b   : > { %v867_v44 = vpop.f32.mrf.mxu0  ;;  %v1050_v46 = vpop.f32.mrf.mxu2 }
 0x14c   : > { %v956_v45 = vpop.f32.mrf.mxu1  ;;  %v868_v55 = vadd.f32 %v2018_v62, %v867_v44  ;;  %v1144_v24 = vsel %vm759_vm0, %v1094_v18, 0.0 }
 0x14d   : > { %v1145_v36 = vadd.f32 %v1144_v24, %v1143_v27 }
 0x14e   : > { %v957_v1 = vadd.f32 %v956_v45, %v868_v55  ;;  %v972_v55 = vadd.f32 %v2104_v63, %v883_v50  ;;  %v885_v63 = vadd.f32 %v2018_v62, %v2053_v58  ;;  %v895_v58 = vadd.f32 %v2018_v62, %v2079_v52 }
 0x150   : > { %v1046_v11 = vadd.f32 %v1045_v37, %v957_v1 }
 0x152   : > { %v1095_v21 = vmax.f32 %v1046_v11, 0.0 }
 0x153   : > { %v869_v53 = vpop.f32.mrf.mxu0  ;;  %v1052_v57 = vpop.f32.mrf.mxu2 }
 0x154   : > { %v958_v56 = vpop.f32.mrf.mxu1  ;;  %v870_v61 = vadd.f32 %v2018_v62, %v869_v53  ;;  %v1146_v31 = vsel %vm759_vm0, %v1095_v21, 0.0 }
 0x155   : > { %v1147_v32 = vadd.f32 %v1146_v31, %v1145_v36 }
 0x156   : > { %v959_v6 = vadd.f32 %v958_v56, %v870_v61 }
 0x158   : > { %v1048_v13 = vadd.f32 %v1047_v43, %v959_v6  ;;  %v890_v6 = vadd.f32 %v2018_v62, %v2068_v25 }
 0x15a   : > { %v1096_v26 = vmax.f32 %v1048_v13, 0.0 }
 0x15b   : > { %v872_v8 = vpop.f32.mrf.mxu0  ;;  %v1055_v10 = vpop.f32.mrf.mxu2 }
 0x15c   : > { %v873_v12 = vadd.f32 %v2018_v62, %v872_v8  ;;  %v961_v14 = vpop.f32.mrf.mxu1  ;;  %v1148_v40 = vsel %vm759_vm0, %v1096_v26, 0.0  ;;  %v1056_v43 = vadd.f32 %v1055_v10, %v2086_v3  ;;  %v1070_v3 = vpop.f32.mrf.mxu3 }
 0x15d   : > { %v1149_v49 = vadd.f32 %v1148_v40, %v1147_v32 }
 0x15e   : > { %v962_v19 = vadd.f32 %v961_v14, %v873_v12  ;;  %v1099_v51 = vmax.f32 %v1056_v43, 0.0  ;;  %v893_v12 = vadd.f32 %v2018_v62, %v2073_v38  ;;  %v979_v14 = vadd.f32 %v2115_v34, %v890_v6 }
 0x160   : > { %v1051_v22 = vadd.f32 %v1050_v46, %v962_v19  ;;  %v1154_v0 = vsel %vm759_vm0, %v1099_v51, 0.0  ;;  %v982_v18 = vadd.f32 %v2117_v42, %v893_v12  ;;  %v1068_v25 = vadd.f32 %v1067_v29, %v979_v14 }
 0x161   : > { %v984_v19 = vadd.f32 %v2120_v48, %v895_v58 }
 0x162   : > { %v1097_v33 = vmax.f32 %v1051_v22, 0.0  ;;  %v1071_v21 = vadd.f32 %v1070_v3, %v982_v18  ;;  %v1104_v38 = vmax.f32 %v1068_v25, 0.0 }
 0x163   : > { %v874_v30 = vpop.f32.mrf.mxu0  ;;  %v1057_v39 = vpop.f32.mrf.mxu2 }
 0x164   : > { %v875_v35 = vadd.f32 %v2018_v62, %v874_v30  ;;  %v963_v37 = vpop.f32.mrf.mxu1  ;;  %v1150_v45 = vsel %vm759_vm0, %v1097_v33, 0.0  ;;  %v1058_v47 = vadd.f32 %v1057_v39, %v2092_v16  ;;  %v888_v16 = vadd.f32 %v2018_v62, %v2058_v7 }
 0x165   : > { %v1151_v54 = vadd.f32 %v1150_v45, %v1149_v49  ;;  %v974_v7 = vadd.f32 %v2108_v15, %v885_v63  ;;  %v1105_v24 = vmax.f32 %v1071_v21, 0.0  ;;  %v1164_v62 = vsel %vm759_vm0, %v1104_v38, 0.0 }
 0x166   : > { %v964_v44 = vadd.f32 %v963_v37, %v875_v35  ;;  %v1100_v59 = vmax.f32 %v1058_v47, 0.0  ;;  %v977_v8 = vadd.f32 %v2112_v28, %v888_v16  ;;  %v1072_v28 = vpop.f32.mrf.mxu3 }
 0x167   : > { %v1073_v23 = vadd.f32 %v1072_v28, %v984_v19  ;;  %v1166_v29 = vsel %vm759_vm0, %v1105_v24, 0.0 }
 0x168   : > { %v1053_v46 = vadd.f32 %v1052_v57, %v964_v44  ;;  %v1156_v41 = vsel %vm759_vm0, %v1100_v59, 0.0  ;;  %v1066_v10 = vadd.f32 %v1065_v2, %v977_v8 }
 0x169   : > { %v1106_v52 = vmax.f32 %v1073_v23, 0.0 }
 0x16a   : > { %v1098_v53 = vmax.f32 %v1053_v46, 0.0  ;;  %v1103_v20 = vmax.f32 %v1066_v10, 0.0 }
 0x16b   : > { %v1060_v61 = vpop.f32.mrf.mxu2  ;;  %v1168_v48 = vsel %vm759_vm0, %v1106_v52, 0.0 }
 0x16c   : > { %v1152_v56 = vsel %vm759_vm0, %v1098_v53, 0.0  ;;  %v1061_v57 = vadd.f32 %v1060_v61, %v972_v55  ;;  %v1162_v2 = vsel %vm759_vm0, %v1103_v20, 0.0 }
 0x16d   : > { %v1153_v60 = vadd.f32 %v1152_v56, %v1151_v54 }
 0x16e   : > { %v1101_v4 = vmax.f32 %v1061_v57, 0.0 }
 0x16f   : > { %v1155_v1 = vadd.f32 %v1154_v0, %v1153_v60 }
 0x170   : > { %v1158_v9 = vsel %vm759_vm0, %v1101_v4, 0.0 }
 0x171   : > { %v1157_v5 = vadd.f32 %v1156_v41, %v1155_v1 }
 0x173   : > { %v1159_v11 = vadd.f32 %v1158_v9, %v1157_v5  ;;  %v1062_v17 = vpop.f32.mrf.mxu2 }
 0x174   : > { %v1063_v13 = vadd.f32 %v1062_v17, %v974_v7 }
 0x176   : > { %v1102_v22 = vmax.f32 %v1063_v13, 0.0 }
 0x178   : > { %v1160_v15 = vsel %vm759_vm0, %v1102_v22, 0.0 }
 0x179   : > { %v1161_v34 = vadd.f32 %v1160_v15, %v1159_v11 }
 0x17b   : > { %v1163_v26 = vadd.f32 %v1162_v2, %v1161_v34 }
 0x17d   : > { %v1165_v42 = vadd.f32 %v1164_v62, %v1163_v26 }
 0x17f   : > { %v1167_v27 = vadd.f32 %v1166_v29, %v1165_v42 }
 0x181   : > { %v1169_v30 = vadd.f32 %v1168_v48, %v1167_v27 }
 0x183   : > { %v1170_v31 = vrot.slane %v1169_v30, 4 }
 0x185   : > { %v1171_v33 = vadd.f32 %v1170_v31, %v1169_v30 }
 0x187   : > { %v1172_v35 = vrot.slane %v1171_v33, 2 }
 0x189   : > { %v1173_v36 = vadd.f32 %v1172_v35, %v1171_v33  ;;  %1179 = sbr.rel (%p1599_p7) target bundleno = 400 (0x190), region = 52 }
 0x18b   : > { %v1174_v37 = vrot.slane %v1173_v36, 1 }
 0x18d   : > { %v1175_v39 = vadd.f32 %v1174_v37, %v1173_v36 }
 0x18e   : > { %vm1180_vm1 = vcmask 253952  }
 0x18f   : > { %1181 = vst.msk [vmem:[#allocation2] sm:$0x1] %vm1180_vm1, %v1175_v39 }
 0x190 PF: > { %p1600_p8 = scmp.le.s32.totalorder %s1760_s24, 0 }
 0x192   : > { %1185 = sbr.rel (%p1600_p8) target bundleno = 411 (0x19b), region = 56 }
 0x197   : > { %v1186_v40 = vld [vmem:[#allocation2] sm:$0x1]  ;;  %vm1188_vm2 = vcmask 253952  }
 0x198   : > { %v1187_v43 = vadd.f32 %v1186_v40, %v1175_v39 }
 0x19a   : > { %1189 = vst.msk [vmem:[#allocation2] sm:$0x1] %vm1188_vm2, %v1187_v43 }
 0x19b PF: > { %p1601_p9 = scmp.ne.s32.totalorder %s1760_s24, 8 }
 0x19d   : > { %1193 = sbr.rel (%p1601_p9) target bundleno = 707 (0x2c3), region = 60 }
 0x1a2   : > { %v1194_v44 = vld [vmem:[#allocation2] sm:$0x1]  ;;  %vm1201_vm3 = vcmask 254976   ;;  %v1778_v50 = vmov 0   ;;  %vm1243_vm6 = vcmask 253952  }
 0x1a3   : > { %v1195_v32 = vmul.f32 0.00043402778, %v1194_v44  ;;  %v1196_v45 = vld [vmem:[%s2201_s3] sm:$0x3]  ;;  %1733 = vset.pattern.permute.xlu0 %v1778_v50 }
 0x1a4   : > { %v1205_v51 = vld [vmem:[%s2202_s4] sm:$0x3] }
 0x1a5   : > { %v1198_v46 = vperm.slane %v1195_v32, 0  ;;  %v1208_v56 = vld [vmem:[%s2203_s5] sm:$0x3] }
 0x1a6   : > { %v1222_v41 = vld [vmem:[%s2204_s6] sm:$0x1] }
 0x1a7   : > { %v1200_v47 = vmul.f32 %v1198_v46, %v1196_v45 }
 0x1a9   : > { %v1202_v49 = vsel %vm1201_vm3, %v1200_v47, 0.0 }
 0x1aa   : > { %1203 = vadd.xlane.f32.xlu0 %v1202_v49 }
 0x21d   : > { %v1204_v53 = vpop.xlane.xlu0 %1203 }
 0x21e   : > { %v1206_v54 = vadd.f32 %v1205_v51, %v1204_v53 }
 0x220   : > { %v1207_v55 = vmax.f32 %v1206_v54, 0.0 }
 0x222   : > { %1211 = vperm.xlu0 %1733, %v1207_v55  }
 0x294   : > { %v1212_v59 = vpop.permute.xlu0 %1211 }
 0x295   : > { %v1214_v3 = vmul.f32 %v1212_v59, %v1208_v56 }
 0x297   : > { %v1215_v60 = vsel %vm1201_vm3, %v1214_v3, 0.0 }
 0x298   : > { %v1216_v61 = vrot.slane %v1215_v60, 4 }
 0x29a   : > { %v1217_v0 = vadd.f32 %v1216_v61, %v1215_v60 }
 0x29c   : > { %v1218_v57 = vrot.slane %v1217_v0, 2 }
 0x29e   : > { %v1219_v1 = vadd.f32 %v1218_v57, %v1217_v0 }
 0x2a0   : > { %v1220_v16 = vrot.slane %v1219_v1, 1 }
 0x2a2   : > { %v1221_v4 = vadd.f32 %v1220_v16, %v1219_v1 }
 0x2a4   : > { %v1223_v5 = vadd.f32 %v1222_v41, %v1221_v4 }
 0x2a6   : > { %v1602_v63 = vmul.f32 -1.442695, %v1223_v5 }
 0x2a8   : > { %1734 = vpow2.f32 %v1602_v63 }
 0x2ae   : > { %v1735_v6 = vpop.eup %1734 }
 0x2af   : > { %v1227_v8 = vadd.f32 1.0, %v1735_v6 }
 0x2b1   : > { %1736 = vrcp.f32 %v1227_v8  ;;  %v1239_v7 = vand.u32 2147483648, %v1227_v8  ;;  %v1237_v10 = vand.u32 2147483647, %v1227_v8  ;;  %vm1233_vm5 = vweird.f32 %v1227_v8 }
 0x2b3   : > { %v1240_v58 = vor.u32 1.1754944e-38, %v1239_v7  ;;  %vm1238_vm8 = vcmp.eq.f32.partialorder %v1237_v10, 8.507059e+37 }
 0x2b7   : > { %v1737_v9 = vpop.eup %1736 }
 0x2b8   : > { %v1229_v11 = vmul.f32 %v1737_v9, %v1227_v8  ;;  %vm1234_vm4 = vweird.f32 %v1737_v9 }
 0x2b9   : > { %vm1235_vm7 = vmor %vm1233_vm5, %vm1234_vm4 }
 0x2ba   : > { %v1230_v12 = vsub.f32 1.0, %v1229_v11 }
 0x2bc   : > { %v1231_v14 = vmul.f32 %v1737_v9, %v1230_v12 }
 0x2be   : > { %v1232_v17 = vadd.f32 %v1737_v9, %v1231_v14 }
 0x2c0   : > { %v1236_v18 = vsel %vm1235_vm7, %v1737_v9, %v1232_v17 }
 0x2c1   : > { %v1241_v25 = vsel %vm1238_vm8, %v1240_v58, %v1236_v18 }
 0x2c2   : > { %1244 = vst.msk [vmem:[%s305_s8] sm:$0x1] %vm1243_vm6, %v1241_v25 }
 0x2c3 PF: > { %s17_s28 = sadd.s32 1, %s1776_s28   ;;  %s2206_s24 = smov %s1768_s26 }
 0x2c4   : > { %p14_p10 = scmp.ge.s32.totalorder %s17_s28, 20   ;;  %s2207_s25 = smov %s1772_s27 }
 0x2c5   : > { %s2208_s26 = smov %s2211_s29  ;;  %s2209_s27 = smov %s2215_s30 }
 0x2c6   :  { %16 = sbr.rel (!%p14_p10) target bundleno = 3 (0x3), region = 90 }

// kernel: residual_group_forward.19
= control target key start
LH: loop header
LB: loop body
LE: loop exit
PB: predicated region body
PF: predicated region fallthrough
CT: control target
= control target key end

     0   :  { %s809_s15 = smov 0   ;;  %s811_s16 = smov 0   ;;  %s1043_s0 = inlined_call_operand.vmem [shape: f32[2,48,1536], index: 0, kind: input, shape index: {}]   ;;  %s1044_s1 = inlined_call_operand.vmem [shape: f32[2,1,1536], index: 1, kind: input, shape index: {}]   ;;  %s1045_s2 = inlined_call_operand.vmem [shape: f32[2,48,1536], index: 2, kind: input, shape index: {}]   ;;  %s1046_s3 = inlined_call_operand.vmem [shape: f32[2,48,1536], index: 3, kind: input, shape index: {}]   ;;  %s1047_s4 = inlined_call_operand.vmem [shape: f32[2,48,1536], index: 4, kind: output, shape index: {}]  }
   0x1   :  { %s813_s17 = smov 0   ;;  %s815_s18 = smov 0  }
   0x2   :  { %s817_s19 = smov 0  }
   0x3 LB: > { %s23_s20 = sadd.s32 1, %s774_s17  ;;  %s26_s21 = sadd.s32 1, %s778_s18  ;;  %s782_s19 = sphi %s817_s19, %s14_s19   ;;  %s778_s18 = sphi %s815_s18, %s1051_s18   ;;  %s774_s17 = sphi %s813_s17, %s1050_s17   ;;  %s770_s16 = sphi %s811_s16, %s1049_s16   ;;  %s766_s15 = sphi %s809_s15, %s1048_s15  }
   0x4   : > { %p24_p0 = scmp.ge.s32.totalorder %s23_s20, 3  ;;  %p690_p1 = scmp.ge.s32.totalorder %s782_s19, 1 }
   0x5   : > { %p229_p2 = scmp.lt.s32.totalorder %s782_s19, 7 }
   0x6   : > { %s1053_s20 = smov (%p24_p0, %s23_s20), 0  ;;  %s1055_s21 = smov (!%p24_p0, %s26_s21), %s778_s18 }
   0x7   : > { %p230_p3 = pnand %p690_p1, %p229_p2  ;;  %p28_p4 = scmp.ge.s32.totalorder %s1055_s21, 2 }
   0x8   : > { %s691_s22 = sshll.u32 (!%p230_p3), %s766_s15, 1  ;;  %p290_p5 = scmp.lt.s32.totalorder (!%p230_p3), %s770_s16, 1 }
   0x9   : > { %s1057_s21 = smov (%p28_p4, %s1055_s21), 0  ;;  %233 = sbr.rel (%p230_p3) target bundleno = 53 (0x35), region = 36 }
   0xa   : > { %p292_p6 = scmp.lt.s32.totalorder (!%p230_p3), %s691_s22, 5 }
   0xe   : > { %s1059_s16 = smov (!%p290_p5, %s770_s16), 1  ;;  %s1061_s22 = smov (!%p292_p6, %s691_s22), 5 }
   0xf   : > { %s702_s23 = smul.u32 72, %s1059_s16 }
  0x10   : > { %s701_s24 = smul.u32 12, %s1061_s22 }
  0x11   : > { %s703_s25 = smul.u32 12, %s1059_s16 }
  0x12   : > { %s296_s26 = sadd.s32 %s702_s23, %s701_s24 }
  0x13   : > { %s839_s27 = sshll.u32 %s296_s26, 3  ;;  %s303_s30 = scalar_lea.vmem %s1044_s1, %s703_s25 }
  0x14   : > { %s848_s7 = scalar_lea.vmem %s1043_s0, %s839_s27  ;;  %s854_s10 = scalar_lea.vmem %s1045_s2, %s839_s27  ;;  %v856_v0 = vld [vmem:[%s303_s30] sm:$0xff]  ;;  %v873_v10 = vld [vmem:[%s303_s30 + $0x8] sm:$0xf] }
  0x15   : > { %s862_s13 = scalar_lea.vmem %s1046_s3, %s839_s27  ;;  %v337_v1 = vld [vmem:[%s848_s7] sm:$0xff]  ;;  %v365_v2 = vperm.slane %v856_v0, 0  ;;  %v338_v3 = vld [vmem:[%s848_s7 + $0x8] sm:$0xff]  ;;  %v366_v4 = vperm.slane %v856_v0, 1  ;;  %v367_v5 = vperm.slane %v856_v0, 2  ;;  %v368_v8 = vperm.slane %v856_v0, 3  ;;  %s899_s16 = scalar_lea.vmem %s1047_s4, %s839_s27 }
  0x16   : > { %v413_v6 = vld [vmem:[%s854_s10] sm:$0xff]  ;;  %v414_v7 = vld [vmem:[%s854_s10 + $0x8] sm:$0xff]  ;;  %v369_v9 = vperm.slane %v856_v0, 4  ;;  %v339_v14 = vld [vmem:[%s848_s7 + $0x10] sm:$0xff]  ;;  %v370_v16 = vperm.slane %v856_v0, 5  ;;  %v371_v21 = vperm.slane %v856_v0, 6 }
  0x17   : > { %v389_v11 = vmul.f32 %v365_v2, %v337_v1  ;;  %v461_v12 = vld [vmem:[%s862_s13] sm:$0xff]  ;;  %v390_v13 = vmul.f32 %v366_v4, %v338_v3  ;;  %v415_v15 = vld [vmem:[%s854_s10 + $0x10] sm:$0xff]  ;;  %v462_v17 = vld [vmem:[%s862_s13 + $0x8] sm:$0xff]  ;;  %v391_v18 = vmul.f32 %v367_v5, %v339_v14  ;;  %v372_v28 = vperm.slane %v856_v0, 7 }
  0x18   : > { %v340_v19 = vld [vmem:[%s848_s7 + $0x18] sm:$0xff]  ;;  %v463_v24 = vld [vmem:[%s862_s13 + $0x10] sm:$0xff]  ;;  %v341_v26 = vld [vmem:[%s848_s7 + $0x20] sm:$0xff]  ;;  %v373_v34 = vperm.slane %v873_v10, 0  ;;  %v374_v35 = vperm.slane %v873_v10, 1  ;;  %v375_v49 = vperm.slane %v873_v10, 2 }
  0x19   : > { %v416_v20 = vld [vmem:[%s854_s10 + $0x18] sm:$0xff]  ;;  %v437_v22 = vadd.f32 %v413_v6, %v389_v11  ;;  %v438_v23 = vadd.f32 %v414_v7, %v390_v13  ;;  %v392_v25 = vmul.f32 %v368_v8, %v340_v19  ;;  %v417_v27 = vld [vmem:[%s854_s10 + $0x20] sm:$0xff]  ;;  %v439_v29 = vadd.f32 %v415_v15, %v391_v18  ;;  %v342_v32 = vld [vmem:[%s848_s7 + $0x28] sm:$0xff] }
  0x1a   : > { %v464_v30 = vld [vmem:[%s862_s13 + $0x18] sm:$0xff]  ;;  %v393_v31 = vmul.f32 %v369_v9, %v341_v26  ;;  %v418_v33 = vld [vmem:[%s854_s10 + $0x28] sm:$0xff]  ;;  %v465_v39 = vld [vmem:[%s862_s13 + $0x20] sm:$0xff]  ;;  %v394_v40 = vmul.f32 %v370_v16, %v342_v32  ;;  %v376_v56 = vperm.slane %v873_v10, 3 }
  0x1b   : > { %v485_v36 = vadd.f32 %v461_v12, %v437_v22  ;;  %v486_v37 = vadd.f32 %v462_v17, %v438_v23  ;;  %v440_v38 = vadd.f32 %v416_v20, %v392_v25  ;;  %v343_v41 = vld [vmem:[%s848_s7 + $0x30] sm:$0xff]  ;;  %v487_v43 = vadd.f32 %v463_v24, %v439_v29  ;;  %v466_v45 = vld [vmem:[%s862_s13 + $0x28] sm:$0xff]  ;;  %v344_v47 = vld [vmem:[%s848_s7 + $0x38] sm:$0xff] }
  0x1c   : > { %v419_v42 = vld [vmem:[%s854_s10 + $0x30] sm:$0xff]  ;;  %v441_v44 = vadd.f32 %v417_v27, %v393_v31  ;;  %v395_v46 = vmul.f32 %v371_v21, %v343_v41  ;;  %v420_v48 = vld [vmem:[%s854_s10 + $0x38] sm:$0xff]  ;;  %v442_v51 = vadd.f32 %v418_v33, %v394_v40  ;;  %v396_v53 = vmul.f32 %v372_v28, %v344_v47  ;;  %v345_v54 = vld [vmem:[%s848_s7 + $0x40] sm:$0xff] }
  0x1d   : > { %509 = vst [vmem:[%s899_s16] sm:$0xff] %v485_v36  ;;  %v488_v50 = vadd.f32 %v464_v30, %v440_v38  ;;  %v467_v52 = vld [vmem:[%s862_s13 + $0x30] sm:$0xff]  ;;  %v421_v55 = vld [vmem:[%s854_s10 + $0x40] sm:$0xff]  ;;  %v468_v59 = vld [vmem:[%s862_s13 + $0x38] sm:$0xff]  ;;  %v397_v60 = vmul.f32 %v373_v34, %v345_v54 }
  0x1e   : > { %510 = vst [vmem:[%s899_s16 + $0x8] sm:$0xff] %v486_v37  ;;  %v489_v57 = vadd.f32 %v465_v39, %v441_v44  ;;  %v443_v58 = vadd.f32 %v419_v42, %v395_v46  ;;  %v346_v61 = vld [vmem:[%s848_s7 + $0x48] sm:$0xff]  ;;  %v490_v63 = vadd.f32 %v466_v45, %v442_v51  ;;  %v444_v1 = vadd.f32 %v420_v48, %v396_v53  ;;  %v469_v3 = vld [vmem:[%s862_s13 + $0x40] sm:$0xff]  ;;  %v347_v7 = vld [vmem:[%s848_s7 + $0x50] sm:$0xff] }
  0x1f   : > { %v422_v62 = vld [vmem:[%s854_s10 + $0x48] sm:$0xff]  ;;  %511 = vst [vmem:[%s899_s16 + $0x10] sm:$0xff] %v487_v43  ;;  %v398_v6 = vmul.f32 %v374_v35, %v346_v61  ;;  %v423_v11 = vld [vmem:[%s854_s10 + $0x50] sm:$0xff]  ;;  %v445_v13 = vadd.f32 %v421_v55, %v397_v60  ;;  %v399_v15 = vmul.f32 %v375_v49, %v347_v7  ;;  %v348_v17 = vld [vmem:[%s848_s7 + $0x58] sm:$0xff] }
  0x20   : > { %512 = vst [vmem:[%s899_s16 + $0x18] sm:$0xff] %v488_v50  ;;  %v491_v12 = vadd.f32 %v467_v52, %v443_v58  ;;  %v470_v14 = vld [vmem:[%s862_s13 + $0x48] sm:$0xff]  ;;  %v424_v18 = vld [vmem:[%s854_s10 + $0x58] sm:$0xff]  ;;  %v492_v19 = vadd.f32 %v468_v59, %v444_v1  ;;  %v471_v22 = vld [vmem:[%s862_s13 + $0x50] sm:$0xff]  ;;  %v400_v23 = vmul.f32 %v376_v56, %v348_v17 }
  0x21   : > { %513 = vst [vmem:[%s899_s16 + $0x20] sm:$0xff] %v489_v57  ;;  %v446_v20 = vadd.f32 %v422_v62, %v398_v6  ;;  %v349_v24 = vld [vmem:[%s848_s7 + $0x60] sm:$0xff]  ;;  %v493_v26 = vadd.f32 %v469_v3, %v445_v13  ;;  %v447_v27 = vadd.f32 %v423_v11, %v399_v15  ;;  %v472_v29 = vld [vmem:[%s862_s13 + $0x58] sm:$0xff]  ;;  %v350_v31 = vld [vmem:[%s848_s7 + $0x68] sm:$0xff] }
  0x22   : > { %v425_v25 = vld [vmem:[%s854_s10 + $0x60] sm:$0xff]  ;;  %514 = vst [vmem:[%s899_s16 + $0x28] sm:$0xff] %v490_v63  ;;  %v401_v30 = vmul.f32 %v365_v2, %v349_v24  ;;  %v426_v32 = vld [vmem:[%s854_s10 + $0x68] sm:$0xff]  ;;  %v448_v36 = vadd.f32 %v424_v18, %v400_v23  ;;  %v402_v38 = vmul.f32 %v366_v4, %v350_v31  ;;  %v351_v39 = vld [vmem:[%s848_s7 + $0x70] sm:$0xff] }
  0x23   : > { %515 = vst [vmem:[%s899_s16 + $0x30] sm:$0xff] %v491_v12  ;;  %v494_v33 = vadd.f32 %v470_v14, %v446_v20  ;;  %v473_v37 = vld [vmem:[%s862_s13 + $0x60] sm:$0xff]  ;;  %v427_v40 = vld [vmem:[%s854_s10 + $0x70] sm:$0xff]  ;;  %v495_v41 = vadd.f32 %v471_v22, %v447_v27  ;;  %v474_v42 = vld [vmem:[%s862_s13 + $0x68] sm:$0xff]  ;;  %v403_v43 = vmul.f32 %v367_v5, %v351_v39 }
  0x24   : > { %516 = vst [vmem:[%s899_s16 + $0x38] sm:$0xff] %v492_v19  ;;  %v449_v2 = vadd.f32 %v425_v25, %v401_v30  ;;  %v352_v44 = vld [vmem:[%s848_s7 + $0x78] sm:$0xff]  ;;  %v496_v46 = vadd.f32 %v472_v29, %v448_v36  ;;  %v450_v4 = vadd.f32 %v426_v32, %v402_v38  ;;  %v475_v47 = vld [vmem:[%s862_s13 + $0x70] sm:$0xff]  ;;  %v353_v50 = vld [vmem:[%s848_s7 + $0x80] sm:$0xff] }
  0x25   : > { %v428_v45 = vld [vmem:[%s854_s10 + $0x78] sm:$0xff]  ;;  %517 = vst [vmem:[%s899_s16 + $0x40] sm:$0xff] %v493_v26  ;;  %v404_v48 = vmul.f32 %v368_v8, %v352_v44  ;;  %v429_v51 = vld [vmem:[%s854_s10 + $0x80] sm:$0xff]  ;;  %v451_v5 = vadd.f32 %v427_v40, %v403_v43  ;;  %v405_v54 = vmul.f32 %v369_v9, %v353_v50  ;;  %v354_v55 = vld [vmem:[%s848_s7 + $0x88] sm:$0xff] }
  0x26   : > { %518 = vst [vmem:[%s899_s16 + $0x48] sm:$0xff] %v494_v33  ;;  %v497_v52 = vadd.f32 %v473_v37, %v449_v2  ;;  %v476_v53 = vld [vmem:[%s862_s13 + $0x78] sm:$0xff]  ;;  %v430_v57 = vld [vmem:[%s854_s10 + $0x88] sm:$0xff]  ;;  %v498_v58 = vadd.f32 %v474_v42, %v450_v4  ;;  %v477_v59 = vld [vmem:[%s862_s13 + $0x80] sm:$0xff]  ;;  %v406_v60 = vmul.f32 %v370_v16, %v354_v55 }
  0x27   : > { %519 = vst [vmem:[%s899_s16 + $0x50] sm:$0xff] %v495_v41  ;;  %v452_v8 = vadd.f32 %v428_v45, %v404_v48  ;;  %v355_v61 = vld [vmem:[%s848_s7 + $0x90] sm:$0xff]  ;;  %v499_v63 = vadd.f32 %v475_v47, %v451_v5  ;;  %v453_v9 = vadd.f32 %v429_v51, %v405_v54  ;;  %v478_v1 = vld [vmem:[%s862_s13 + $0x88] sm:$0xff]  ;;  %v356_v6 = vld [vmem:[%s848_s7 + $0x98] sm:$0xff] }
  0x28   : > { %v431_v62 = vld [vmem:[%s854_s10 + $0x90] sm:$0xff]  ;;  %520 = vst [vmem:[%s899_s16 + $0x58] sm:$0xff] %v496_v46  ;;  %v407_v3 = vmul.f32 %v371_v21, %v355_v61  ;;  %v432_v7 = vld [vmem:[%s854_s10 + $0x98] sm:$0xff]  ;;  %v454_v16 = vadd.f32 %v430_v57, %v406_v60  ;;  %v408_v13 = vmul.f32 %v372_v28, %v356_v6  ;;  %v357_v14 = vld [vmem:[%s848_s7 + $0xa0] sm:$0xff] }
  0x29   : > { %521 = vst [vmem:[%s899_s16 + $0x60] sm:$0xff] %v497_v52  ;;  %v500_v11 = vadd.f32 %v476_v53, %v452_v8  ;;  %v479_v12 = vld [vmem:[%s862_s13 + $0x90] sm:$0xff]  ;;  %v433_v15 = vld [vmem:[%s854_s10 + $0xa0] sm:$0xff]  ;;  %v501_v17 = vadd.f32 %v477_v59, %v453_v9  ;;  %v480_v18 = vld [vmem:[%s862_s13 + $0x98] sm:$0xff]  ;;  %v409_v19 = vmul.f32 %v373_v34, %v357_v14 }
  0x2a   : > { %522 = vst [vmem:[%s899_s16 + $0x68] sm:$0xff] %v498_v58  ;;  %v455_v21 = vadd.f32 %v431_v62, %v407_v3  ;;  %v358_v20 = vld [vmem:[%s848_s7 + $0xa8] sm:$0xff]  ;;  %v502_v0 = vadd.f32 %v478_v1, %v454_v16  ;;  %v456_v28 = vadd.f32 %v432_v7, %v408_v13  ;;  %v481_v23 = vld [vmem:[%s862_s13 + $0xa0] sm:$0xff]  ;;  %v359_v25 = vld [vmem:[%s848_s7 + $0xb0] sm:$0xff] }
  0x2b   : > { %v434_v22 = vld [vmem:[%s854_s10 + $0xa8] sm:$0xff]  ;;  %523 = vst [vmem:[%s899_s16 + $0x70] sm:$0xff] %v499_v63  ;;  %v410_v24 = vmul.f32 %v374_v35, %v358_v20  ;;  %v435_v26 = vld [vmem:[%s854_s10 + $0xb0] sm:$0xff]  ;;  %v457_v34 = vadd.f32 %v433_v15, %v409_v19  ;;  %v411_v30 = vmul.f32 %v375_v49, %v359_v25  ;;  %v360_v31 = vld [vmem:[%s848_s7 + $0xb8] sm:$0xff] }
  0x2c   : > { %524 = vst [vmem:[%s899_s16 + $0x78] sm:$0xff] %v500_v11  ;;  %v503_v27 = vadd.f32 %v479_v12, %v455_v21  ;;  %v482_v29 = vld [vmem:[%s862_s13 + $0xa8] sm:$0xff]  ;;  %v436_v32 = vld [vmem:[%s854_s10 + $0xb8] sm:$0xff]  ;;  %v504_v33 = vadd.f32 %v480_v18, %v456_v28  ;;  %v483_v36 = vld [vmem:[%s862_s13 + $0xb0] sm:$0xff]  ;;  %v412_v37 = vmul.f32 %v376_v56, %v360_v31 }
  0x2d   : > { %525 = vst [vmem:[%s899_s16 + $0x80] sm:$0xff] %v501_v17  ;;  %v458_v35 = vadd.f32 %v434_v22, %v410_v24  ;;  %v505_v38 = vadd.f32 %v481_v23, %v457_v34  ;;  %v459_v39 = vadd.f32 %v435_v26, %v411_v30  ;;  %v484_v40 = vld [vmem:[%s862_s13 + $0xb8] sm:$0xff] }
  0x2e   : > { %526 = vst [vmem:[%s899_s16 + $0x88] sm:$0xff] %v502_v0  ;;  %v460_v49 = vadd.f32 %v436_v32, %v412_v37 }
  0x2f   : > { %527 = vst [vmem:[%s899_s16 + $0x90] sm:$0xff] %v503_v27  ;;  %v506_v41 = vadd.f32 %v482_v29, %v458_v35  ;;  %v507_v2 = vadd.f32 %v483_v36, %v459_v39 }
  0x30   : > { %528 = vst [vmem:[%s899_s16 + $0x98] sm:$0xff] %v504_v33  ;;  %v508_v42 = vadd.f32 %v484_v40, %v460_v49 }
  0x31   : > { %529 = vst [vmem:[%s899_s16 + $0xa0] sm:$0xff] %v505_v38 }
  0x32   : > { %530 = vst [vmem:[%s899_s16 + $0xa8] sm:$0xff] %v506_v41 }
  0x33   : > { %531 = vst [vmem:[%s899_s16 + $0xb0] sm:$0xff] %v507_v2 }
  0x34   : > { %532 = vst [vmem:[%s899_s16 + $0xb8] sm:$0xff] %v508_v42 }
  0x35 PF: > { %s14_s19 = sadd.s32 1, %s782_s19   ;;  %s1048_s15 = smov %s774_s17 }
  0x36   : > { %p11_p7 = scmp.ge.s32.totalorder %s14_s19, 8   ;;  %s1049_s16 = smov %s778_s18 }
  0x37   : > { %s1050_s17 = smov %s1053_s20  ;;  %s1051_s18 = smov %s1057_s21 }
  0x38   :  { %13 = sbr.rel (!%p11_p7) target bundleno = 3 (0x3), region = 75 }

</bundles_post_ra>
